<compile_context>
chip_gen: v7x
topology: tpu7x:2x2x1
jax: 0.10.0
libtpu: 0.0.40
codegen_flags: <defaults>
</compile_context>

<pallas_src>
import functools

import numpy as np

import jax
import jax.numpy as jnp
from jax.experimental import pallas as pl
from jax.experimental.pallas import tpu as pltpu

BN_EPS = 1e-5


# --------------------------------------------------------------------------
# Pallas kernels
# --------------------------------------------------------------------------
def _double_conv_pool_kernel(x_ref, wb1_ref, g1_ref, be1_ref,
                             wb2_ref, g2_ref, be2_ref,
                             rep_ref, pe_ref, po_ref, se_ref, so_ref,
                             skip_ref, pool_ref, pad1_ref, pad2_ref,
                             *, B, H, W, Cin, C):
    """Fused DoubleConv (conv3x3+BN+ReLU x2) + MaxPool2d(2,2) on a row-slab layout.

    x_ref   : (B*H, W*Cin)      f32   input activations (lane-dense rows)
    wb*_ref : (3, K, W*C)       bf16  band weights (row tap dh = 0,1,2)
    g*,be*  : (1, W*C)          f32   BN gamma/beta tiled over W
    rep_ref : (W*C, W*C)        f32   per-channel sum replication matrix
    pe,po   : (B*H/2, B*(H+2)-2)f32   even/odd row selection (maxpool rows)
    se,so   : (W*C, (W/2)*C)    f32   even/odd column-block selection (maxpool cols)
    skip_ref: (B*H, W*C)        f32   pre-pool output (skip connection)
    pool_ref: (B*H/2, (W/2)*C)  f32   pooled output
    pad1/2  : VMEM bf16 scratch holding the H-halo-padded slabs
    """
    Hp = H + 2
    Rfull = B * Hp - 2
    K1 = W * Cin
    N = W * C
    inv_cnt = 1.0 / float(B * H * W)

    # ---- build H-padded bf16 input slab in VMEM (zero halo rows per image) --
    zrow1 = jnp.zeros((1, K1), jnp.bfloat16)
    for b in range(B):
        base = b * Hp
        pad1_ref[pl.ds(base, 1), :] = zrow1
        pad1_ref[pl.ds(base + H + 1, 1), :] = zrow1
        pad1_ref[pl.ds(base + 1, H), :] = x_ref[pl.ds(b * H, H), :].astype(jnp.bfloat16)

    # ---- conv1: 3 wide band matmuls over the whole slab (bf16 MXU, f32 acc) -
    acc = jnp.dot(pad1_ref[pl.ds(0, Rfull), :], wb1_ref[0],
                  preferred_element_type=jnp.float32)
    for dh in (1, 2):
        acc = acc + jnp.dot(pad1_ref[pl.ds(dh, Rfull), :], wb1_ref[dh],
                            preferred_element_type=jnp.float32)

    # ---- BatchNorm2d (training: batch stats, biased var) + ReLU, in f32 -----
    def bn_relu(a, g_row, b_row):
        s = jnp.zeros((1, N), jnp.float32)
        q = jnp.zeros((1, N), jnp.float32)
        for b in range(B):                       # valid rows only (skip halo garbage)
            blk = a[b * Hp: b * Hp + H, :]
            s = s + jnp.sum(blk, axis=0, keepdims=True)
            q = q + jnp.sum(blk * blk, axis=0, keepdims=True)
        # replicate per-channel sums across the W lane groups with one matmul
        s_t = jnp.dot(s, rep_ref[...], preferred_element_type=jnp.float32)
        q_t = jnp.dot(q, rep_ref[...], preferred_element_type=jnp.float32)
        mean = s_t * inv_cnt
        var = q_t * inv_cnt - mean * mean
        rstd = jax.lax.rsqrt(var + BN_EPS)
        return jnp.maximum((a - mean) * rstd * g_row + b_row, 0.0)

    y1 = bn_relu(acc, g1_ref[...], be1_ref[...])

    # ---- stage y1 (bf16) into the second padded slab ------------------------
    y1b = y1.astype(jnp.bfloat16)
    zrow2 = jnp.zeros((1, N), jnp.bfloat16)
    for b in range(B):
        base = b * Hp
        pad2_ref[pl.ds(base, 1), :] = zrow2
        pad2_ref[pl.ds(base + H + 1, 1), :] = zrow2
        pad2_ref[pl.ds(base + 1, H), :] = y1b[base: base + H, :]

    # ---- conv2 ---------------------------------------------------------------
    acc2 = jnp.dot(pad2_ref[pl.ds(0, Rfull), :], wb2_ref[0],
                   preferred_element_type=jnp.float32)
    for dh in (1, 2):
        acc2 = acc2 + jnp.dot(pad2_ref[pl.ds(dh, Rfull), :], wb2_ref[dh],
                              preferred_element_type=jnp.float32)

    y2 = bn_relu(acc2, g2_ref[...], be2_ref[...])

    # ---- skip connection: valid rows, lane-dense unmasked stores -------------
    for b in range(B):
        skip_ref[pl.ds(b * H, H), :] = y2[b * Hp: b * Hp + H, :]

    # ---- MaxPool2d(2,2): exact 0/1 selection matmuls + elementwise max -------
    rme = jnp.dot(pe_ref[...], y2, preferred_element_type=jnp.float32)
    rmo = jnp.dot(po_ref[...], y2, preferred_element_type=jnp.float32)
    rmax = jnp.maximum(rme, rmo)                              # (B*H/2, W*C)
    ce = jnp.dot(rmax, se_ref[...], preferred_element_type=jnp.float32)
    co = jnp.dot(rmax, so_ref[...], preferred_element_type=jnp.float32)
    pool_ref[...] = jnp.maximum(ce, co)                       # (B*H/2, (W/2)*C)


def _mlp_kernel(x_ref, w1_ref, b1_ref, w2_ref, b2_ref, o_ref):
    # Flatten -> Linear -> ReLU -> Linear, fused.  bf16 MXU operands, f32 epilogue.
    h = jnp.dot(x_ref[...].astype(jnp.bfloat16), w1_ref[...],
                preferred_element_type=jnp.float32) + b1_ref[...]
    h = jnp.maximum(h, 0.0)
    o = jnp.dot(h.astype(jnp.bfloat16), w2_ref[...],
                preferred_element_type=jnp.float32) + b2_ref[...]
    o_ref[...] = o


# --------------------------------------------------------------------------
# Wrappers (layout plumbing only; HBM reshapes are free, transposes only at
# the NCHW module boundary on tiny tensors)
# --------------------------------------------------------------------------
def double_conv_maxpool(x_nhwc, p):
    Bsz, H, W, Cin = x_nhwc.shape
    C = p["cout"]
    assert H % 2 == 0 and W % 2 == 0
    N = W * C
    Rfull = Bsz * (H + 2) - 2
    x2d = x_nhwc.reshape(Bsz * H, W * Cin)

    flops = (6 * Rfull * (W * Cin) * N            # conv1: 3 band matmuls
             + 6 * Rfull * N * N                  # conv2
             + 8 * N * N                          # BN channel-sum replication
             + 4 * (Bsz * H // 2) * Rfull * N     # pool row selections
             + 4 * (Bsz * H // 2) * N * ((W // 2) * C))   # pool col selections
    bytes_accessed = (x2d.size * 4 + p["wb1"].size * 2 + p["wb2"].size * 2
                      + (p["rmat"].size + p["pe"].size + p["po"].size
                         + p["se"].size + p["so"].size) * 4
                      + (Bsz * H * N + Bsz * (H // 2) * (W // 2) * C) * 4
                      + 4 * N * 4)
    cost = pl.CostEstimate(flops=int(flops), transcendentals=int(2 * N),
                           bytes_accessed=int(bytes_accessed))

    kern = functools.partial(_double_conv_pool_kernel,
                             B=Bsz, H=H, W=W, Cin=Cin, C=C)
    skip2d, pool2d = pl.pallas_call(
        kern,
        out_shape=(jax.ShapeDtypeStruct((Bsz * H, N), jnp.float32),
                   jax.ShapeDtypeStruct((Bsz * (H // 2), (W // 2) * C), jnp.float32)),
        grid=(1,),
        in_specs=[
            pl.BlockSpec((Bsz * H, W * Cin), lambda i: (0, 0)),
            pl.BlockSpec((3, W * Cin, N), lambda i: (0, 0, 0)),
            pl.BlockSpec((1, N), lambda i: (0, 0)),
            pl.BlockSpec((1, N), lambda i: (0, 0)),
            pl.BlockSpec((3, N, N), lambda i: (0, 0, 0)),
            pl.BlockSpec((1, N), lambda i: (0, 0)),
            pl.BlockSpec((1, N), lambda i: (0, 0)),
            pl.BlockSpec((N, N), lambda i: (0, 0)),
            pl.BlockSpec((Bsz * (H // 2), Rfull), lambda i: (0, 0)),
            pl.BlockSpec((Bsz * (H // 2), Rfull), lambda i: (0, 0)),
            pl.BlockSpec((N, (W // 2) * C), lambda i: (0, 0)),
            pl.BlockSpec((N, (W // 2) * C), lambda i: (0, 0)),
        ],
        out_specs=(pl.BlockSpec((Bsz * H, N), lambda i: (0, 0)),
                   pl.BlockSpec((Bsz * (H // 2), (W // 2) * C), lambda i: (0, 0))),
        scratch_shapes=[pltpu.VMEM((Bsz * (H + 2), W * Cin), jnp.bfloat16),
                        pltpu.VMEM((Bsz * (H + 2), N), jnp.bfloat16)],
        compiler_params=pltpu.CompilerParams(dimension_semantics=("arbitrary",)),
        cost_estimate=cost,
    )(x2d, p["wb1"], p["g1t"], p["b1t"], p["wb2"], p["g2t"], p["b2t"],
      p["rmat"], p["pe"], p["po"], p["se"], p["so"])

    skip = skip2d.reshape(Bsz, H, W, C)
    pooled = pool2d.reshape(Bsz, H // 2, W // 2, C)
    return skip, pooled


def mlp_head(x_flat, params):
    Bsz, d0 = x_flat.shape
    w1, b1 = params["mlp_w1"], params["mlp_b1"]
    w2, b2 = params["mlp_w2"], params["mlp_b2"]
    d1, d2 = w1.shape[1], w2.shape[1]
    return pl.pallas_call(
        _mlp_kernel,
        out_shape=jax.ShapeDtypeStruct((Bsz, d2), jnp.float32),
        grid=(1,),
        in_specs=[
            pl.BlockSpec((Bsz, d0), lambda i: (0, 0)),
            pl.BlockSpec((d0, d1), lambda i: (0, 0)),
            pl.BlockSpec((1, d1), lambda i: (0, 0)),
            pl.BlockSpec((d1, d2), lambda i: (0, 0)),
            pl.BlockSpec((1, d2), lambda i: (0, 0)),
        ],
        out_specs=pl.BlockSpec((Bsz, d2), lambda i: (0, 0)),
        compiler_params=pltpu.CompilerParams(dimension_semantics=("arbitrary",)),
    )(x_flat, w1, b1, w2, b2)


def encoder_projection_forward(params, x_nchw):
    x = jnp.transpose(x_nchw, (0, 2, 3, 1))                    # NCHW -> NHWC
    skips = []
    for p in params["levels"]:
        skip_nhwc, x = double_conv_maxpool(x, p)
        skips.append(jnp.transpose(skip_nhwc, (0, 3, 1, 2)))   # NHWC -> NCHW
    embedding = jnp.transpose(x, (0, 3, 1, 2))                 # NCHW
    flat = embedding.reshape(embedding.shape[0], -1)           # PyTorch Flatten order
    projection = mlp_head(flat, params)
    return embedding, projection, skips


# --------------------------------------------------------------------------
# Parameter construction (PyTorch-layout weights -> kernel layouts, once)
# --------------------------------------------------------------------------
def _band_weights(w_torch, W):
    """(Cout, Cin, 3, 3) -> (3, W*Cin, W*Cout) block-banded row-tap weights."""
    w = np.transpose(np.asarray(w_torch), (2, 3, 1, 0))        # (dh, dw, Cin, Cout)
    Cin, Cout = w.shape[2], w.shape[3]
    wb = np.zeros((3, W * Cin, W * Cout), np.float32)
    for dh in range(3):
        for dw in range(3):
            for j in range(W):
                jin = j + dw - 1
                if 0 <= jin < W:                               # W zero-pad by omission
                    wb[dh, jin * Cin:(jin + 1) * Cin, j * Cout:(j + 1) * Cout] = w[dh, dw]
    return wb


def _selection_matrices(B, H, W, C):
    Hp = H + 2
    Rfull = B * Hp - 2
    N = W * C
    lane_ch = np.arange(N) % C
    rmat = (lane_ch[:, None] == lane_ch[None, :]).astype(np.float32)

    orow = np.arange(B * (H // 2))
    bb, ii = orow // (H // 2), orow % (H // 2)
    src_e = bb * Hp + 2 * ii
    src_o = src_e + 1
    cols = np.arange(Rfull)
    pe = (src_e[:, None] == cols[None, :]).astype(np.float32)
    po = (src_o[:, None] == cols[None, :]).astype(np.float32)

    ocol = np.arange((W // 2) * C)
    kk, cc = ocol // C, ocol % C
    rows = np.arange(N)
    se = (rows[:, None] == (2 * kk * C + cc)[None, :]).astype(np.float32)
    so = (rows[:, None] == ((2 * kk + 1) * C + cc)[None, :]).astype(np.float32)
    return rmat, pe, po, se, so


def init_params(key, in_channels, features, dims, B, H0):
    keys = jax.random.split(key, len(features) + 1)
    levels = []
    cin, h = in_channels, H0
    for i, feat in enumerate(features):
        k = jax.random.split(keys[i], 6)
        w1 = 0.1 * jax.random.normal(k[0], (feat, cin, 3, 3), jnp.float32)
        g1 = 1.0 + 0.1 * jax.random.normal(k[1], (feat,), jnp.float32)
        bt1 = 0.05 * jax.random.normal(k[2], (feat,), jnp.float32)
        w2 = 0.1 * jax.random.normal(k[3], (feat, feat, 3, 3), jnp.float32)
        g2 = 1.0 + 0.1 * jax.random.normal(k[4], (feat,), jnp.float32)
        bt2 = 0.05 * jax.random.normal(k[5], (feat,), jnp.float32)

        W = h
        rmat, pe, po, se, so = _selection_matrices(B, h, W, feat)
        levels.append(dict(
            cout=feat,
            wb1=jnp.asarray(_band_weights(w1, W), jnp.bfloat16),
            wb2=jnp.asarray(_band_weights(w2, W), jnp.bfloat16),
            g1t=jnp.asarray(np.tile(np.asarray(g1), W)[None, :], jnp.float32),
            b1t=jnp.asarray(np.tile(np.asarray(bt1), W)[None, :], jnp.float32),
            g2t=jnp.asarray(np.tile(np.asarray(g2), W)[None, :], jnp.float32),
            b2t=jnp.asarray(np.tile(np.asarray(bt2), W)[None, :], jnp.float32),
            rmat=jnp.asarray(rmat), pe=jnp.asarray(pe), po=jnp.asarray(po),
            se=jnp.asarray(se), so=jnp.asarray(so),
        ))
        cin, h = feat, h // 2

    kl = jax.random.split(keys[-1], 4)
    wl1 = 0.1 * jax.random.normal(kl[0], (dims[1], dims[0]), jnp.float32)
    bl1 = 0.05 * jax.random.normal(kl[1], (dims[1],), jnp.float32)
    wl2 = 0.1 * jax.random.normal(kl[2], (dims[2], dims[1]), jnp.float32)
    bl2 = 0.05 * jax.random.normal(kl[3], (dims[2],), jnp.float32)
    return dict(
        levels=levels,
        mlp_w1=wl1.T.astype(jnp.bfloat16), mlp_b1=bl1[None, :],
        mlp_w2=wl2.T.astype(jnp.bfloat16), mlp_b2=bl2[None, :],
    )


# --------------------------------------------------------------------------
if __name__ == "__main__":
    B, Cin0, H0 = 2, 3, 16               # batch, cfg.input_channels, spatial
    features = [8, 16, 32]               # cfg.features
    hf = H0 // (2 ** len(features))      # spatial size of the embedding
    dims = [features[-1] * hf * hf, 128, 128]   # cfg.dims (dims[0] must match Flatten)
    assert dims[0] == features[-1] * hf * hf

    key = jax.random.PRNGKey(0)
    kp, kx = jax.random.split(key)
    params = init_params(kp, Cin0, features, dims, B, H0)
    x = jax.random.normal(kx, (B, Cin0, H0, H0), jnp.float32)

    fwd = jax.jit(functools.partial(encoder_projection_forward, params))
    embedding, projection, skips = fwd(x)
    jax.block_until_ready((embedding, projection, skips))

    assert embedding.shape == (B, features[-1], hf, hf), embedding.shape
    assert projection.shape == (B, dims[2]), projection.shape
    assert len(skips) == len(features)
    h = H0
    for f, s in zip(features, skips):
        assert s.shape == (B, f, h, h), (s.shape, (B, f, h, h))
        h //= 2
    assert bool(jnp.all(jnp.isfinite(embedding)))
    assert bool(jnp.all(jnp.isfinite(projection)))
    for s in skips:
        assert bool(jnp.all(jnp.isfinite(s)))
    print("KERNEL_OK")
</pallas_src>

<mosaic_0001>
module attributes {stable_mosaic.version = 11 : i64} {
  func.func @_double_conv_pool_kernel(%arg0: i32, %arg1: memref<32x48xf32, #tpu.memory_space<vmem>>, %arg2: memref<3x48x128xbf16, #tpu.memory_space<vmem>>, %arg3: memref<1x128xf32, #tpu.memory_space<vmem>>, %arg4: memref<1x128xf32, #tpu.memory_space<vmem>>, %arg5: memref<3x128x128xbf16, #tpu.memory_space<vmem>>, %arg6: memref<1x128xf32, #tpu.memory_space<vmem>>, %arg7: memref<1x128xf32, #tpu.memory_space<vmem>>, %arg8: memref<128x128xf32, #tpu.memory_space<vmem>>, %arg9: memref<16x34xf32, #tpu.memory_space<vmem>>, %arg10: memref<16x34xf32, #tpu.memory_space<vmem>>, %arg11: memref<128x64xf32, #tpu.memory_space<vmem>>, %arg12: memref<128x64xf32, #tpu.memory_space<vmem>>, %arg13: memref<32x128xf32, #tpu.memory_space<vmem>>, %arg14: memref<16x64xf32, #tpu.memory_space<vmem>>, %arg15: memref<36x48xbf16, #tpu.memory_space<vmem>>, %arg16: memref<36x128xbf16, #tpu.memory_space<vmem>>) attributes {dimension_semantics = [#tpu.dimension_semantics<arbitrary>], iteration_bounds = array<i64: 1>, scalar_prefetch = 0 : i64, scratch_operands = 2 : i64, tpu.core_type = #tpu.core_type<tc>, window_params = [{pipeline_mode = #tpu.pipeline_mode<synchronous>, transform_indices = @transform_0, window_bounds = array<i64: 32, 48>}, {pipeline_mode = #tpu.pipeline_mode<synchronous>, transform_indices = @transform_1, window_bounds = array<i64: 3, 48, 128>}, {pipeline_mode = #tpu.pipeline_mode<synchronous>, transform_indices = @transform_2, window_bounds = array<i64: 1, 128>}, {pipeline_mode = #tpu.pipeline_mode<synchronous>, transform_indices = @transform_3, window_bounds = array<i64: 1, 128>}, {pipeline_mode = #tpu.pipeline_mode<synchronous>, transform_indices = @transform_4, window_bounds = array<i64: 3, 128, 128>}, {pipeline_mode = #tpu.pipeline_mode<synchronous>, transform_indices = @transform_5, window_bounds = array<i64: 1, 128>}, {pipeline_mode = #tpu.pipeline_mode<synchronous>, transform_indices = @transform_6, window_bounds = array<i64: 1, 128>}, {pipeline_mode = #tpu.pipeline_mode<synchronous>, transform_indices = @transform_7, window_bounds = array<i64: 128, 128>}, {pipeline_mode = #tpu.pipeline_mode<synchronous>, transform_indices = @transform_8, window_bounds = array<i64: 16, 34>}, {pipeline_mode = #tpu.pipeline_mode<synchronous>, transform_indices = @transform_9, window_bounds = array<i64: 16, 34>}, {pipeline_mode = #tpu.pipeline_mode<synchronous>, transform_indices = @transform_10, window_bounds = array<i64: 128, 64>}, {pipeline_mode = #tpu.pipeline_mode<synchronous>, transform_indices = @transform_11, window_bounds = array<i64: 128, 64>}, {pipeline_mode = #tpu.pipeline_mode<synchronous>, transform_indices = @transform_12, window_bounds = array<i64: 32, 128>}, {pipeline_mode = #tpu.pipeline_mode<synchronous>, transform_indices = @transform_13, window_bounds = array<i64: 16, 64>}]} {
    %cst = arith.constant 0.000000e+00 : bf16
    %0 = vector.broadcast %cst : bf16 to vector<1x48xbf16>
    %c0 = arith.constant 0 : index
    %c0_0 = arith.constant 0 : index
    %1 = vector.load %arg15[%c0, %c0_0] : memref<36x48xbf16, #tpu.memory_space<vmem>>, vector<1x48xbf16>
    tpu.vector_store %arg15[%c0, %c0_0], %0 {strides = array<i32>} : memref<36x48xbf16, #tpu.memory_space<vmem>>, vector<1x48xbf16>,
    %c17 = arith.constant 17 : index
    %c0_1 = arith.constant 0 : index
    %2 = vector.load %arg15[%c17, %c0_1] : memref<36x48xbf16, #tpu.memory_space<vmem>>, vector<1x48xbf16>
    tpu.vector_store %arg15[%c17, %c0_1], %0 {strides = array<i32>} : memref<36x48xbf16, #tpu.memory_space<vmem>>, vector<1x48xbf16>,
    %c0_2 = arith.constant 0 : index
    %c0_3 = arith.constant 0 : index
    %3 = vector.load %arg1[%c0_2, %c0_3] : memref<32x48xf32, #tpu.memory_space<vmem>>, vector<16x48xf32>
    %4 = arith.truncf %3 : vector<16x48xf32> to vector<16x48xbf16>
    %c1 = arith.constant 1 : index
    %c0_4 = arith.constant 0 : index
    %5 = vector.load %arg15[%c1, %c0_4] : memref<36x48xbf16, #tpu.memory_space<vmem>>, vector<16x48xbf16>
    tpu.vector_store %arg15[%c1, %c0_4], %4 {strides = array<i32>} : memref<36x48xbf16, #tpu.memory_space<vmem>>, vector<16x48xbf16>,
    %c18 = arith.constant 18 : index
    %c0_5 = arith.constant 0 : index
    %6 = vector.load %arg15[%c18, %c0_5] : memref<36x48xbf16, #tpu.memory_space<vmem>>, vector<1x48xbf16>
    tpu.vector_store %arg15[%c18, %c0_5], %0 {strides = array<i32>} : memref<36x48xbf16, #tpu.memory_space<vmem>>, vector<1x48xbf16>,
    %c35 = arith.constant 35 : index
    %c0_6 = arith.constant 0 : index
    %7 = vector.load %arg15[%c35, %c0_6] : memref<36x48xbf16, #tpu.memory_space<vmem>>, vector<1x48xbf16>
    tpu.vector_store %arg15[%c35, %c0_6], %0 {strides = array<i32>} : memref<36x48xbf16, #tpu.memory_space<vmem>>, vector<1x48xbf16>,
    %c16 = arith.constant 16 : index
    %c0_7 = arith.constant 0 : index
    %8 = vector.load %arg1[%c16, %c0_7] : memref<32x48xf32, #tpu.memory_space<vmem>>, vector<16x48xf32>
    %9 = arith.truncf %8 : vector<16x48xf32> to vector<16x48xbf16>
    %c19 = arith.constant 19 : index
    %c0_8 = arith.constant 0 : index
    %10 = vector.load %arg15[%c19, %c0_8] : memref<36x48xbf16, #tpu.memory_space<vmem>>, vector<16x48xbf16>
    tpu.vector_store %arg15[%c19, %c0_8], %9 {strides = array<i32>} : memref<36x48xbf16, #tpu.memory_space<vmem>>, vector<16x48xbf16>,
    %c0_9 = arith.constant 0 : index
    %c0_10 = arith.constant 0 : index
    %11 = vector.load %arg15[%c0_9, %c0_10] : memref<36x48xbf16, #tpu.memory_space<vmem>>, vector<34x48xbf16>
    %c0_11 = arith.constant 0 : index
    %c0_12 = arith.constant 0 : index
    %c0_13 = arith.constant 0 : index
    %12 = vector.load %arg2[%c0_11, %c0_12, %c0_13] : memref<3x48x128xbf16, #tpu.memory_space<vmem>>, vector<1x48x128xbf16>
    %13 = vector.shape_cast %12 : vector<1x48x128xbf16> to vector<48x128xbf16>
    %cst_14 = arith.constant dense<0.000000e+00> : vector<34x128xf32>
    %14 = tpu.matmul %11, %13, %cst_14 {dimension_numbers = #tpu.dot_dimension_numbers<[1], [0], [0], [1], [0, 0, 1, 1], [], []>} : vector<34x48xbf16>, vector<48x128xbf16>, vector<34x128xf32> -> vector<34x128xf32>
    %c1_15 = arith.constant 1 : index
    %c0_16 = arith.constant 0 : index
    %15 = vector.load %arg15[%c1_15, %c0_16] : memref<36x48xbf16, #tpu.memory_space<vmem>>, vector<34x48xbf16>
    %c1_17 = arith.constant 1 : index
    %c0_18 = arith.constant 0 : index
    %c0_19 = arith.constant 0 : index
    %16 = vector.load %arg2[%c1_17, %c0_18, %c0_19] : memref<3x48x128xbf16, #tpu.memory_space<vmem>>, vector<1x48x128xbf16>
    %17 = vector.shape_cast %16 : vector<1x48x128xbf16> to vector<48x128xbf16>
    %cst_20 = arith.constant dense<0.000000e+00> : vector<34x128xf32>
    %18 = tpu.matmul %15, %17, %cst_20 {dimension_numbers = #tpu.dot_dimension_numbers<[1], [0], [0], [1], [0, 0, 1, 1], [], []>} : vector<34x48xbf16>, vector<48x128xbf16>, vector<34x128xf32> -> vector<34x128xf32>
    %19 = arith.addf %14, %18 : vector<34x128xf32>
    %c2 = arith.constant 2 : index
    %c0_21 = arith.constant 0 : index
    %20 = vector.load %arg15[%c2, %c0_21] : memref<36x48xbf16, #tpu.memory_space<vmem>>, vector<34x48xbf16>
    %c2_22 = arith.constant 2 : index
    %c0_23 = arith.constant 0 : index
    %c0_24 = arith.constant 0 : index
    %21 = vector.load %arg2[%c2_22, %c0_23, %c0_24] : memref<3x48x128xbf16, #tpu.memory_space<vmem>>, vector<1x48x128xbf16>
    %22 = vector.shape_cast %21 : vector<1x48x128xbf16> to vector<48x128xbf16>
    %cst_25 = arith.constant dense<0.000000e+00> : vector<34x128xf32>
    %23 = tpu.matmul %20, %22, %cst_25 {dimension_numbers = #tpu.dot_dimension_numbers<[1], [0], [0], [1], [0, 0, 1, 1], [], []>} : vector<34x48xbf16>, vector<48x128xbf16>, vector<34x128xf32> -> vector<34x128xf32>
    %24 = arith.addf %19, %23 : vector<34x128xf32>
    %c0_26 = arith.constant 0 : index
    %c0_27 = arith.constant 0 : index
    %25 = vector.load %arg3[%c0_26, %c0_27] : memref<1x128xf32, #tpu.memory_space<vmem>>, vector<1x128xf32>
    %c0_28 = arith.constant 0 : index
    %c0_29 = arith.constant 0 : index
    %26 = vector.load %arg4[%c0_28, %c0_29] : memref<1x128xf32, #tpu.memory_space<vmem>>, vector<1x128xf32>
    %cst_30 = arith.constant 0.000000e+00 : f32
    %27 = vector.broadcast %cst_30 : f32 to vector<1x128xf32>
    %cst_31 = arith.constant 0.000000e+00 : f32
    %28 = vector.broadcast %cst_31 : f32 to vector<1x128xf32>
    %29 = vector.extract_strided_slice %24 {offsets = [0, 0], sizes = [16, 128], strides = [1, 1]} : vector<34x128xf32> to vector<16x128xf32>
    %cst_32 = arith.constant dense<0.000000e+00> : vector<128xf32>
    %30 = vector.multi_reduction <add>, %29, %cst_32 [0] : vector<16x128xf32> to vector<128xf32>
    %31 = vector.shape_cast %30 : vector<128xf32> to vector<1x128xf32>
    %32 = arith.addf %27, %31 : vector<1x128xf32>
    %33 = arith.mulf %29, %29 : vector<16x128xf32>
    %cst_33 = arith.constant dense<0.000000e+00> : vector<128xf32>
    %34 = vector.multi_reduction <add>, %33, %cst_33 [0] : vector<16x128xf32> to vector<128xf32>
    %35 = vector.shape_cast %34 : vector<128xf32> to vector<1x128xf32>
    %36 = arith.addf %28, %35 : vector<1x128xf32>
    %37 = vector.extract_strided_slice %24 {offsets = [18, 0], sizes = [16, 128], strides = [1, 1]} : vector<34x128xf32> to vector<16x128xf32>
    %cst_34 = arith.constant dense<0.000000e+00> : vector<128xf32>
    %38 = vector.multi_reduction <add>, %37, %cst_34 [0] : vector<16x128xf32> to vector<128xf32>
    %39 = vector.shape_cast %38 : vector<128xf32> to vector<1x128xf32>
    %40 = arith.addf %32, %39 : vector<1x128xf32>
    %41 = arith.mulf %37, %37 : vector<16x128xf32>
    %cst_35 = arith.constant dense<0.000000e+00> : vector<128xf32>
    %42 = vector.multi_reduction <add>, %41, %cst_35 [0] : vector<16x128xf32> to vector<128xf32>
    %43 = vector.shape_cast %42 : vector<128xf32> to vector<1x128xf32>
    %44 = arith.addf %36, %43 : vector<1x128xf32>
    %c0_36 = arith.constant 0 : index
    %c0_37 = arith.constant 0 : index
    %45 = vector.load %arg8[%c0_36, %c0_37] : memref<128x128xf32, #tpu.memory_space<vmem>>, vector<128x128xf32>
    %cst_38 = arith.constant dense<0.000000e+00> : vector<1x128xf32>
    %46 = tpu.matmul %40, %45, %cst_38 {dimension_numbers = #tpu.dot_dimension_numbers<[1], [0], [0], [1], [0, 0, 1, 1], [], []>} : vector<1x128xf32>, vector<128x128xf32>, vector<1x128xf32> -> vector<1x128xf32>
    %c0_39 = arith.constant 0 : index
    %c0_40 = arith.constant 0 : index
    %47 = vector.load %arg8[%c0_39, %c0_40] : memref<128x128xf32, #tpu.memory_space<vmem>>, vector<128x128xf32>
    %cst_41 = arith.constant dense<0.000000e+00> : vector<1x128xf32>
    %48 = tpu.matmul %44, %47, %cst_41 {dimension_numbers = #tpu.dot_dimension_numbers<[1], [0], [0], [1], [0, 0, 1, 1], [], []>} : vector<1x128xf32>, vector<128x128xf32>, vector<1x128xf32> -> vector<1x128xf32>
    %cst_42 = arith.constant 0.001953125 : f32
    %49 = vector.broadcast %cst_42 : f32 to vector<1x128xf32>
    %50 = arith.mulf %46, %49 : vector<1x128xf32>
    %cst_43 = arith.constant 0.001953125 : f32
    %51 = vector.broadcast %cst_43 : f32 to vector<1x128xf32>
    %52 = arith.mulf %48, %51 : vector<1x128xf32>
    %53 = arith.mulf %50, %50 : vector<1x128xf32>
    %54 = arith.subf %52, %53 : vector<1x128xf32>
    %cst_44 = arith.constant 9.99999974E-6 : f32
    %55 = vector.broadcast %cst_44 : f32 to vector<1x128xf32>
    %56 = arith.addf %54, %55 : vector<1x128xf32>
    %57 = math.rsqrt %56 : vector<1x128xf32>
    %58 = vector.broadcast %50 : vector<1x128xf32> to vector<34x128xf32>
    %59 = arith.subf %24, %58 : vector<34x128xf32>
    %60 = vector.broadcast %57 : vector<1x128xf32> to vector<34x128xf32>
    %61 = arith.mulf %59, %60 : vector<34x128xf32>
    %62 = vector.broadcast %25 : vector<1x128xf32> to vector<34x128xf32>
    %63 = arith.mulf %61, %62 : vector<34x128xf32>
    %64 = vector.broadcast %26 : vector<1x128xf32> to vector<34x128xf32>
    %65 = arith.addf %63, %64 : vector<34x128xf32>
    %cst_45 = arith.constant 0.000000e+00 : f32
    %66 = vector.broadcast %cst_45 : f32 to vector<34x128xf32>
    %67 = arith.maximumf %65, %66 : vector<34x128xf32>
    %68 = arith.truncf %67 : vector<34x128xf32> to vector<34x128xbf16>
    %cst_46 = arith.constant 0.000000e+00 : bf16
    %69 = vector.broadcast %cst_46 : bf16 to vector<1x128xbf16>
    %c0_47 = arith.constant 0 : index
    %c0_48 = arith.constant 0 : index
    %70 = vector.load %arg16[%c0_47, %c0_48] : memref<36x128xbf16, #tpu.memory_space<vmem>>, vector<1x128xbf16>
    tpu.vector_store %arg16[%c0_47, %c0_48], %69 {strides = array<i32>} : memref<36x128xbf16, #tpu.memory_space<vmem>>, vector<1x128xbf16>,
    %c17_49 = arith.constant 17 : index
    %c0_50 = arith.constant 0 : index
    %71 = vector.load %arg16[%c17_49, %c0_50] : memref<36x128xbf16, #tpu.memory_space<vmem>>, vector<1x128xbf16>
    tpu.vector_store %arg16[%c17_49, %c0_50], %69 {strides = array<i32>} : memref<36x128xbf16, #tpu.memory_space<vmem>>, vector<1x128xbf16>,
    %72 = vector.extract_strided_slice %68 {offsets = [0, 0], sizes = [16, 128], strides = [1, 1]} : vector<34x128xbf16> to vector<16x128xbf16>
    %c1_51 = arith.constant 1 : index
    %c0_52 = arith.constant 0 : index
    %73 = vector.load %arg16[%c1_51, %c0_52] : memref<36x128xbf16, #tpu.memory_space<vmem>>, vector<16x128xbf16>
    tpu.vector_store %arg16[%c1_51, %c0_52], %72 {strides = array<i32>} : memref<36x128xbf16, #tpu.memory_space<vmem>>, vector<16x128xbf16>,
    %c18_53 = arith.constant 18 : index
    %c0_54 = arith.constant 0 : index
    %74 = vector.load %arg16[%c18_53, %c0_54] : memref<36x128xbf16, #tpu.memory_space<vmem>>, vector<1x128xbf16>
    tpu.vector_store %arg16[%c18_53, %c0_54], %69 {strides = array<i32>} : memref<36x128xbf16, #tpu.memory_space<vmem>>, vector<1x128xbf16>,
    %c35_55 = arith.constant 35 : index
    %c0_56 = arith.constant 0 : index
    %75 = vector.load %arg16[%c35_55, %c0_56] : memref<36x128xbf16, #tpu.memory_space<vmem>>, vector<1x128xbf16>
    tpu.vector_store %arg16[%c35_55, %c0_56], %69 {strides = array<i32>} : memref<36x128xbf16, #tpu.memory_space<vmem>>, vector<1x128xbf16>,
    %76 = vector.extract_strided_slice %68 {offsets = [18, 0], sizes = [16, 128], strides = [1, 1]} : vector<34x128xbf16> to vector<16x128xbf16>
    %c19_57 = arith.constant 19 : index
    %c0_58 = arith.constant 0 : index
    %77 = vector.load %arg16[%c19_57, %c0_58] : memref<36x128xbf16, #tpu.memory_space<vmem>>, vector<16x128xbf16>
    tpu.vector_store %arg16[%c19_57, %c0_58], %76 {strides = array<i32>} : memref<36x128xbf16, #tpu.memory_space<vmem>>, vector<16x128xbf16>,
    %c0_59 = arith.constant 0 : index
    %c0_60 = arith.constant 0 : index
    %78 = vector.load %arg16[%c0_59, %c0_60] : memref<36x128xbf16, #tpu.memory_space<vmem>>, vector<34x128xbf16>
    %c0_61 = arith.constant 0 : index
    %c0_62 = arith.constant 0 : index
    %c0_63 = arith.constant 0 : index
    %79 = vector.load %arg5[%c0_61, %c0_62, %c0_63] : memref<3x128x128xbf16, #tpu.memory_space<vmem>>, vector<1x128x128xbf16>
    %80 = vector.shape_cast %79 : vector<1x128x128xbf16> to vector<128x128xbf16>
    %cst_64 = arith.constant dense<0.000000e+00> : vector<34x128xf32>
    %81 = tpu.matmul %78, %80, %cst_64 {dimension_numbers = #tpu.dot_dimension_numbers<[1], [0], [0], [1], [0, 0, 1, 1], [], []>} : vector<34x128xbf16>, vector<128x128xbf16>, vector<34x128xf32> -> vector<34x128xf32>
    %c1_65 = arith.constant 1 : index
    %c0_66 = arith.constant 0 : index
    %82 = vector.load %arg16[%c1_65, %c0_66] : memref<36x128xbf16, #tpu.memory_space<vmem>>, vector<34x128xbf16>
    %c1_67 = arith.constant 1 : index
    %c0_68 = arith.constant 0 : index
    %c0_69 = arith.constant 0 : index
    %83 = vector.load %arg5[%c1_67, %c0_68, %c0_69] : memref<3x128x128xbf16, #tpu.memory_space<vmem>>, vector<1x128x128xbf16>
    %84 = vector.shape_cast %83 : vector<1x128x128xbf16> to vector<128x128xbf16>
    %cst_70 = arith.constant dense<0.000000e+00> : vector<34x128xf32>
    %85 = tpu.matmul %82, %84, %cst_70 {dimension_numbers = #tpu.dot_dimension_numbers<[1], [0], [0], [1], [0, 0, 1, 1], [], []>} : vector<34x128xbf16>, vector<128x128xbf16>, vector<34x128xf32> -> vector<34x128xf32>
    %86 = arith.addf %81, %85 : vector<34x128xf32>
    %c2_71 = arith.constant 2 : index
    %c0_72 = arith.constant 0 : index
    %87 = vector.load %arg16[%c2_71, %c0_72] : memref<36x128xbf16, #tpu.memory_space<vmem>>, vector<34x128xbf16>
    %c2_73 = arith.constant 2 : index
    %c0_74 = arith.constant 0 : index
    %c0_75 = arith.constant 0 : index
    %88 = vector.load %arg5[%c2_73, %c0_74, %c0_75] : memref<3x128x128xbf16, #tpu.memory_space<vmem>>, vector<1x128x128xbf16>
    %89 = vector.shape_cast %88 : vector<1x128x128xbf16> to vector<128x128xbf16>
    %cst_76 = arith.constant dense<0.000000e+00> : vector<34x128xf32>
    %90 = tpu.matmul %87, %89, %cst_76 {dimension_numbers = #tpu.dot_dimension_numbers<[1], [0], [0], [1], [0, 0, 1, 1], [], []>} : vector<34x128xbf16>, vector<128x128xbf16>, vector<34x128xf32> -> vector<34x128xf32>
    %91 = arith.addf %86, %90 : vector<34x128xf32>
    %c0_77 = arith.constant 0 : index
    %c0_78 = arith.constant 0 : index
    %92 = vector.load %arg6[%c0_77, %c0_78] : memref<1x128xf32, #tpu.memory_space<vmem>>, vector<1x128xf32>
    %c0_79 = arith.constant 0 : index
    %c0_80 = arith.constant 0 : index
    %93 = vector.load %arg7[%c0_79, %c0_80] : memref<1x128xf32, #tpu.memory_space<vmem>>, vector<1x128xf32>
    %cst_81 = arith.constant 0.000000e+00 : f32
    %94 = vector.broadcast %cst_81 : f32 to vector<1x128xf32>
    %cst_82 = arith.constant 0.000000e+00 : f32
    %95 = vector.broadcast %cst_82 : f32 to vector<1x128xf32>
    %96 = vector.extract_strided_slice %91 {offsets = [0, 0], sizes = [16, 128], strides = [1, 1]} : vector<34x128xf32> to vector<16x128xf32>
    %cst_83 = arith.constant dense<0.000000e+00> : vector<128xf32>
    %97 = vector.multi_reduction <add>, %96, %cst_83 [0] : vector<16x128xf32> to vector<128xf32>
    %98 = vector.shape_cast %97 : vector<128xf32> to vector<1x128xf32>
    %99 = arith.addf %94, %98 : vector<1x128xf32>
    %100 = arith.mulf %96, %96 : vector<16x128xf32>
    %cst_84 = arith.constant dense<0.000000e+00> : vector<128xf32>
    %101 = vector.multi_reduction <add>, %100, %cst_84 [0] : vector<16x128xf32> to vector<128xf32>
    %102 = vector.shape_cast %101 : vector<128xf32> to vector<1x128xf32>
    %103 = arith.addf %95, %102 : vector<1x128xf32>
    %104 = vector.extract_strided_slice %91 {offsets = [18, 0], sizes = [16, 128], strides = [1, 1]} : vector<34x128xf32> to vector<16x128xf32>
    %cst_85 = arith.constant dense<0.000000e+00> : vector<128xf32>
    %105 = vector.multi_reduction <add>, %104, %cst_85 [0] : vector<16x128xf32> to vector<128xf32>
    %106 = vector.shape_cast %105 : vector<128xf32> to vector<1x128xf32>
    %107 = arith.addf %99, %106 : vector<1x128xf32>
    %108 = arith.mulf %104, %104 : vector<16x128xf32>
    %cst_86 = arith.constant dense<0.000000e+00> : vector<128xf32>
    %109 = vector.multi_reduction <add>, %108, %cst_86 [0] : vector<16x128xf32> to vector<128xf32>
    %110 = vector.shape_cast %109 : vector<128xf32> to vector<1x128xf32>
    %111 = arith.addf %103, %110 : vector<1x128xf32>
    %c0_87 = arith.constant 0 : index
    %c0_88 = arith.constant 0 : index
    %112 = vector.load %arg8[%c0_87, %c0_88] : memref<128x128xf32, #tpu.memory_space<vmem>>, vector<128x128xf32>
    %cst_89 = arith.constant dense<0.000000e+00> : vector<1x128xf32>
    %113 = tpu.matmul %107, %112, %cst_89 {dimension_numbers = #tpu.dot_dimension_numbers<[1], [0], [0], [1], [0, 0, 1, 1], [], []>} : vector<1x128xf32>, vector<128x128xf32>, vector<1x128xf32> -> vector<1x128xf32>
    %c0_90 = arith.constant 0 : index
    %c0_91 = arith.constant 0 : index
    %114 = vector.load %arg8[%c0_90, %c0_91] : memref<128x128xf32, #tpu.memory_space<vmem>>, vector<128x128xf32>
    %cst_92 = arith.constant dense<0.000000e+00> : vector<1x128xf32>
    %115 = tpu.matmul %111, %114, %cst_92 {dimension_numbers = #tpu.dot_dimension_numbers<[1], [0], [0], [1], [0, 0, 1, 1], [], []>} : vector<1x128xf32>, vector<128x128xf32>, vector<1x128xf32> -> vector<1x128xf32>
    %cst_93 = arith.constant 0.001953125 : f32
    %116 = vector.broadcast %cst_93 : f32 to vector<1x128xf32>
    %117 = arith.mulf %113, %116 : vector<1x128xf32>
    %cst_94 = arith.constant 0.001953125 : f32
    %118 = vector.broadcast %cst_94 : f32 to vector<1x128xf32>
    %119 = arith.mulf %115, %118 : vector<1x128xf32>
    %120 = arith.mulf %117, %117 : vector<1x128xf32>
    %121 = arith.subf %119, %120 : vector<1x128xf32>
    %cst_95 = arith.constant 9.99999974E-6 : f32
    %122 = vector.broadcast %cst_95 : f32 to vector<1x128xf32>
    %123 = arith.addf %121, %122 : vector<1x128xf32>
    %124 = math.rsqrt %123 : vector<1x128xf32>
    %125 = vector.broadcast %117 : vector<1x128xf32> to vector<34x128xf32>
    %126 = arith.subf %91, %125 : vector<34x128xf32>
    %127 = vector.broadcast %124 : vector<1x128xf32> to vector<34x128xf32>
    %128 = arith.mulf %126, %127 : vector<34x128xf32>
    %129 = vector.broadcast %92 : vector<1x128xf32> to vector<34x128xf32>
    %130 = arith.mulf %128, %129 : vector<34x128xf32>
    %131 = vector.broadcast %93 : vector<1x128xf32> to vector<34x128xf32>
    %132 = arith.addf %130, %131 : vector<34x128xf32>
    %cst_96 = arith.constant 0.000000e+00 : f32
    %133 = vector.broadcast %cst_96 : f32 to vector<34x128xf32>
    %134 = arith.maximumf %132, %133 : vector<34x128xf32>
    %135 = vector.extract_strided_slice %134 {offsets = [0, 0], sizes = [16, 128], strides = [1, 1]} : vector<34x128xf32> to vector<16x128xf32>
    %c0_97 = arith.constant 0 : index
    %c0_98 = arith.constant 0 : index
    %136 = vector.load %arg13[%c0_97, %c0_98] : memref<32x128xf32, #tpu.memory_space<vmem>>, vector<16x128xf32>
    tpu.vector_store %arg13[%c0_97, %c0_98], %135 {strides = array<i32>} : memref<32x128xf32, #tpu.memory_space<vmem>>, vector<16x128xf32>,
    %137 = vector.extract_strided_slice %134 {offsets = [18, 0], sizes = [16, 128], strides = [1, 1]} : vector<34x128xf32> to vector<16x128xf32>
    %c16_99 = arith.constant 16 : index
    %c0_100 = arith.constant 0 : index
    %138 = vector.load %arg13[%c16_99, %c0_100] : memref<32x128xf32, #tpu.memory_space<vmem>>, vector<16x128xf32>
    tpu.vector_store %arg13[%c16_99, %c0_100], %137 {strides = array<i32>} : memref<32x128xf32, #tpu.memory_space<vmem>>, vector<16x128xf32>,
    %c0_101 = arith.constant 0 : index
    %c0_102 = arith.constant 0 : index
    %139 = vector.load %arg9[%c0_101, %c0_102] : memref<16x34xf32, #tpu.memory_space<vmem>>, vector<16x34xf32>
    %cst_103 = arith.constant dense<0.000000e+00> : vector<16x128xf32>
    %140 = tpu.matmul %139, %134, %cst_103 {dimension_numbers = #tpu.dot_dimension_numbers<[1], [0], [0], [1], [0, 0, 1, 1], [], []>} : vector<16x34xf32>, vector<34x128xf32>, vector<16x128xf32> -> vector<16x128xf32>
    %c0_104 = arith.constant 0 : index
    %c0_105 = arith.constant 0 : index
    %141 = vector.load %arg10[%c0_104, %c0_105] : memref<16x34xf32, #tpu.memory_space<vmem>>, vector<16x34xf32>
    %cst_106 = arith.constant dense<0.000000e+00> : vector<16x128xf32>
    %142 = tpu.matmul %141, %134, %cst_106 {dimension_numbers = #tpu.dot_dimension_numbers<[1], [0], [0], [1], [0, 0, 1, 1], [], []>} : vector<16x34xf32>, vector<34x128xf32>, vector<16x128xf32> -> vector<16x128xf32>
    %143 = arith.maximumf %140, %142 : vector<16x128xf32>
    %c0_107 = arith.constant 0 : index
    %c0_108 = arith.constant 0 : index
    %144 = vector.load %arg11[%c0_107, %c0_108] : memref<128x64xf32, #tpu.memory_space<vmem>>, vector<128x64xf32>
    %cst_109 = arith.constant dense<0.000000e+00> : vector<16x64xf32>
    %145 = tpu.matmul %143, %144, %cst_109 {dimension_numbers = #tpu.dot_dimension_numbers<[1], [0], [0], [1], [0, 0, 1, 1], [], []>} : vector<16x128xf32>, vector<128x64xf32>, vector<16x64xf32> -> vector<16x64xf32>
    %c0_110 = arith.constant 0 : index
    %c0_111 = arith.constant 0 : index
    %146 = vector.load %arg12[%c0_110, %c0_111] : memref<128x64xf32, #tpu.memory_space<vmem>>, vector<128x64xf32>
    %cst_112 = arith.constant dense<0.000000e+00> : vector<16x64xf32>
    %147 = tpu.matmul %143, %146, %cst_112 {dimension_numbers = #tpu.dot_dimension_numbers<[1], [0], [0], [1], [0, 0, 1, 1], [], []>} : vector<16x128xf32>, vector<128x64xf32>, vector<16x64xf32> -> vector<16x64xf32>
    %148 = arith.maximumf %145, %147 : vector<16x64xf32>
    %c0_113 = arith.constant 0 : index
    %c0_114 = arith.constant 0 : index
    %149 = vector.load %arg14[%c0_113, %c0_114] : memref<16x64xf32, #tpu.memory_space<vmem>>, vector<16x64xf32>
    tpu.vector_store %arg14[%c0_113, %c0_114], %148 {strides = array<i32>} : memref<16x64xf32, #tpu.memory_space<vmem>>, vector<16x64xf32>,
    return
  }
  func.func @transform_0(%arg0: i32) -> (i32, i32) {
    %c0_i32 = arith.constant 0 : i32
    %c0_i32_0 = arith.constant 0 : i32
    %c0_i32_1 = arith.constant 0 : i32
    return %c0_i32, %c0_i32_0 : i32, i32
  }
  func.func @transform_1(%arg0: i32) -> (i32, i32, i32) {
    %c0_i32 = arith.constant 0 : i32
    %c0_i32_0 = arith.constant 0 : i32
    %c0_i32_1 = arith.constant 0 : i32
    %c0_i32_2 = arith.constant 0 : i32
    return %c0_i32, %c0_i32_0, %c0_i32_1 : i32, i32, i32
  }
  func.func @transform_2(%arg0: i32) -> (i32, i32) {
    %c0_i32 = arith.constant 0 : i32
    %c0_i32_0 = arith.constant 0 : i32
    %c0_i32_1 = arith.constant 0 : i32
    return %c0_i32, %c0_i32_0 : i32, i32
  }
  func.func @transform_3(%arg0: i32) -> (i32, i32) {
    %c0_i32 = arith.constant 0 : i32
    %c0_i32_0 = arith.constant 0 : i32
    %c0_i32_1 = arith.constant 0 : i32
    return %c0_i32, %c0_i32_0 : i32, i32
  }
  func.func @transform_4(%arg0: i32) -> (i32, i32, i32) {
    %c0_i32 = arith.constant 0 : i32
    %c0_i32_0 = arith.constant 0 : i32
    %c0_i32_1 = arith.constant 0 : i32
    %c0_i32_2 = arith.constant 0 : i32
    return %c0_i32, %c0_i32_0, %c0_i32_1 : i32, i32, i32
  }
  func.func @transform_5(%arg0: i32) -> (i32, i32) {
    %c0_i32 = arith.constant 0 : i32
    %c0_i32_0 = arith.constant 0 : i32
    %c0_i32_1 = arith.constant 0 : i32
    return %c0_i32, %c0_i32_0 : i32, i32
  }
  func.func @transform_6(%arg0: i32) -> (i32, i32) {
    %c0_i32 = arith.constant 0 : i32
    %c0_i32_0 = arith.constant 0 : i32
    %c0_i32_1 = arith.constant 0 : i32
    return %c0_i32, %c0_i32_0 : i32, i32
  }
  func.func @transform_7(%arg0: i32) -> (i32, i32) {
    %c0_i32 = arith.constant 0 : i32
    %c0_i32_0 = arith.constant 0 : i32
    %c0_i32_1 = arith.constant 0 : i32
    return %c0_i32, %c0_i32_0 : i32, i32
  }
  func.func @transform_8(%arg0: i32) -> (i32, i32) {
    %c0_i32 = arith.constant 0 : i32
    %c0_i32_0 = arith.constant 0 : i32
    %c0_i32_1 = arith.constant 0 : i32
    return %c0_i32, %c0_i32_0 : i32, i32
  }
  func.func @transform_9(%arg0: i32) -> (i32, i32) {
    %c0_i32 = arith.constant 0 : i32
    %c0_i32_0 = arith.constant 0 : i32
    %c0_i32_1 = arith.constant 0 : i32
    return %c0_i32, %c0_i32_0 : i32, i32
  }
  func.func @transform_10(%arg0: i32) -> (i32, i32) {
    %c0_i32 = arith.constant 0 : i32
    %c0_i32_0 = arith.constant 0 : i32
    %c0_i32_1 = arith.constant 0 : i32
    return %c0_i32, %c0_i32_0 : i32, i32
  }
  func.func @transform_11(%arg0: i32) -> (i32, i32) {
    %c0_i32 = arith.constant 0 : i32
    %c0_i32_0 = arith.constant 0 : i32
    %c0_i32_1 = arith.constant 0 : i32
    return %c0_i32, %c0_i32_0 : i32, i32
  }
  func.func @transform_12(%arg0: i32) -> (i32, i32) {
    %c0_i32 = arith.constant 0 : i32
    %c0_i32_0 = arith.constant 0 : i32
    %c0_i32_1 = arith.constant 0 : i32
    return %c0_i32, %c0_i32_0 : i32, i32
  }
  func.func @transform_13(%arg0: i32) -> (i32, i32) {
    %c0_i32 = arith.constant 0 : i32
    %c0_i32_0 = arith.constant 0 : i32
    %c0_i32_1 = arith.constant 0 : i32
    return %c0_i32, %c0_i32_0 : i32, i32
  }
}

module attributes {stable_mosaic.version = 11 : i64} {
  func.func @_double_conv_pool_kernel(%arg0: i32, %arg1: memref<8x64xf32, #tpu.memory_space<vmem>>, %arg2: memref<3x64x128xbf16, #tpu.memory_space<vmem>>, %arg3: memref<1x128xf32, #tpu.memory_space<vmem>>, %arg4: memref<1x128xf32, #tpu.memory_space<vmem>>, %arg5: memref<3x128x128xbf16, #tpu.memory_space<vmem>>, %arg6: memref<1x128xf32, #tpu.memory_space<vmem>>, %arg7: memref<1x128xf32, #tpu.memory_space<vmem>>, %arg8: memref<128x128xf32, #tpu.memory_space<vmem>>, %arg9: memref<4x10xf32, #tpu.memory_space<vmem>>, %arg10: memref<4x10xf32, #tpu.memory_space<vmem>>, %arg11: memref<128x64xf32, #tpu.memory_space<vmem>>, %arg12: memref<128x64xf32, #tpu.memory_space<vmem>>, %arg13: memref<8x128xf32, #tpu.memory_space<vmem>>, %arg14: memref<4x64xf32, #tpu.memory_space<vmem>>, %arg15: memref<12x64xbf16, #tpu.memory_space<vmem>>, %arg16: memref<12x128xbf16, #tpu.memory_space<vmem>>) attributes {dimension_semantics = [#tpu.dimension_semantics<arbitrary>], iteration_bounds = array<i64: 1>, scalar_prefetch = 0 : i64, scratch_operands = 2 : i64, tpu.core_type = #tpu.core_type<tc>, window_params = [{pipeline_mode = #tpu.pipeline_mode<synchronous>, transform_indices = @transform_0, window_bounds = array<i64: 8, 64>}, {pipeline_mode = #tpu.pipeline_mode<synchronous>, transform_indices = @transform_1, window_bounds = array<i64: 3, 64, 128>}, {pipeline_mode = #tpu.pipeline_mode<synchronous>, transform_indices = @transform_2, window_bounds = array<i64: 1, 128>}, {pipeline_mode = #tpu.pipeline_mode<synchronous>, transform_indices = @transform_3, window_bounds = array<i64: 1, 128>}, {pipeline_mode = #tpu.pipeline_mode<synchronous>, transform_indices = @transform_4, window_bounds = array<i64: 3, 128, 128>}, {pipeline_mode = #tpu.pipeline_mode<synchronous>, transform_indices = @transform_5, window_bounds = array<i64: 1, 128>}, {pipeline_mode = #tpu.pipeline_mode<synchronous>, transform_indices = @transform_6, window_bounds = array<i64: 1, 128>}, {pipeline_mode = #tpu.pipeline_mode<synchronous>, transform_indices = @transform_7, window_bounds = array<i64: 128, 128>}, {pipeline_mode = #tpu.pipeline_mode<synchronous>, transform_indices = @transform_8, window_bounds = array<i64: 4, 10>}, {pipeline_mode = #tpu.pipeline_mode<synchronous>, transform_indices = @transform_9, window_bounds = array<i64: 4, 10>}, {pipeline_mode = #tpu.pipeline_mode<synchronous>, transform_indices = @transform_10, window_bounds = array<i64: 128, 64>}, {pipeline_mode = #tpu.pipeline_mode<synchronous>, transform_indices = @transform_11, window_bounds = array<i64: 128, 64>}, {pipeline_mode = #tpu.pipeline_mode<synchronous>, transform_indices = @transform_12, window_bounds = array<i64: 8, 128>}, {pipeline_mode = #tpu.pipeline_mode<synchronous>, transform_indices = @transform_13, window_bounds = array<i64: 4, 64>}]} {
    %cst = arith.constant 0.000000e+00 : bf16
    %0 = vector.broadcast %cst : bf16 to vector<1x64xbf16>
    %c0 = arith.constant 0 : index
    %c0_0 = arith.constant 0 : index
    %1 = vector.load %arg15[%c0, %c0_0] : memref<12x64xbf16, #tpu.memory_space<vmem>>, vector<1x64xbf16>
    tpu.vector_store %arg15[%c0, %c0_0], %0 {strides = array<i32>} : memref<12x64xbf16, #tpu.memory_space<vmem>>, vector<1x64xbf16>,
    %c5 = arith.constant 5 : index
    %c0_1 = arith.constant 0 : index
    %2 = vector.load %arg15[%c5, %c0_1] : memref<12x64xbf16, #tpu.memory_space<vmem>>, vector<1x64xbf16>
    tpu.vector_store %arg15[%c5, %c0_1], %0 {strides = array<i32>} : memref<12x64xbf16, #tpu.memory_space<vmem>>, vector<1x64xbf16>,
    %c0_2 = arith.constant 0 : index
    %c0_3 = arith.constant 0 : index
    %3 = vector.load %arg1[%c0_2, %c0_3] : memref<8x64xf32, #tpu.memory_space<vmem>>, vector<4x64xf32>
    %4 = arith.truncf %3 : vector<4x64xf32> to vector<4x64xbf16>
    %c1 = arith.constant 1 : index
    %c0_4 = arith.constant 0 : index
    %5 = vector.load %arg15[%c1, %c0_4] : memref<12x64xbf16, #tpu.memory_space<vmem>>, vector<4x64xbf16>
    tpu.vector_store %arg15[%c1, %c0_4], %4 {strides = array<i32>} : memref<12x64xbf16, #tpu.memory_space<vmem>>, vector<4x64xbf16>,
    %c6 = arith.constant 6 : index
    %c0_5 = arith.constant 0 : index
    %6 = vector.load %arg15[%c6, %c0_5] : memref<12x64xbf16, #tpu.memory_space<vmem>>, vector<1x64xbf16>
    tpu.vector_store %arg15[%c6, %c0_5], %0 {strides = array<i32>} : memref<12x64xbf16, #tpu.memory_space<vmem>>, vector<1x64xbf16>,
    %c11 = arith.constant 11 : index
    %c0_6 = arith.constant 0 : index
    %7 = vector.load %arg15[%c11, %c0_6] : memref<12x64xbf16, #tpu.memory_space<vmem>>, vector<1x64xbf16>
    tpu.vector_store %arg15[%c11, %c0_6], %0 {strides = array<i32>} : memref<12x64xbf16, #tpu.memory_space<vmem>>, vector<1x64xbf16>,
    %c4 = arith.constant 4 : index
    %c0_7 = arith.constant 0 : index
    %8 = vector.load %arg1[%c4, %c0_7] : memref<8x64xf32, #tpu.memory_space<vmem>>, vector<4x64xf32>
    %9 = arith.truncf %8 : vector<4x64xf32> to vector<4x64xbf16>
    %c7 = arith.constant 7 : index
    %c0_8 = arith.constant 0 : index
    %10 = vector.load %arg15[%c7, %c0_8] : memref<12x64xbf16, #tpu.memory_space<vmem>>, vector<4x64xbf16>
    tpu.vector_store %arg15[%c7, %c0_8], %9 {strides = array<i32>} : memref<12x64xbf16, #tpu.memory_space<vmem>>, vector<4x64xbf16>,
    %c0_9 = arith.constant 0 : index
    %c0_10 = arith.constant 0 : index
    %11 = vector.load %arg15[%c0_9, %c0_10] : memref<12x64xbf16, #tpu.memory_space<vmem>>, vector<10x64xbf16>
    %c0_11 = arith.constant 0 : index
    %c0_12 = arith.constant 0 : index
    %c0_13 = arith.constant 0 : index
    %12 = vector.load %arg2[%c0_11, %c0_12, %c0_13] : memref<3x64x128xbf16, #tpu.memory_space<vmem>>, vector<1x64x128xbf16>
    %13 = vector.shape_cast %12 : vector<1x64x128xbf16> to vector<64x128xbf16>
    %cst_14 = arith.constant dense<0.000000e+00> : vector<10x128xf32>
    %14 = tpu.matmul %11, %13, %cst_14 {dimension_numbers = #tpu.dot_dimension_numbers<[1], [0], [0], [1], [0, 0, 1, 1], [], []>} : vector<10x64xbf16>, vector<64x128xbf16>, vector<10x128xf32> -> vector<10x128xf32>
    %c1_15 = arith.constant 1 : index
    %c0_16 = arith.constant 0 : index
    %15 = vector.load %arg15[%c1_15, %c0_16] : memref<12x64xbf16, #tpu.memory_space<vmem>>, vector<10x64xbf16>
    %c1_17 = arith.constant 1 : index
    %c0_18 = arith.constant 0 : index
    %c0_19 = arith.constant 0 : index
    %16 = vector.load %arg2[%c1_17, %c0_18, %c0_19] : memref<3x64x128xbf16, #tpu.memory_space<vmem>>, vector<1x64x128xbf16>
    %17 = vector.shape_cast %16 : vector<1x64x128xbf16> to vector<64x128xbf16>
    %cst_20 = arith.constant dense<0.000000e+00> : vector<10x128xf32>
    %18 = tpu.matmul %15, %17, %cst_20 {dimension_numbers = #tpu.dot_dimension_numbers<[1], [0], [0], [1], [0, 0, 1, 1], [], []>} : vector<10x64xbf16>, vector<64x128xbf16>, vector<10x128xf32> -> vector<10x128xf32>
    %19 = arith.addf %14, %18 : vector<10x128xf32>
    %c2 = arith.constant 2 : index
    %c0_21 = arith.constant 0 : index
    %20 = vector.load %arg15[%c2, %c0_21] : memref<12x64xbf16, #tpu.memory_space<vmem>>, vector<10x64xbf16>
    %c2_22 = arith.constant 2 : index
    %c0_23 = arith.constant 0 : index
    %c0_24 = arith.constant 0 : index
    %21 = vector.load %arg2[%c2_22, %c0_23, %c0_24] : memref<3x64x128xbf16, #tpu.memory_space<vmem>>, vector<1x64x128xbf16>
    %22 = vector.shape_cast %21 : vector<1x64x128xbf16> to vector<64x128xbf16>
    %cst_25 = arith.constant dense<0.000000e+00> : vector<10x128xf32>
    %23 = tpu.matmul %20, %22, %cst_25 {dimension_numbers = #tpu.dot_dimension_numbers<[1], [0], [0], [1], [0, 0, 1, 1], [], []>} : vector<10x64xbf16>, vector<64x128xbf16>, vector<10x128xf32> -> vector<10x128xf32>
    %24 = arith.addf %19, %23 : vector<10x128xf32>
    %c0_26 = arith.constant 0 : index
    %c0_27 = arith.constant 0 : index
    %25 = vector.load %arg3[%c0_26, %c0_27] : memref<1x128xf32, #tpu.memory_space<vmem>>, vector<1x128xf32>
    %c0_28 = arith.constant 0 : index
    %c0_29 = arith.constant 0 : index
    %26 = vector.load %arg4[%c0_28, %c0_29] : memref<1x128xf32, #tpu.memory_space<vmem>>, vector<1x128xf32>
    %cst_30 = arith.constant 0.000000e+00 : f32
    %27 = vector.broadcast %cst_30 : f32 to vector<1x128xf32>
    %cst_31 = arith.constant 0.000000e+00 : f32
    %28 = vector.broadcast %cst_31 : f32 to vector<1x128xf32>
    %29 = vector.extract_strided_slice %24 {offsets = [0, 0], sizes = [4, 128], strides = [1, 1]} : vector<10x128xf32> to vector<4x128xf32>
    %cst_32 = arith.constant dense<0.000000e+00> : vector<128xf32>
    %30 = vector.multi_reduction <add>, %29, %cst_32 [0] : vector<4x128xf32> to vector<128xf32>
    %31 = vector.shape_cast %30 : vector<128xf32> to vector<1x128xf32>
    %32 = arith.addf %27, %31 : vector<1x128xf32>
    %33 = arith.mulf %29, %29 : vector<4x128xf32>
    %cst_33 = arith.constant dense<0.000000e+00> : vector<128xf32>
    %34 = vector.multi_reduction <add>, %33, %cst_33 [0] : vector<4x128xf32> to vector<128xf32>
    %35 = vector.shape_cast %34 : vector<128xf32> to vector<1x128xf32>
    %36 = arith.addf %28, %35 : vector<1x128xf32>
    %37 = vector.extract_strided_slice %24 {offsets = [6, 0], sizes = [4, 128], strides = [1, 1]} : vector<10x128xf32> to vector<4x128xf32>
    %cst_34 = arith.constant dense<0.000000e+00> : vector<128xf32>
    %38 = vector.multi_reduction <add>, %37, %cst_34 [0] : vector<4x128xf32> to vector<128xf32>
    %39 = vector.shape_cast %38 : vector<128xf32> to vector<1x128xf32>
    %40 = arith.addf %32, %39 : vector<1x128xf32>
    %41 = arith.mulf %37, %37 : vector<4x128xf32>
    %cst_35 = arith.constant dense<0.000000e+00> : vector<128xf32>
    %42 = vector.multi_reduction <add>, %41, %cst_35 [0] : vector<4x128xf32> to vector<128xf32>
    %43 = vector.shape_cast %42 : vector<128xf32> to vector<1x128xf32>
    %44 = arith.addf %36, %43 : vector<1x128xf32>
    %c0_36 = arith.constant 0 : index
    %c0_37 = arith.constant 0 : index
    %45 = vector.load %arg8[%c0_36, %c0_37] : memref<128x128xf32, #tpu.memory_space<vmem>>, vector<128x128xf32>
    %cst_38 = arith.constant dense<0.000000e+00> : vector<1x128xf32>
    %46 = tpu.matmul %40, %45, %cst_38 {dimension_numbers = #tpu.dot_dimension_numbers<[1], [0], [0], [1], [0, 0, 1, 1], [], []>} : vector<1x128xf32>, vector<128x128xf32>, vector<1x128xf32> -> vector<1x128xf32>
    %c0_39 = arith.constant 0 : index
    %c0_40 = arith.constant 0 : index
    %47 = vector.load %arg8[%c0_39, %c0_40] : memref<128x128xf32, #tpu.memory_space<vmem>>, vector<128x128xf32>
    %cst_41 = arith.constant dense<0.000000e+00> : vector<1x128xf32>
    %48 = tpu.matmul %44, %47, %cst_41 {dimension_numbers = #tpu.dot_dimension_numbers<[1], [0], [0], [1], [0, 0, 1, 1], [], []>} : vector<1x128xf32>, vector<128x128xf32>, vector<1x128xf32> -> vector<1x128xf32>
    %cst_42 = arith.constant 3.125000e-02 : f32
    %49 = vector.broadcast %cst_42 : f32 to vector<1x128xf32>
    %50 = arith.mulf %46, %49 : vector<1x128xf32>
    %cst_43 = arith.constant 3.125000e-02 : f32
    %51 = vector.broadcast %cst_43 : f32 to vector<1x128xf32>
    %52 = arith.mulf %48, %51 : vector<1x128xf32>
    %53 = arith.mulf %50, %50 : vector<1x128xf32>
    %54 = arith.subf %52, %53 : vector<1x128xf32>
    %cst_44 = arith.constant 9.99999974E-6 : f32
    %55 = vector.broadcast %cst_44 : f32 to vector<1x128xf32>
    %56 = arith.addf %54, %55 : vector<1x128xf32>
    %57 = math.rsqrt %56 : vector<1x128xf32>
    %58 = vector.broadcast %50 : vector<1x128xf32> to vector<10x128xf32>
    %59 = arith.subf %24, %58 : vector<10x128xf32>
    %60 = vector.broadcast %57 : vector<1x128xf32> to vector<10x128xf32>
    %61 = arith.mulf %59, %60 : vector<10x128xf32>
    %62 = vector.broadcast %25 : vector<1x128xf32> to vector<10x128xf32>
    %63 = arith.mulf %61, %62 : vector<10x128xf32>
    %64 = vector.broadcast %26 : vector<1x128xf32> to vector<10x128xf32>
    %65 = arith.addf %63, %64 : vector<10x128xf32>
    %cst_45 = arith.constant 0.000000e+00 : f32
    %66 = vector.broadcast %cst_45 : f32 to vector<10x128xf32>
    %67 = arith.maximumf %65, %66 : vector<10x128xf32>
    %68 = arith.truncf %67 : vector<10x128xf32> to vector<10x128xbf16>
    %cst_46 = arith.constant 0.000000e+00 : bf16
    %69 = vector.broadcast %cst_46 : bf16 to vector<1x128xbf16>
    %c0_47 = arith.constant 0 : index
    %c0_48 = arith.constant 0 : index
    %70 = vector.load %arg16[%c0_47, %c0_48] : memref<12x128xbf16, #tpu.memory_space<vmem>>, vector<1x128xbf16>
    tpu.vector_store %arg16[%c0_47, %c0_48], %69 {strides = array<i32>} : memref<12x128xbf16, #tpu.memory_space<vmem>>, vector<1x128xbf16>,
    %c5_49 = arith.constant 5 : index
    %c0_50 = arith.constant 0 : index
    %71 = vector.load %arg16[%c5_49, %c0_50] : memref<12x128xbf16, #tpu.memory_space<vmem>>, vector<1x128xbf16>
    tpu.vector_store %arg16[%c5_49, %c0_50], %69 {strides = array<i32>} : memref<12x128xbf16, #tpu.memory_space<vmem>>, vector<1x128xbf16>,
    %72 = vector.extract_strided_slice %68 {offsets = [0, 0], sizes = [4, 128], strides = [1, 1]} : vector<10x128xbf16> to vector<4x128xbf16>
    %c1_51 = arith.constant 1 : index
    %c0_52 = arith.constant 0 : index
    %73 = vector.load %arg16[%c1_51, %c0_52] : memref<12x128xbf16, #tpu.memory_space<vmem>>, vector<4x128xbf16>
    tpu.vector_store %arg16[%c1_51, %c0_52], %72 {strides = array<i32>} : memref<12x128xbf16, #tpu.memory_space<vmem>>, vector<4x128xbf16>,
    %c6_53 = arith.constant 6 : index
    %c0_54 = arith.constant 0 : index
    %74 = vector.load %arg16[%c6_53, %c0_54] : memref<12x128xbf16, #tpu.memory_space<vmem>>, vector<1x128xbf16>
    tpu.vector_store %arg16[%c6_53, %c0_54], %69 {strides = array<i32>} : memref<12x128xbf16, #tpu.memory_space<vmem>>, vector<1x128xbf16>,
    %c11_55 = arith.constant 11 : index
    %c0_56 = arith.constant 0 : index
    %75 = vector.load %arg16[%c11_55, %c0_56] : memref<12x128xbf16, #tpu.memory_space<vmem>>, vector<1x128xbf16>
    tpu.vector_store %arg16[%c11_55, %c0_56], %69 {strides = array<i32>} : memref<12x128xbf16, #tpu.memory_space<vmem>>, vector<1x128xbf16>,
    %76 = vector.extract_strided_slice %68 {offsets = [6, 0], sizes = [4, 128], strides = [1, 1]} : vector<10x128xbf16> to vector<4x128xbf16>
    %c7_57 = arith.constant 7 : index
    %c0_58 = arith.constant 0 : index
    %77 = vector.load %arg16[%c7_57, %c0_58] : memref<12x128xbf16, #tpu.memory_space<vmem>>, vector<4x128xbf16>
    tpu.vector_store %arg16[%c7_57, %c0_58], %76 {strides = array<i32>} : memref<12x128xbf16, #tpu.memory_space<vmem>>, vector<4x128xbf16>,
    %c0_59 = arith.constant 0 : index
    %c0_60 = arith.constant 0 : index
    %78 = vector.load %arg16[%c0_59, %c0_60] : memref<12x128xbf16, #tpu.memory_space<vmem>>, vector<10x128xbf16>
    %c0_61 = arith.constant 0 : index
    %c0_62 = arith.constant 0 : index
    %c0_63 = arith.constant 0 : index
    %79 = vector.load %arg5[%c0_61, %c0_62, %c0_63] : memref<3x128x128xbf16, #tpu.memory_space<vmem>>, vector<1x128x128xbf16>
    %80 = vector.shape_cast %79 : vector<1x128x128xbf16> to vector<128x128xbf16>
    %cst_64 = arith.constant dense<0.000000e+00> : vector<10x128xf32>
    %81 = tpu.matmul %78, %80, %cst_64 {dimension_numbers = #tpu.dot_dimension_numbers<[1], [0], [0], [1], [0, 0, 1, 1], [], []>} : vector<10x128xbf16>, vector<128x128xbf16>, vector<10x128xf32> -> vector<10x128xf32>
    %c1_65 = arith.constant 1 : index
    %c0_66 = arith.constant 0 : index
    %82 = vector.load %arg16[%c1_65, %c0_66] : memref<12x128xbf16, #tpu.memory_space<vmem>>, vector<10x128xbf16>
    %c1_67 = arith.constant 1 : index
    %c0_68 = arith.constant 0 : index
    %c0_69 = arith.constant 0 : index
    %83 = vector.load %arg5[%c1_67, %c0_68, %c0_69] : memref<3x128x128xbf16, #tpu.memory_space<vmem>>, vector<1x128x128xbf16>
    %84 = vector.shape_cast %83 : vector<1x128x128xbf16> to vector<128x128xbf16>
    %cst_70 = arith.constant dense<0.000000e+00> : vector<10x128xf32>
    %85 = tpu.matmul %82, %84, %cst_70 {dimension_numbers = #tpu.dot_dimension_numbers<[1], [0], [0], [1], [0, 0, 1, 1], [], []>} : vector<10x128xbf16>, vector<128x128xbf16>, vector<10x128xf32> -> vector<10x128xf32>
    %86 = arith.addf %81, %85 : vector<10x128xf32>
    %c2_71 = arith.constant 2 : index
    %c0_72 = arith.constant 0 : index
    %87 = vector.load %arg16[%c2_71, %c0_72] : memref<12x128xbf16, #tpu.memory_space<vmem>>, vector<10x128xbf16>
    %c2_73 = arith.constant 2 : index
    %c0_74 = arith.constant 0 : index
    %c0_75 = arith.constant 0 : index
    %88 = vector.load %arg5[%c2_73, %c0_74, %c0_75] : memref<3x128x128xbf16, #tpu.memory_space<vmem>>, vector<1x128x128xbf16>
    %89 = vector.shape_cast %88 : vector<1x128x128xbf16> to vector<128x128xbf16>
    %cst_76 = arith.constant dense<0.000000e+00> : vector<10x128xf32>
    %90 = tpu.matmul %87, %89, %cst_76 {dimension_numbers = #tpu.dot_dimension_numbers<[1], [0], [0], [1], [0, 0, 1, 1], [], []>} : vector<10x128xbf16>, vector<128x128xbf16>, vector<10x128xf32> -> vector<10x128xf32>
    %91 = arith.addf %86, %90 : vector<10x128xf32>
    %c0_77 = arith.constant 0 : index
    %c0_78 = arith.constant 0 : index
    %92 = vector.load %arg6[%c0_77, %c0_78] : memref<1x128xf32, #tpu.memory_space<vmem>>, vector<1x128xf32>
    %c0_79 = arith.constant 0 : index
    %c0_80 = arith.constant 0 : index
    %93 = vector.load %arg7[%c0_79, %c0_80] : memref<1x128xf32, #tpu.memory_space<vmem>>, vector<1x128xf32>
    %cst_81 = arith.constant 0.000000e+00 : f32
    %94 = vector.broadcast %cst_81 : f32 to vector<1x128xf32>
    %cst_82 = arith.constant 0.000000e+00 : f32
    %95 = vector.broadcast %cst_82 : f32 to vector<1x128xf32>
    %96 = vector.extract_strided_slice %91 {offsets = [0, 0], sizes = [4, 128], strides = [1, 1]} : vector<10x128xf32> to vector<4x128xf32>
    %cst_83 = arith.constant dense<0.000000e+00> : vector<128xf32>
    %97 = vector.multi_reduction <add>, %96, %cst_83 [0] : vector<4x128xf32> to vector<128xf32>
    %98 = vector.shape_cast %97 : vector<128xf32> to vector<1x128xf32>
    %99 = arith.addf %94, %98 : vector<1x128xf32>
    %100 = arith.mulf %96, %96 : vector<4x128xf32>
    %cst_84 = arith.constant dense<0.000000e+00> : vector<128xf32>
    %101 = vector.multi_reduction <add>, %100, %cst_84 [0] : vector<4x128xf32> to vector<128xf32>
    %102 = vector.shape_cast %101 : vector<128xf32> to vector<1x128xf32>
    %103 = arith.addf %95, %102 : vector<1x128xf32>
    %104 = vector.extract_strided_slice %91 {offsets = [6, 0], sizes = [4, 128], strides = [1, 1]} : vector<10x128xf32> to vector<4x128xf32>
    %cst_85 = arith.constant dense<0.000000e+00> : vector<128xf32>
    %105 = vector.multi_reduction <add>, %104, %cst_85 [0] : vector<4x128xf32> to vector<128xf32>
    %106 = vector.shape_cast %105 : vector<128xf32> to vector<1x128xf32>
    %107 = arith.addf %99, %106 : vector<1x128xf32>
    %108 = arith.mulf %104, %104 : vector<4x128xf32>
    %cst_86 = arith.constant dense<0.000000e+00> : vector<128xf32>
    %109 = vector.multi_reduction <add>, %108, %cst_86 [0] : vector<4x128xf32> to vector<128xf32>
    %110 = vector.shape_cast %109 : vector<128xf32> to vector<1x128xf32>
    %111 = arith.addf %103, %110 : vector<1x128xf32>
    %c0_87 = arith.constant 0 : index
    %c0_88 = arith.constant 0 : index
    %112 = vector.load %arg8[%c0_87, %c0_88] : memref<128x128xf32, #tpu.memory_space<vmem>>, vector<128x128xf32>
    %cst_89 = arith.constant dense<0.000000e+00> : vector<1x128xf32>
    %113 = tpu.matmul %107, %112, %cst_89 {dimension_numbers = #tpu.dot_dimension_numbers<[1], [0], [0], [1], [0, 0, 1, 1], [], []>} : vector<1x128xf32>, vector<128x128xf32>, vector<1x128xf32> -> vector<1x128xf32>
    %c0_90 = arith.constant 0 : index
    %c0_91 = arith.constant 0 : index
    %114 = vector.load %arg8[%c0_90, %c0_91] : memref<128x128xf32, #tpu.memory_space<vmem>>, vector<128x128xf32>
    %cst_92 = arith.constant dense<0.000000e+00> : vector<1x128xf32>
    %115 = tpu.matmul %111, %114, %cst_92 {dimension_numbers = #tpu.dot_dimension_numbers<[1], [0], [0], [1], [0, 0, 1, 1], [], []>} : vector<1x128xf32>, vector<128x128xf32>, vector<1x128xf32> -> vector<1x128xf32>
    %cst_93 = arith.constant 3.125000e-02 : f32
    %116 = vector.broadcast %cst_93 : f32 to vector<1x128xf32>
    %117 = arith.mulf %113, %116 : vector<1x128xf32>
    %cst_94 = arith.constant 3.125000e-02 : f32
    %118 = vector.broadcast %cst_94 : f32 to vector<1x128xf32>
    %119 = arith.mulf %115, %118 : vector<1x128xf32>
    %120 = arith.mulf %117, %117 : vector<1x128xf32>
    %121 = arith.subf %119, %120 : vector<1x128xf32>
    %cst_95 = arith.constant 9.99999974E-6 : f32
    %122 = vector.broadcast %cst_95 : f32 to vector<1x128xf32>
    %123 = arith.addf %121, %122 : vector<1x128xf32>
    %124 = math.rsqrt %123 : vector<1x128xf32>
    %125 = vector.broadcast %117 : vector<1x128xf32> to vector<10x128xf32>
    %126 = arith.subf %91, %125 : vector<10x128xf32>
    %127 = vector.broadcast %124 : vector<1x128xf32> to vector<10x128xf32>
    %128 = arith.mulf %126, %127 : vector<10x128xf32>
    %129 = vector.broadcast %92 : vector<1x128xf32> to vector<10x128xf32>
    %130 = arith.mulf %128, %129 : vector<10x128xf32>
    %131 = vector.broadcast %93 : vector<1x128xf32> to vector<10x128xf32>
    %132 = arith.addf %130, %131 : vector<10x128xf32>
    %cst_96 = arith.constant 0.000000e+00 : f32
    %133 = vector.broadcast %cst_96 : f32 to vector<10x128xf32>
    %134 = arith.maximumf %132, %133 : vector<10x128xf32>
    %135 = vector.extract_strided_slice %134 {offsets = [0, 0], sizes = [4, 128], strides = [1, 1]} : vector<10x128xf32> to vector<4x128xf32>
    %c0_97 = arith.constant 0 : index
    %c0_98 = arith.constant 0 : index
    %136 = vector.load %arg13[%c0_97, %c0_98] : memref<8x128xf32, #tpu.memory_space<vmem>>, vector<4x128xf32>
    tpu.vector_store %arg13[%c0_97, %c0_98], %135 {strides = array<i32>} : memref<8x128xf32, #tpu.memory_space<vmem>>, vector<4x128xf32>,
    %137 = vector.extract_strided_slice %134 {offsets = [6, 0], sizes = [4, 128], strides = [1, 1]} : vector<10x128xf32> to vector<4x128xf32>
    %c4_99 = arith.constant 4 : index
    %c0_100 = arith.constant 0 : index
    %138 = vector.load %arg13[%c4_99, %c0_100] : memref<8x128xf32, #tpu.memory_space<vmem>>, vector<4x128xf32>
    tpu.vector_store %arg13[%c4_99, %c0_100], %137 {strides = array<i32>} : memref<8x128xf32, #tpu.memory_space<vmem>>, vector<4x128xf32>,
    %c0_101 = arith.constant 0 : index
    %c0_102 = arith.constant 0 : index
    %139 = vector.load %arg9[%c0_101, %c0_102] : memref<4x10xf32, #tpu.memory_space<vmem>>, vector<4x10xf32>
    %cst_103 = arith.constant dense<0.000000e+00> : vector<4x128xf32>
    %140 = tpu.matmul %139, %134, %cst_103 {dimension_numbers = #tpu.dot_dimension_numbers<[1], [0], [0], [1], [0, 0, 1, 1], [], []>} : vector<4x10xf32>, vector<10x128xf32>, vector<4x128xf32> -> vector<4x128xf32>
    %c0_104 = arith.constant 0 : index
    %c0_105 = arith.constant 0 : index
    %141 = vector.load %arg10[%c0_104, %c0_105] : memref<4x10xf32, #tpu.memory_space<vmem>>, vector<4x10xf32>
    %cst_106 = arith.constant dense<0.000000e+00> : vector<4x128xf32>
    %142 = tpu.matmul %141, %134, %cst_106 {dimension_numbers = #tpu.dot_dimension_numbers<[1], [0], [0], [1], [0, 0, 1, 1], [], []>} : vector<4x10xf32>, vector<10x128xf32>, vector<4x128xf32> -> vector<4x128xf32>
    %143 = arith.maximumf %140, %142 : vector<4x128xf32>
    %c0_107 = arith.constant 0 : index
    %c0_108 = arith.constant 0 : index
    %144 = vector.load %arg11[%c0_107, %c0_108] : memref<128x64xf32, #tpu.memory_space<vmem>>, vector<128x64xf32>
    %cst_109 = arith.constant dense<0.000000e+00> : vector<4x64xf32>
    %145 = tpu.matmul %143, %144, %cst_109 {dimension_numbers = #tpu.dot_dimension_numbers<[1], [0], [0], [1], [0, 0, 1, 1], [], []>} : vector<4x128xf32>, vector<128x64xf32>, vector<4x64xf32> -> vector<4x64xf32>
    %c0_110 = arith.constant 0 : index
    %c0_111 = arith.constant 0 : index
    %146 = vector.load %arg12[%c0_110, %c0_111] : memref<128x64xf32, #tpu.memory_space<vmem>>, vector<128x64xf32>
    %cst_112 = arith.constant dense<0.000000e+00> : vector<4x64xf32>
    %147 = tpu.matmul %143, %146, %cst_112 {dimension_numbers = #tpu.dot_dimension_numbers<[1], [0], [0], [1], [0, 0, 1, 1], [], []>} : vector<4x128xf32>, vector<128x64xf32>, vector<4x64xf32> -> vector<4x64xf32>
    %148 = arith.maximumf %145, %147 : vector<4x64xf32>
    %c0_113 = arith.constant 0 : index
    %c0_114 = arith.constant 0 : index
    %149 = vector.load %arg14[%c0_113, %c0_114] : memref<4x64xf32, #tpu.memory_space<vmem>>, vector<4x64xf32>
    tpu.vector_store %arg14[%c0_113, %c0_114], %148 {strides = array<i32>} : memref<4x64xf32, #tpu.memory_space<vmem>>, vector<4x64xf32>,
    return
  }
  func.func @transform_0(%arg0: i32) -> (i32, i32) {
    %c0_i32 = arith.constant 0 : i32
    %c0_i32_0 = arith.constant 0 : i32
    %c0_i32_1 = arith.constant 0 : i32
    return %c0_i32, %c0_i32_0 : i32, i32
  }
  func.func @transform_1(%arg0: i32) -> (i32, i32, i32) {
    %c0_i32 = arith.constant 0 : i32
    %c0_i32_0 = arith.constant 0 : i32
    %c0_i32_1 = arith.constant 0 : i32
    %c0_i32_2 = arith.constant 0 : i32
    return %c0_i32, %c0_i32_0, %c0_i32_1 : i32, i32, i32
  }
  func.func @transform_2(%arg0: i32) -> (i32, i32) {
    %c0_i32 = arith.constant 0 : i32
    %c0_i32_0 = arith.constant 0 : i32
    %c0_i32_1 = arith.constant 0 : i32
    return %c0_i32, %c0_i32_0 : i32, i32
  }
  func.func @transform_3(%arg0: i32) -> (i32, i32) {
    %c0_i32 = arith.constant 0 : i32
    %c0_i32_0 = arith.constant 0 : i32
    %c0_i32_1 = arith.constant 0 : i32
    return %c0_i32, %c0_i32_0 : i32, i32
  }
  func.func @transform_4(%arg0: i32) -> (i32, i32, i32) {
    %c0_i32 = arith.constant 0 : i32
    %c0_i32_0 = arith.constant 0 : i32
    %c0_i32_1 = arith.constant 0 : i32
    %c0_i32_2 = arith.constant 0 : i32
    return %c0_i32, %c0_i32_0, %c0_i32_1 : i32, i32, i32
  }
  func.func @transform_5(%arg0: i32) -> (i32, i32) {
    %c0_i32 = arith.constant 0 : i32
    %c0_i32_0 = arith.constant 0 : i32
    %c0_i32_1 = arith.constant 0 : i32
    return %c0_i32, %c0_i32_0 : i32, i32
  }
  func.func @transform_6(%arg0: i32) -> (i32, i32) {
    %c0_i32 = arith.constant 0 : i32
    %c0_i32_0 = arith.constant 0 : i32
    %c0_i32_1 = arith.constant 0 : i32
    return %c0_i32, %c0_i32_0 : i32, i32
  }
  func.func @transform_7(%arg0: i32) -> (i32, i32) {
    %c0_i32 = arith.constant 0 : i32
    %c0_i32_0 = arith.constant 0 : i32
    %c0_i32_1 = arith.constant 0 : i32
    return %c0_i32, %c0_i32_0 : i32, i32
  }
  func.func @transform_8(%arg0: i32) -> (i32, i32) {
    %c0_i32 = arith.constant 0 : i32
    %c0_i32_0 = arith.constant 0 : i32
    %c0_i32_1 = arith.constant 0 : i32
    return %c0_i32, %c0_i32_0 : i32, i32
  }
  func.func @transform_9(%arg0: i32) -> (i32, i32) {
    %c0_i32 = arith.constant 0 : i32
    %c0_i32_0 = arith.constant 0 : i32
    %c0_i32_1 = arith.constant 0 : i32
    return %c0_i32, %c0_i32_0 : i32, i32
  }
  func.func @transform_10(%arg0: i32) -> (i32, i32) {
    %c0_i32 = arith.constant 0 : i32
    %c0_i32_0 = arith.constant 0 : i32
    %c0_i32_1 = arith.constant 0 : i32
    return %c0_i32, %c0_i32_0 : i32, i32
  }
  func.func @transform_11(%arg0: i32) -> (i32, i32) {
    %c0_i32 = arith.constant 0 : i32
    %c0_i32_0 = arith.constant 0 : i32
    %c0_i32_1 = arith.constant 0 : i32
    return %c0_i32, %c0_i32_0 : i32, i32
  }
  func.func @transform_12(%arg0: i32) -> (i32, i32) {
    %c0_i32 = arith.constant 0 : i32
    %c0_i32_0 = arith.constant 0 : i32
    %c0_i32_1 = arith.constant 0 : i32
    return %c0_i32, %c0_i32_0 : i32, i32
  }
  func.func @transform_13(%arg0: i32) -> (i32, i32) {
    %c0_i32 = arith.constant 0 : i32
    %c0_i32_0 = arith.constant 0 : i32
    %c0_i32_1 = arith.constant 0 : i32
    return %c0_i32, %c0_i32_0 : i32, i32
  }
}

module attributes {stable_mosaic.version = 11 : i64} {
  func.func @_double_conv_pool_kernel(%arg0: i32, %arg1: memref<16x64xf32, #tpu.memory_space<vmem>>, %arg2: memref<3x64x128xbf16, #tpu.memory_space<vmem>>, %arg3: memref<1x128xf32, #tpu.memory_space<vmem>>, %arg4: memref<1x128xf32, #tpu.memory_space<vmem>>, %arg5: memref<3x128x128xbf16, #tpu.memory_space<vmem>>, %arg6: memref<1x128xf32, #tpu.memory_space<vmem>>, %arg7: memref<1x128xf32, #tpu.memory_space<vmem>>, %arg8: memref<128x128xf32, #tpu.memory_space<vmem>>, %arg9: memref<8x18xf32, #tpu.memory_space<vmem>>, %arg10: memref<8x18xf32, #tpu.memory_space<vmem>>, %arg11: memref<128x64xf32, #tpu.memory_space<vmem>>, %arg12: memref<128x64xf32, #tpu.memory_space<vmem>>, %arg13: memref<16x128xf32, #tpu.memory_space<vmem>>, %arg14: memref<8x64xf32, #tpu.memory_space<vmem>>, %arg15: memref<20x64xbf16, #tpu.memory_space<vmem>>, %arg16: memref<20x128xbf16, #tpu.memory_space<vmem>>) attributes {dimension_semantics = [#tpu.dimension_semantics<arbitrary>], iteration_bounds = array<i64: 1>, scalar_prefetch = 0 : i64, scratch_operands = 2 : i64, tpu.core_type = #tpu.core_type<tc>, window_params = [{pipeline_mode = #tpu.pipeline_mode<synchronous>, transform_indices = @transform_0, window_bounds = array<i64: 16, 64>}, {pipeline_mode = #tpu.pipeline_mode<synchronous>, transform_indices = @transform_1, window_bounds = array<i64: 3, 64, 128>}, {pipeline_mode = #tpu.pipeline_mode<synchronous>, transform_indices = @transform_2, window_bounds = array<i64: 1, 128>}, {pipeline_mode = #tpu.pipeline_mode<synchronous>, transform_indices = @transform_3, window_bounds = array<i64: 1, 128>}, {pipeline_mode = #tpu.pipeline_mode<synchronous>, transform_indices = @transform_4, window_bounds = array<i64: 3, 128, 128>}, {pipeline_mode = #tpu.pipeline_mode<synchronous>, transform_indices = @transform_5, window_bounds = array<i64: 1, 128>}, {pipeline_mode = #tpu.pipeline_mode<synchronous>, transform_indices = @transform_6, window_bounds = array<i64: 1, 128>}, {pipeline_mode = #tpu.pipeline_mode<synchronous>, transform_indices = @transform_7, window_bounds = array<i64: 128, 128>}, {pipeline_mode = #tpu.pipeline_mode<synchronous>, transform_indices = @transform_8, window_bounds = array<i64: 8, 18>}, {pipeline_mode = #tpu.pipeline_mode<synchronous>, transform_indices = @transform_9, window_bounds = array<i64: 8, 18>}, {pipeline_mode = #tpu.pipeline_mode<synchronous>, transform_indices = @transform_10, window_bounds = array<i64: 128, 64>}, {pipeline_mode = #tpu.pipeline_mode<synchronous>, transform_indices = @transform_11, window_bounds = array<i64: 128, 64>}, {pipeline_mode = #tpu.pipeline_mode<synchronous>, transform_indices = @transform_12, window_bounds = array<i64: 16, 128>}, {pipeline_mode = #tpu.pipeline_mode<synchronous>, transform_indices = @transform_13, window_bounds = array<i64: 8, 64>}]} {
    %cst = arith.constant 0.000000e+00 : bf16
    %0 = vector.broadcast %cst : bf16 to vector<1x64xbf16>
    %c0 = arith.constant 0 : index
    %c0_0 = arith.constant 0 : index
    %1 = vector.load %arg15[%c0, %c0_0] : memref<20x64xbf16, #tpu.memory_space<vmem>>, vector<1x64xbf16>
    tpu.vector_store %arg15[%c0, %c0_0], %0 {strides = array<i32>} : memref<20x64xbf16, #tpu.memory_space<vmem>>, vector<1x64xbf16>,
    %c9 = arith.constant 9 : index
    %c0_1 = arith.constant 0 : index
    %2 = vector.load %arg15[%c9, %c0_1] : memref<20x64xbf16, #tpu.memory_space<vmem>>, vector<1x64xbf16>
    tpu.vector_store %arg15[%c9, %c0_1], %0 {strides = array<i32>} : memref<20x64xbf16, #tpu.memory_space<vmem>>, vector<1x64xbf16>,
    %c0_2 = arith.constant 0 : index
    %c0_3 = arith.constant 0 : index
    %3 = vector.load %arg1[%c0_2, %c0_3] : memref<16x64xf32, #tpu.memory_space<vmem>>, vector<8x64xf32>
    %4 = arith.truncf %3 : vector<8x64xf32> to vector<8x64xbf16>
    %c1 = arith.constant 1 : index
    %c0_4 = arith.constant 0 : index
    %5 = vector.load %arg15[%c1, %c0_4] : memref<20x64xbf16, #tpu.memory_space<vmem>>, vector<8x64xbf16>
    tpu.vector_store %arg15[%c1, %c0_4], %4 {strides = array<i32>} : memref<20x64xbf16, #tpu.memory_space<vmem>>, vector<8x64xbf16>,
    %c10 = arith.constant 10 : index
    %c0_5 = arith.constant 0 : index
    %6 = vector.load %arg15[%c10, %c0_5] : memref<20x64xbf16, #tpu.memory_space<vmem>>, vector<1x64xbf16>
    tpu.vector_store %arg15[%c10, %c0_5], %0 {strides = array<i32>} : memref<20x64xbf16, #tpu.memory_space<vmem>>, vector<1x64xbf16>,
    %c19 = arith.constant 19 : index
    %c0_6 = arith.constant 0 : index
    %7 = vector.load %arg15[%c19, %c0_6] : memref<20x64xbf16, #tpu.memory_space<vmem>>, vector<1x64xbf16>
    tpu.vector_store %arg15[%c19, %c0_6], %0 {strides = array<i32>} : memref<20x64xbf16, #tpu.memory_space<vmem>>, vector<1x64xbf16>,
    %c8 = arith.constant 8 : index
    %c0_7 = arith.constant 0 : index
    %8 = vector.load %arg1[%c8, %c0_7] : memref<16x64xf32, #tpu.memory_space<vmem>>, vector<8x64xf32>
    %9 = arith.truncf %8 : vector<8x64xf32> to vector<8x64xbf16>
    %c11 = arith.constant 11 : index
    %c0_8 = arith.constant 0 : index
    %10 = vector.load %arg15[%c11, %c0_8] : memref<20x64xbf16, #tpu.memory_space<vmem>>, vector<8x64xbf16>
    tpu.vector_store %arg15[%c11, %c0_8], %9 {strides = array<i32>} : memref<20x64xbf16, #tpu.memory_space<vmem>>, vector<8x64xbf16>,
    %c0_9 = arith.constant 0 : index
    %c0_10 = arith.constant 0 : index
    %11 = vector.load %arg15[%c0_9, %c0_10] : memref<20x64xbf16, #tpu.memory_space<vmem>>, vector<18x64xbf16>
    %c0_11 = arith.constant 0 : index
    %c0_12 = arith.constant 0 : index
    %c0_13 = arith.constant 0 : index
    %12 = vector.load %arg2[%c0_11, %c0_12, %c0_13] : memref<3x64x128xbf16, #tpu.memory_space<vmem>>, vector<1x64x128xbf16>
    %13 = vector.shape_cast %12 : vector<1x64x128xbf16> to vector<64x128xbf16>
    %cst_14 = arith.constant dense<0.000000e+00> : vector<18x128xf32>
    %14 = tpu.matmul %11, %13, %cst_14 {dimension_numbers = #tpu.dot_dimension_numbers<[1], [0], [0], [1], [0, 0, 1, 1], [], []>} : vector<18x64xbf16>, vector<64x128xbf16>, vector<18x128xf32> -> vector<18x128xf32>
    %c1_15 = arith.constant 1 : index
    %c0_16 = arith.constant 0 : index
    %15 = vector.load %arg15[%c1_15, %c0_16] : memref<20x64xbf16, #tpu.memory_space<vmem>>, vector<18x64xbf16>
    %c1_17 = arith.constant 1 : index
    %c0_18 = arith.constant 0 : index
    %c0_19 = arith.constant 0 : index
    %16 = vector.load %arg2[%c1_17, %c0_18, %c0_19] : memref<3x64x128xbf16, #tpu.memory_space<vmem>>, vector<1x64x128xbf16>
    %17 = vector.shape_cast %16 : vector<1x64x128xbf16> to vector<64x128xbf16>
    %cst_20 = arith.constant dense<0.000000e+00> : vector<18x128xf32>
    %18 = tpu.matmul %15, %17, %cst_20 {dimension_numbers = #tpu.dot_dimension_numbers<[1], [0], [0], [1], [0, 0, 1, 1], [], []>} : vector<18x64xbf16>, vector<64x128xbf16>, vector<18x128xf32> -> vector<18x128xf32>
    %19 = arith.addf %14, %18 : vector<18x128xf32>
    %c2 = arith.constant 2 : index
    %c0_21 = arith.constant 0 : index
    %20 = vector.load %arg15[%c2, %c0_21] : memref<20x64xbf16, #tpu.memory_space<vmem>>, vector<18x64xbf16>
    %c2_22 = arith.constant 2 : index
    %c0_23 = arith.constant 0 : index
    %c0_24 = arith.constant 0 : index
    %21 = vector.load %arg2[%c2_22, %c0_23, %c0_24] : memref<3x64x128xbf16, #tpu.memory_space<vmem>>, vector<1x64x128xbf16>
    %22 = vector.shape_cast %21 : vector<1x64x128xbf16> to vector<64x128xbf16>
    %cst_25 = arith.constant dense<0.000000e+00> : vector<18x128xf32>
    %23 = tpu.matmul %20, %22, %cst_25 {dimension_numbers = #tpu.dot_dimension_numbers<[1], [0], [0], [1], [0, 0, 1, 1], [], []>} : vector<18x64xbf16>, vector<64x128xbf16>, vector<18x128xf32> -> vector<18x128xf32>
    %24 = arith.addf %19, %23 : vector<18x128xf32>
    %c0_26 = arith.constant 0 : index
    %c0_27 = arith.constant 0 : index
    %25 = vector.load %arg3[%c0_26, %c0_27] : memref<1x128xf32, #tpu.memory_space<vmem>>, vector<1x128xf32>
    %c0_28 = arith.constant 0 : index
    %c0_29 = arith.constant 0 : index
    %26 = vector.load %arg4[%c0_28, %c0_29] : memref<1x128xf32, #tpu.memory_space<vmem>>, vector<1x128xf32>
    %cst_30 = arith.constant 0.000000e+00 : f32
    %27 = vector.broadcast %cst_30 : f32 to vector<1x128xf32>
    %cst_31 = arith.constant 0.000000e+00 : f32
    %28 = vector.broadcast %cst_31 : f32 to vector<1x128xf32>
    %29 = vector.extract_strided_slice %24 {offsets = [0, 0], sizes = [8, 128], strides = [1, 1]} : vector<18x128xf32> to vector<8x128xf32>
    %cst_32 = arith.constant dense<0.000000e+00> : vector<128xf32>
    %30 = vector.multi_reduction <add>, %29, %cst_32 [0] : vector<8x128xf32> to vector<128xf32>
    %31 = vector.shape_cast %30 : vector<128xf32> to vector<1x128xf32>
    %32 = arith.addf %27, %31 : vector<1x128xf32>
    %33 = arith.mulf %29, %29 : vector<8x128xf32>
    %cst_33 = arith.constant dense<0.000000e+00> : vector<128xf32>
    %34 = vector.multi_reduction <add>, %33, %cst_33 [0] : vector<8x128xf32> to vector<128xf32>
    %35 = vector.shape_cast %34 : vector<128xf32> to vector<1x128xf32>
    %36 = arith.addf %28, %35 : vector<1x128xf32>
    %37 = vector.extract_strided_slice %24 {offsets = [10, 0], sizes = [8, 128], strides = [1, 1]} : vector<18x128xf32> to vector<8x128xf32>
    %cst_34 = arith.constant dense<0.000000e+00> : vector<128xf32>
    %38 = vector.multi_reduction <add>, %37, %cst_34 [0] : vector<8x128xf32> to vector<128xf32>
    %39 = vector.shape_cast %38 : vector<128xf32> to vector<1x128xf32>
    %40 = arith.addf %32, %39 : vector<1x128xf32>
    %41 = arith.mulf %37, %37 : vector<8x128xf32>
    %cst_35 = arith.constant dense<0.000000e+00> : vector<128xf32>
    %42 = vector.multi_reduction <add>, %41, %cst_35 [0] : vector<8x128xf32> to vector<128xf32>
    %43 = vector.shape_cast %42 : vector<128xf32> to vector<1x128xf32>
    %44 = arith.addf %36, %43 : vector<1x128xf32>
    %c0_36 = arith.constant 0 : index
    %c0_37 = arith.constant 0 : index
    %45 = vector.load %arg8[%c0_36, %c0_37] : memref<128x128xf32, #tpu.memory_space<vmem>>, vector<128x128xf32>
    %cst_38 = arith.constant dense<0.000000e+00> : vector<1x128xf32>
    %46 = tpu.matmul %40, %45, %cst_38 {dimension_numbers = #tpu.dot_dimension_numbers<[1], [0], [0], [1], [0, 0, 1, 1], [], []>} : vector<1x128xf32>, vector<128x128xf32>, vector<1x128xf32> -> vector<1x128xf32>
    %c0_39 = arith.constant 0 : index
    %c0_40 = arith.constant 0 : index
    %47 = vector.load %arg8[%c0_39, %c0_40] : memref<128x128xf32, #tpu.memory_space<vmem>>, vector<128x128xf32>
    %cst_41 = arith.constant dense<0.000000e+00> : vector<1x128xf32>
    %48 = tpu.matmul %44, %47, %cst_41 {dimension_numbers = #tpu.dot_dimension_numbers<[1], [0], [0], [1], [0, 0, 1, 1], [], []>} : vector<1x128xf32>, vector<128x128xf32>, vector<1x128xf32> -> vector<1x128xf32>
    %cst_42 = arith.constant 7.812500e-03 : f32
    %49 = vector.broadcast %cst_42 : f32 to vector<1x128xf32>
    %50 = arith.mulf %46, %49 : vector<1x128xf32>
    %cst_43 = arith.constant 7.812500e-03 : f32
    %51 = vector.broadcast %cst_43 : f32 to vector<1x128xf32>
    %52 = arith.mulf %48, %51 : vector<1x128xf32>
    %53 = arith.mulf %50, %50 : vector<1x128xf32>
    %54 = arith.subf %52, %53 : vector<1x128xf32>
    %cst_44 = arith.constant 9.99999974E-6 : f32
    %55 = vector.broadcast %cst_44 : f32 to vector<1x128xf32>
    %56 = arith.addf %54, %55 : vector<1x128xf32>
    %57 = math.rsqrt %56 : vector<1x128xf32>
    %58 = vector.broadcast %50 : vector<1x128xf32> to vector<18x128xf32>
    %59 = arith.subf %24, %58 : vector<18x128xf32>
    %60 = vector.broadcast %57 : vector<1x128xf32> to vector<18x128xf32>
    %61 = arith.mulf %59, %60 : vector<18x128xf32>
    %62 = vector.broadcast %25 : vector<1x128xf32> to vector<18x128xf32>
    %63 = arith.mulf %61, %62 : vector<18x128xf32>
    %64 = vector.broadcast %26 : vector<1x128xf32> to vector<18x128xf32>
    %65 = arith.addf %63, %64 : vector<18x128xf32>
    %cst_45 = arith.constant 0.000000e+00 : f32
    %66 = vector.broadcast %cst_45 : f32 to vector<18x128xf32>
    %67 = arith.maximumf %65, %66 : vector<18x128xf32>
    %68 = arith.truncf %67 : vector<18x128xf32> to vector<18x128xbf16>
    %cst_46 = arith.constant 0.000000e+00 : bf16
    %69 = vector.broadcast %cst_46 : bf16 to vector<1x128xbf16>
    %c0_47 = arith.constant 0 : index
    %c0_48 = arith.constant 0 : index
    %70 = vector.load %arg16[%c0_47, %c0_48] : memref<20x128xbf16, #tpu.memory_space<vmem>>, vector<1x128xbf16>
    tpu.vector_store %arg16[%c0_47, %c0_48], %69 {strides = array<i32>} : memref<20x128xbf16, #tpu.memory_space<vmem>>, vector<1x128xbf16>,
    %c9_49 = arith.constant 9 : index
    %c0_50 = arith.constant 0 : index
    %71 = vector.load %arg16[%c9_49, %c0_50] : memref<20x128xbf16, #tpu.memory_space<vmem>>, vector<1x128xbf16>
    tpu.vector_store %arg16[%c9_49, %c0_50], %69 {strides = array<i32>} : memref<20x128xbf16, #tpu.memory_space<vmem>>, vector<1x128xbf16>,
    %72 = vector.extract_strided_slice %68 {offsets = [0, 0], sizes = [8, 128], strides = [1, 1]} : vector<18x128xbf16> to vector<8x128xbf16>
    %c1_51 = arith.constant 1 : index
    %c0_52 = arith.constant 0 : index
    %73 = vector.load %arg16[%c1_51, %c0_52] : memref<20x128xbf16, #tpu.memory_space<vmem>>, vector<8x128xbf16>
    tpu.vector_store %arg16[%c1_51, %c0_52], %72 {strides = array<i32>} : memref<20x128xbf16, #tpu.memory_space<vmem>>, vector<8x128xbf16>,
    %c10_53 = arith.constant 10 : index
    %c0_54 = arith.constant 0 : index
    %74 = vector.load %arg16[%c10_53, %c0_54] : memref<20x128xbf16, #tpu.memory_space<vmem>>, vector<1x128xbf16>
    tpu.vector_store %arg16[%c10_53, %c0_54], %69 {strides = array<i32>} : memref<20x128xbf16, #tpu.memory_space<vmem>>, vector<1x128xbf16>,
    %c19_55 = arith.constant 19 : index
    %c0_56 = arith.constant 0 : index
    %75 = vector.load %arg16[%c19_55, %c0_56] : memref<20x128xbf16, #tpu.memory_space<vmem>>, vector<1x128xbf16>
    tpu.vector_store %arg16[%c19_55, %c0_56], %69 {strides = array<i32>} : memref<20x128xbf16, #tpu.memory_space<vmem>>, vector<1x128xbf16>,
    %76 = vector.extract_strided_slice %68 {offsets = [10, 0], sizes = [8, 128], strides = [1, 1]} : vector<18x128xbf16> to vector<8x128xbf16>
    %c11_57 = arith.constant 11 : index
    %c0_58 = arith.constant 0 : index
    %77 = vector.load %arg16[%c11_57, %c0_58] : memref<20x128xbf16, #tpu.memory_space<vmem>>, vector<8x128xbf16>
    tpu.vector_store %arg16[%c11_57, %c0_58], %76 {strides = array<i32>} : memref<20x128xbf16, #tpu.memory_space<vmem>>, vector<8x128xbf16>,
    %c0_59 = arith.constant 0 : index
    %c0_60 = arith.constant 0 : index
    %78 = vector.load %arg16[%c0_59, %c0_60] : memref<20x128xbf16, #tpu.memory_space<vmem>>, vector<18x128xbf16>
    %c0_61 = arith.constant 0 : index
    %c0_62 = arith.constant 0 : index
    %c0_63 = arith.constant 0 : index
    %79 = vector.load %arg5[%c0_61, %c0_62, %c0_63] : memref<3x128x128xbf16, #tpu.memory_space<vmem>>, vector<1x128x128xbf16>
    %80 = vector.shape_cast %79 : vector<1x128x128xbf16> to vector<128x128xbf16>
    %cst_64 = arith.constant dense<0.000000e+00> : vector<18x128xf32>
    %81 = tpu.matmul %78, %80, %cst_64 {dimension_numbers = #tpu.dot_dimension_numbers<[1], [0], [0], [1], [0, 0, 1, 1], [], []>} : vector<18x128xbf16>, vector<128x128xbf16>, vector<18x128xf32> -> vector<18x128xf32>
    %c1_65 = arith.constant 1 : index
    %c0_66 = arith.constant 0 : index
    %82 = vector.load %arg16[%c1_65, %c0_66] : memref<20x128xbf16, #tpu.memory_space<vmem>>, vector<18x128xbf16>
    %c1_67 = arith.constant 1 : index
    %c0_68 = arith.constant 0 : index
    %c0_69 = arith.constant 0 : index
    %83 = vector.load %arg5[%c1_67, %c0_68, %c0_69] : memref<3x128x128xbf16, #tpu.memory_space<vmem>>, vector<1x128x128xbf16>
    %84 = vector.shape_cast %83 : vector<1x128x128xbf16> to vector<128x128xbf16>
    %cst_70 = arith.constant dense<0.000000e+00> : vector<18x128xf32>
    %85 = tpu.matmul %82, %84, %cst_70 {dimension_numbers = #tpu.dot_dimension_numbers<[1], [0], [0], [1], [0, 0, 1, 1], [], []>} : vector<18x128xbf16>, vector<128x128xbf16>, vector<18x128xf32> -> vector<18x128xf32>
    %86 = arith.addf %81, %85 : vector<18x128xf32>
    %c2_71 = arith.constant 2 : index
    %c0_72 = arith.constant 0 : index
    %87 = vector.load %arg16[%c2_71, %c0_72] : memref<20x128xbf16, #tpu.memory_space<vmem>>, vector<18x128xbf16>
    %c2_73 = arith.constant 2 : index
    %c0_74 = arith.constant 0 : index
    %c0_75 = arith.constant 0 : index
    %88 = vector.load %arg5[%c2_73, %c0_74, %c0_75] : memref<3x128x128xbf16, #tpu.memory_space<vmem>>, vector<1x128x128xbf16>
    %89 = vector.shape_cast %88 : vector<1x128x128xbf16> to vector<128x128xbf16>
    %cst_76 = arith.constant dense<0.000000e+00> : vector<18x128xf32>
    %90 = tpu.matmul %87, %89, %cst_76 {dimension_numbers = #tpu.dot_dimension_numbers<[1], [0], [0], [1], [0, 0, 1, 1], [], []>} : vector<18x128xbf16>, vector<128x128xbf16>, vector<18x128xf32> -> vector<18x128xf32>
    %91 = arith.addf %86, %90 : vector<18x128xf32>
    %c0_77 = arith.constant 0 : index
    %c0_78 = arith.constant 0 : index
    %92 = vector.load %arg6[%c0_77, %c0_78] : memref<1x128xf32, #tpu.memory_space<vmem>>, vector<1x128xf32>
    %c0_79 = arith.constant 0 : index
    %c0_80 = arith.constant 0 : index
    %93 = vector.load %arg7[%c0_79, %c0_80] : memref<1x128xf32, #tpu.memory_space<vmem>>, vector<1x128xf32>
    %cst_81 = arith.constant 0.000000e+00 : f32
    %94 = vector.broadcast %cst_81 : f32 to vector<1x128xf32>
    %cst_82 = arith.constant 0.000000e+00 : f32
    %95 = vector.broadcast %cst_82 : f32 to vector<1x128xf32>
    %96 = vector.extract_strided_slice %91 {offsets = [0, 0], sizes = [8, 128], strides = [1, 1]} : vector<18x128xf32> to vector<8x128xf32>
    %cst_83 = arith.constant dense<0.000000e+00> : vector<128xf32>
    %97 = vector.multi_reduction <add>, %96, %cst_83 [0] : vector<8x128xf32> to vector<128xf32>
    %98 = vector.shape_cast %97 : vector<128xf32> to vector<1x128xf32>
    %99 = arith.addf %94, %98 : vector<1x128xf32>
    %100 = arith.mulf %96, %96 : vector<8x128xf32>
    %cst_84 = arith.constant dense<0.000000e+00> : vector<128xf32>
    %101 = vector.multi_reduction <add>, %100, %cst_84 [0] : vector<8x128xf32> to vector<128xf32>
    %102 = vector.shape_cast %101 : vector<128xf32> to vector<1x128xf32>
    %103 = arith.addf %95, %102 : vector<1x128xf32>
    %104 = vector.extract_strided_slice %91 {offsets = [10, 0], sizes = [8, 128], strides = [1, 1]} : vector<18x128xf32> to vector<8x128xf32>
    %cst_85 = arith.constant dense<0.000000e+00> : vector<128xf32>
    %105 = vector.multi_reduction <add>, %104, %cst_85 [0] : vector<8x128xf32> to vector<128xf32>
    %106 = vector.shape_cast %105 : vector<128xf32> to vector<1x128xf32>
    %107 = arith.addf %99, %106 : vector<1x128xf32>
    %108 = arith.mulf %104, %104 : vector<8x128xf32>
    %cst_86 = arith.constant dense<0.000000e+00> : vector<128xf32>
    %109 = vector.multi_reduction <add>, %108, %cst_86 [0] : vector<8x128xf32> to vector<128xf32>
    %110 = vector.shape_cast %109 : vector<128xf32> to vector<1x128xf32>
    %111 = arith.addf %103, %110 : vector<1x128xf32>
    %c0_87 = arith.constant 0 : index
    %c0_88 = arith.constant 0 : index
    %112 = vector.load %arg8[%c0_87, %c0_88] : memref<128x128xf32, #tpu.memory_space<vmem>>, vector<128x128xf32>
    %cst_89 = arith.constant dense<0.000000e+00> : vector<1x128xf32>
    %113 = tpu.matmul %107, %112, %cst_89 {dimension_numbers = #tpu.dot_dimension_numbers<[1], [0], [0], [1], [0, 0, 1, 1], [], []>} : vector<1x128xf32>, vector<128x128xf32>, vector<1x128xf32> -> vector<1x128xf32>
    %c0_90 = arith.constant 0 : index
    %c0_91 = arith.constant 0 : index
    %114 = vector.load %arg8[%c0_90, %c0_91] : memref<128x128xf32, #tpu.memory_space<vmem>>, vector<128x128xf32>
    %cst_92 = arith.constant dense<0.000000e+00> : vector<1x128xf32>
    %115 = tpu.matmul %111, %114, %cst_92 {dimension_numbers = #tpu.dot_dimension_numbers<[1], [0], [0], [1], [0, 0, 1, 1], [], []>} : vector<1x128xf32>, vector<128x128xf32>, vector<1x128xf32> -> vector<1x128xf32>
    %cst_93 = arith.constant 7.812500e-03 : f32
    %116 = vector.broadcast %cst_93 : f32 to vector<1x128xf32>
    %117 = arith.mulf %113, %116 : vector<1x128xf32>
    %cst_94 = arith.constant 7.812500e-03 : f32
    %118 = vector.broadcast %cst_94 : f32 to vector<1x128xf32>
    %119 = arith.mulf %115, %118 : vector<1x128xf32>
    %120 = arith.mulf %117, %117 : vector<1x128xf32>
    %121 = arith.subf %119, %120 : vector<1x128xf32>
    %cst_95 = arith.constant 9.99999974E-6 : f32
    %122 = vector.broadcast %cst_95 : f32 to vector<1x128xf32>
    %123 = arith.addf %121, %122 : vector<1x128xf32>
    %124 = math.rsqrt %123 : vector<1x128xf32>
    %125 = vector.broadcast %117 : vector<1x128xf32> to vector<18x128xf32>
    %126 = arith.subf %91, %125 : vector<18x128xf32>
    %127 = vector.broadcast %124 : vector<1x128xf32> to vector<18x128xf32>
    %128 = arith.mulf %126, %127 : vector<18x128xf32>
    %129 = vector.broadcast %92 : vector<1x128xf32> to vector<18x128xf32>
    %130 = arith.mulf %128, %129 : vector<18x128xf32>
    %131 = vector.broadcast %93 : vector<1x128xf32> to vector<18x128xf32>
    %132 = arith.addf %130, %131 : vector<18x128xf32>
    %cst_96 = arith.constant 0.000000e+00 : f32
    %133 = vector.broadcast %cst_96 : f32 to vector<18x128xf32>
    %134 = arith.maximumf %132, %133 : vector<18x128xf32>
    %135 = vector.extract_strided_slice %134 {offsets = [0, 0], sizes = [8, 128], strides = [1, 1]} : vector<18x128xf32> to vector<8x128xf32>
    %c0_97 = arith.constant 0 : index
    %c0_98 = arith.constant 0 : index
    %136 = vector.load %arg13[%c0_97, %c0_98] : memref<16x128xf32, #tpu.memory_space<vmem>>, vector<8x128xf32>
    tpu.vector_store %arg13[%c0_97, %c0_98], %135 {strides = array<i32>} : memref<16x128xf32, #tpu.memory_space<vmem>>, vector<8x128xf32>,
    %137 = vector.extract_strided_slice %134 {offsets = [10, 0], sizes = [8, 128], strides = [1, 1]} : vector<18x128xf32> to vector<8x128xf32>
    %c8_99 = arith.constant 8 : index
    %c0_100 = arith.constant 0 : index
    %138 = vector.load %arg13[%c8_99, %c0_100] : memref<16x128xf32, #tpu.memory_space<vmem>>, vector<8x128xf32>
    tpu.vector_store %arg13[%c8_99, %c0_100], %137 {strides = array<i32>} : memref<16x128xf32, #tpu.memory_space<vmem>>, vector<8x128xf32>,
    %c0_101 = arith.constant 0 : index
    %c0_102 = arith.constant 0 : index
    %139 = vector.load %arg9[%c0_101, %c0_102] : memref<8x18xf32, #tpu.memory_space<vmem>>, vector<8x18xf32>
    %cst_103 = arith.constant dense<0.000000e+00> : vector<8x128xf32>
    %140 = tpu.matmul %139, %134, %cst_103 {dimension_numbers = #tpu.dot_dimension_numbers<[1], [0], [0], [1], [0, 0, 1, 1], [], []>} : vector<8x18xf32>, vector<18x128xf32>, vector<8x128xf32> -> vector<8x128xf32>
    %c0_104 = arith.constant 0 : index
    %c0_105 = arith.constant 0 : index
    %141 = vector.load %arg10[%c0_104, %c0_105] : memref<8x18xf32, #tpu.memory_space<vmem>>, vector<8x18xf32>
    %cst_106 = arith.constant dense<0.000000e+00> : vector<8x128xf32>
    %142 = tpu.matmul %141, %134, %cst_106 {dimension_numbers = #tpu.dot_dimension_numbers<[1], [0], [0], [1], [0, 0, 1, 1], [], []>} : vector<8x18xf32>, vector<18x128xf32>, vector<8x128xf32> -> vector<8x128xf32>
    %143 = arith.maximumf %140, %142 : vector<8x128xf32>
    %c0_107 = arith.constant 0 : index
    %c0_108 = arith.constant 0 : index
    %144 = vector.load %arg11[%c0_107, %c0_108] : memref<128x64xf32, #tpu.memory_space<vmem>>, vector<128x64xf32>
    %cst_109 = arith.constant dense<0.000000e+00> : vector<8x64xf32>
    %145 = tpu.matmul %143, %144, %cst_109 {dimension_numbers = #tpu.dot_dimension_numbers<[1], [0], [0], [1], [0, 0, 1, 1], [], []>} : vector<8x128xf32>, vector<128x64xf32>, vector<8x64xf32> -> vector<8x64xf32>
    %c0_110 = arith.constant 0 : index
    %c0_111 = arith.constant 0 : index
    %146 = vector.load %arg12[%c0_110, %c0_111] : memref<128x64xf32, #tpu.memory_space<vmem>>, vector<128x64xf32>
    %cst_112 = arith.constant dense<0.000000e+00> : vector<8x64xf32>
    %147 = tpu.matmul %143, %146, %cst_112 {dimension_numbers = #tpu.dot_dimension_numbers<[1], [0], [0], [1], [0, 0, 1, 1], [], []>} : vector<8x128xf32>, vector<128x64xf32>, vector<8x64xf32> -> vector<8x64xf32>
    %148 = arith.maximumf %145, %147 : vector<8x64xf32>
    %c0_113 = arith.constant 0 : index
    %c0_114 = arith.constant 0 : index
    %149 = vector.load %arg14[%c0_113, %c0_114] : memref<8x64xf32, #tpu.memory_space<vmem>>, vector<8x64xf32>
    tpu.vector_store %arg14[%c0_113, %c0_114], %148 {strides = array<i32>} : memref<8x64xf32, #tpu.memory_space<vmem>>, vector<8x64xf32>,
    return
  }
  func.func @transform_0(%arg0: i32) -> (i32, i32) {
    %c0_i32 = arith.constant 0 : i32
    %c0_i32_0 = arith.constant 0 : i32
    %c0_i32_1 = arith.constant 0 : i32
    return %c0_i32, %c0_i32_0 : i32, i32
  }
  func.func @transform_1(%arg0: i32) -> (i32, i32, i32) {
    %c0_i32 = arith.constant 0 : i32
    %c0_i32_0 = arith.constant 0 : i32
    %c0_i32_1 = arith.constant 0 : i32
    %c0_i32_2 = arith.constant 0 : i32
    return %c0_i32, %c0_i32_0, %c0_i32_1 : i32, i32, i32
  }
  func.func @transform_2(%arg0: i32) -> (i32, i32) {
    %c0_i32 = arith.constant 0 : i32
    %c0_i32_0 = arith.constant 0 : i32
    %c0_i32_1 = arith.constant 0 : i32
    return %c0_i32, %c0_i32_0 : i32, i32
  }
  func.func @transform_3(%arg0: i32) -> (i32, i32) {
    %c0_i32 = arith.constant 0 : i32
    %c0_i32_0 = arith.constant 0 : i32
    %c0_i32_1 = arith.constant 0 : i32
    return %c0_i32, %c0_i32_0 : i32, i32
  }
  func.func @transform_4(%arg0: i32) -> (i32, i32, i32) {
    %c0_i32 = arith.constant 0 : i32
    %c0_i32_0 = arith.constant 0 : i32
    %c0_i32_1 = arith.constant 0 : i32
    %c0_i32_2 = arith.constant 0 : i32
    return %c0_i32, %c0_i32_0, %c0_i32_1 : i32, i32, i32
  }
  func.func @transform_5(%arg0: i32) -> (i32, i32) {
    %c0_i32 = arith.constant 0 : i32
    %c0_i32_0 = arith.constant 0 : i32
    %c0_i32_1 = arith.constant 0 : i32
    return %c0_i32, %c0_i32_0 : i32, i32
  }
  func.func @transform_6(%arg0: i32) -> (i32, i32) {
    %c0_i32 = arith.constant 0 : i32
    %c0_i32_0 = arith.constant 0 : i32
    %c0_i32_1 = arith.constant 0 : i32
    return %c0_i32, %c0_i32_0 : i32, i32
  }
  func.func @transform_7(%arg0: i32) -> (i32, i32) {
    %c0_i32 = arith.constant 0 : i32
    %c0_i32_0 = arith.constant 0 : i32
    %c0_i32_1 = arith.constant 0 : i32
    return %c0_i32, %c0_i32_0 : i32, i32
  }
  func.func @transform_8(%arg0: i32) -> (i32, i32) {
    %c0_i32 = arith.constant 0 : i32
    %c0_i32_0 = arith.constant 0 : i32
    %c0_i32_1 = arith.constant 0 : i32
    return %c0_i32, %c0_i32_0 : i32, i32
  }
  func.func @transform_9(%arg0: i32) -> (i32, i32) {
    %c0_i32 = arith.constant 0 : i32
    %c0_i32_0 = arith.constant 0 : i32
    %c0_i32_1 = arith.constant 0 : i32
    return %c0_i32, %c0_i32_0 : i32, i32
  }
  func.func @transform_10(%arg0: i32) -> (i32, i32) {
    %c0_i32 = arith.constant 0 : i32
    %c0_i32_0 = arith.constant 0 : i32
    %c0_i32_1 = arith.constant 0 : i32
    return %c0_i32, %c0_i32_0 : i32, i32
  }
  func.func @transform_11(%arg0: i32) -> (i32, i32) {
    %c0_i32 = arith.constant 0 : i32
    %c0_i32_0 = arith.constant 0 : i32
    %c0_i32_1 = arith.constant 0 : i32
    return %c0_i32, %c0_i32_0 : i32, i32
  }
  func.func @transform_12(%arg0: i32) -> (i32, i32) {
    %c0_i32 = arith.constant 0 : i32
    %c0_i32_0 = arith.constant 0 : i32
    %c0_i32_1 = arith.constant 0 : i32
    return %c0_i32, %c0_i32_0 : i32, i32
  }
  func.func @transform_13(%arg0: i32) -> (i32, i32) {
    %c0_i32 = arith.constant 0 : i32
    %c0_i32_0 = arith.constant 0 : i32
    %c0_i32_1 = arith.constant 0 : i32
    return %c0_i32, %c0_i32_0 : i32, i32
  }
}

module attributes {stable_mosaic.version = 11 : i64} {
  func.func @_mlp_kernel(%arg0: i32, %arg1: memref<2x128xf32, #tpu.memory_space<vmem>>, %arg2: memref<128x128xbf16, #tpu.memory_space<vmem>>, %arg3: memref<1x128xf32, #tpu.memory_space<vmem>>, %arg4: memref<128x128xbf16, #tpu.memory_space<vmem>>, %arg5: memref<1x128xf32, #tpu.memory_space<vmem>>, %arg6: memref<2x128xf32, #tpu.memory_space<vmem>>) attributes {dimension_semantics = [#tpu.dimension_semantics<arbitrary>], iteration_bounds = array<i64: 1>, scalar_prefetch = 0 : i64, scratch_operands = 0 : i64, tpu.core_type = #tpu.core_type<tc>, window_params = [{pipeline_mode = #tpu.pipeline_mode<synchronous>, transform_indices = @transform_0, window_bounds = array<i64: 2, 128>}, {pipeline_mode = #tpu.pipeline_mode<synchronous>, transform_indices = @transform_1, window_bounds = array<i64: 128, 128>}, {pipeline_mode = #tpu.pipeline_mode<synchronous>, transform_indices = @transform_2, window_bounds = array<i64: 1, 128>}, {pipeline_mode = #tpu.pipeline_mode<synchronous>, transform_indices = @transform_3, window_bounds = array<i64: 128, 128>}, {pipeline_mode = #tpu.pipeline_mode<synchronous>, transform_indices = @transform_4, window_bounds = array<i64: 1, 128>}, {pipeline_mode = #tpu.pipeline_mode<synchronous>, transform_indices = @transform_5, window_bounds = array<i64: 2, 128>}]} {
    %c0 = arith.constant 0 : index
    %c0_0 = arith.constant 0 : index
    %0 = vector.load %arg1[%c0, %c0_0] : memref<2x128xf32, #tpu.memory_space<vmem>>, vector<2x128xf32>
    %1 = arith.truncf %0 : vector<2x128xf32> to vector<2x128xbf16>
    %c0_1 = arith.constant 0 : index
    %c0_2 = arith.constant 0 : index
    %2 = vector.load %arg2[%c0_1, %c0_2] : memref<128x128xbf16, #tpu.memory_space<vmem>>, vector<128x128xbf16>
    %cst = arith.constant dense<0.000000e+00> : vector<2x128xf32>
    %3 = tpu.matmul %1, %2, %cst {dimension_numbers = #tpu.dot_dimension_numbers<[1], [0], [0], [1], [0, 0, 1, 1], [], []>} : vector<2x128xbf16>, vector<128x128xbf16>, vector<2x128xf32> -> vector<2x128xf32>
    %c0_3 = arith.constant 0 : index
    %c0_4 = arith.constant 0 : index
    %4 = vector.load %arg3[%c0_3, %c0_4] : memref<1x128xf32, #tpu.memory_space<vmem>>, vector<1x128xf32>
    %5 = vector.broadcast %4 : vector<1x128xf32> to vector<2x128xf32>
    %6 = arith.addf %3, %5 : vector<2x128xf32>
    %cst_5 = arith.constant 0.000000e+00 : f32
    %7 = vector.broadcast %cst_5 : f32 to vector<2x128xf32>
    %8 = arith.maximumf %6, %7 : vector<2x128xf32>
    %9 = arith.truncf %8 : vector<2x128xf32> to vector<2x128xbf16>
    %c0_6 = arith.constant 0 : index
    %c0_7 = arith.constant 0 : index
    %10 = vector.load %arg4[%c0_6, %c0_7] : memref<128x128xbf16, #tpu.memory_space<vmem>>, vector<128x128xbf16>
    %cst_8 = arith.constant dense<0.000000e+00> : vector<2x128xf32>
    %11 = tpu.matmul %9, %10, %cst_8 {dimension_numbers = #tpu.dot_dimension_numbers<[1], [0], [0], [1], [0, 0, 1, 1], [], []>} : vector<2x128xbf16>, vector<128x128xbf16>, vector<2x128xf32> -> vector<2x128xf32>
    %c0_9 = arith.constant 0 : index
    %c0_10 = arith.constant 0 : index
    %12 = vector.load %arg5[%c0_9, %c0_10] : memref<1x128xf32, #tpu.memory_space<vmem>>, vector<1x128xf32>
    %13 = vector.broadcast %12 : vector<1x128xf32> to vector<2x128xf32>
    %14 = arith.addf %11, %13 : vector<2x128xf32>
    %c0_11 = arith.constant 0 : index
    %c0_12 = arith.constant 0 : index
    %15 = vector.load %arg6[%c0_11, %c0_12] : memref<2x128xf32, #tpu.memory_space<vmem>>, vector<2x128xf32>
    tpu.vector_store %arg6[%c0_11, %c0_12], %14 {strides = array<i32>} : memref<2x128xf32, #tpu.memory_space<vmem>>, vector<2x128xf32>,
    return
  }
  func.func @transform_0(%arg0: i32) -> (i32, i32) {
    %c0_i32 = arith.constant 0 : i32
    %c0_i32_0 = arith.constant 0 : i32
    %c0_i32_1 = arith.constant 0 : i32
    return %c0_i32, %c0_i32_0 : i32, i32
  }
  func.func @transform_1(%arg0: i32) -> (i32, i32) {
    %c0_i32 = arith.constant 0 : i32
    %c0_i32_0 = arith.constant 0 : i32
    %c0_i32_1 = arith.constant 0 : i32
    return %c0_i32, %c0_i32_0 : i32, i32
  }
  func.func @transform_2(%arg0: i32) -> (i32, i32) {
    %c0_i32 = arith.constant 0 : i32
    %c0_i32_0 = arith.constant 0 : i32
    %c0_i32_1 = arith.constant 0 : i32
    return %c0_i32, %c0_i32_0 : i32, i32
  }
  func.func @transform_3(%arg0: i32) -> (i32, i32) {
    %c0_i32 = arith.constant 0 : i32
    %c0_i32_0 = arith.constant 0 : i32
    %c0_i32_1 = arith.constant 0 : i32
    return %c0_i32, %c0_i32_0 : i32, i32
  }
  func.func @transform_4(%arg0: i32) -> (i32, i32) {
    %c0_i32 = arith.constant 0 : i32
    %c0_i32_0 = arith.constant 0 : i32
    %c0_i32_1 = arith.constant 0 : i32
    return %c0_i32, %c0_i32_0 : i32, i32
  }
  func.func @transform_5(%arg0: i32) -> (i32, i32) {
    %c0_i32 = arith.constant 0 : i32
    %c0_i32_0 = arith.constant 0 : i32
    %c0_i32_1 = arith.constant 0 : i32
    return %c0_i32, %c0_i32_0 : i32, i32
  }
}

</mosaic_0001>

<bundles_post_ra>
// kernel: encoder_projection_forward.7
= control target key start
LH: loop header
LB: loop body
LE: loop exit
PB: predicated region body
PF: predicated region fallthrough
CT: control target
= control target key end

     0   :  { %v382_v1 = vmov 0.0   ;;  %vm383_vm0 = vmmov 0   ;;  %s484_s0 = inlined_call_operand.vmem [shape: f32[2,128], index: 0, kind: input, shape index: {}]   ;;  %s485_s1 = inlined_call_operand.vmem [shape: bf16[128,128], index: 1, kind: input, shape index: {}]   ;;  %s486_s2 = inlined_call_operand.vmem [shape: f32[1,128], index: 2, kind: input, shape index: {}]   ;;  %s487_s3 = inlined_call_operand.vmem [shape: bf16[128,128], index: 3, kind: input, shape index: {}]   ;;  %s488_s4 = inlined_call_operand.vmem [shape: f32[1,128], index: 4, kind: input, shape index: {}]   ;;  %s489_s5 = inlined_call_operand.hbm [shape: f32[2,128], index: 5, kind: output, shape index: {}]  }
   0x1   :  { %v342_v0 = vld [vmem:[%s485_s1] sm:$0xff]   ;;  %299 = vmatprep.subr.bf16.mxu0 %v382_v1  ;;  %319 = vmatprep.subr.bf16.mxu1 %v382_v1  ;;  %v343_v2 = vld [vmem:[%s485_s1 + $0x8] sm:$0xff]   ;;  %v344_v3 = vld [vmem:[%s485_s1 + $0x10] sm:$0xff]  }
   0x2   :  { %300 = vmatpush3.bf16.msra.mxu0 %v342_v0  ;;  %315 = vmatprep.mubr.msk.bf16.mxu0 %vm383_vm0, %v382_v1  ;;  %v350_v4 = vld [vmem:[%s487_s3] sm:$0xff]   ;;  %v345_v5 = vld [vmem:[%s485_s1 + $0x18] sm:$0xff]   ;;  %v351_v6 = vld [vmem:[%s487_s3 + $0x8] sm:$0xff]  }
   0x3   :  { %301 = vmatprep.subr.bf16.mxu0 %v382_v1  ;;  %335 = vmatprep.mubr.msk.bf16.mxu1 %vm383_vm0, %v382_v1  ;;  %v346_v7 = vld [vmem:[%s485_s1 + $0x20] sm:$0xff]   ;;  %v352_v8 = vld [vmem:[%s487_s3 + $0x10] sm:$0xff]  }
   0x4   :  { %320 = vmatpush3.bf16.msra.mxu1 %v350_v4 }
   0x5   :  { %321 = vmatprep.subr.bf16.mxu1 %v382_v1 }
   0x6   :  { %302 = vmatpush3.bf16.msra.mxu0 %v343_v2 }
   0x7   :  { %303 = vmatprep.subr.bf16.mxu0 %v382_v1 }
   0x8   :  { %322 = vmatpush3.bf16.msra.mxu1 %v351_v6 }
   0x9   :  { %323 = vmatprep.subr.bf16.mxu1 %v382_v1 }
   0xa   :  { %304 = vmatpush3.bf16.msra.mxu0 %v344_v3 }
   0xb   :  { %305 = vmatprep.subr.bf16.mxu0 %v382_v1 }
   0xe   :  { %306 = vmatpush3.bf16.msra.mxu0 %v345_v5 }
   0xf   :  { %307 = vmatprep.subr.bf16.mxu0 %v382_v1 }
  0x10   :  { %10 = vsyncpa [#allocation3], 0  ;;  %v347_v9 = vld [vmem:[%s485_s1 + $0x28] sm:$0xff]   ;;  %324 = vmatpush3.bf16.msra.mxu1 %v352_v8  ;;  %v353_v10 = vld [vmem:[%s487_s3 + $0x18] sm:$0xff]   ;;  %s384_s29 = smov [#allocation2]  }
  0x11   :  { %325 = vmatprep.subr.bf16.mxu1 %v382_v1  ;;  %v348_v11 = vld [vmem:[%s485_s1 + $0x30] sm:$0xff]   ;;  %v354_v12 = vld [vmem:[%s487_s3 + $0x20] sm:$0xff]   ;;  %v349_v13 = vld [vmem:[%s485_s1 + $0x38] sm:$0xff]   ;;  %s255_s30 = sshll.u32 %s384_s29, 4  ;;  %s256_s30 = int_to_ptr.vmem [resolvable:$true] %s255_s30 }
  0x12   :  { %308 = vmatpush3.bf16.msra.mxu0 %v346_v7  ;;  %v22_v14 = vld [vmem:[%s484_s0] sm:$0x3]  ;;  %v355_v15 = vld [vmem:[%s487_s3 + $0x28] sm:$0xff]   ;;  %v356_v17 = vld [vmem:[%s487_s3 + $0x30] sm:$0xff]   ;;  %p363_p1 = scmp.lt.s32.totalorder %s256_s30, %s256_s30 }
  0x13   :  { %309 = vmatprep.subr.bf16.mxu0 %v382_v1  ;;  %v23_v16 = vpack.c.bf16 %v22_v14, %v22_v14  ;;  %v357_v18 = vld [vmem:[%s487_s3 + $0x38] sm:$0xff]   ;;  %v263_v19 = vld [vmem:[%s486_s2] ss:$0 sm:$0xff]  ;;  %s358_s2 = scalar_lea.vmem %s256_s30, 32 }
  0x14   :  { %326 = vmatpush3.bf16.msra.mxu1 %v353_v10  ;;  %v272_v27 = vld [vmem:[%s488_s4] ss:$0 sm:$0xff]  ;;  %p359_p0 = scmp.ne.s32.totalorder %s256_s30, %s358_s2  ;;  %p364_p2 = scmp.lt.s32.totalorder %s358_s2, %s358_s2 }
  0x15   :  { %327 = vmatprep.subr.bf16.mxu1 %v382_v1 }
  0x16   :  { %310 = vmatpush3.bf16.msra.mxu0 %v347_v9  ;;  %p365_p3 = por %p364_p2, %p363_p1 }
  0x17   :  { %311 = vmatprep.subr.bf16.mxu0 %v382_v1 }
  0x18   :  { %328 = vmatpush3.bf16.msra.mxu1 %v354_v12  ;;  %p366_p4 = pnand %p365_p3, %p359_p0 }
  0x19   :  { %329 = vmatprep.subr.bf16.mxu1 %v382_v1 }
  0x1a   :  { %312 = vmatpush3.bf16.msra.mxu0 %v348_v11 }
  0x1b   :  { %313 = vmatprep.subr.bf16.mxu0 %v382_v1 }
  0x1c   :  { %330 = vmatpush3.bf16.msra.mxu1 %v355_v15 }
  0x1d   :  { %331 = vmatprep.subr.bf16.mxu1 %v382_v1 }
  0x1e   :  { %314 = vmatpush3.bf16.msra.mxu0 %v349_v13 }
  0x20   :  { %332 = vmatpush3.bf16.msra.mxu1 %v356_v17 }
  0x21   :  { %316 = vmatmul.mubr.bf16.vlgmr.msra.gmra.mrb[0].mxu0 %v23_v16  ;;  %333 = vmatprep.subr.bf16.mxu1 %v382_v1 }
  0x24   :  { %334 = vmatpush3.bf16.msra.mxu1 %v357_v18 }
  0xf4   :  { %v129_v20 = vpop.f32.mrb[0].mxu0 }
  0xf5   :  { %v130_v21 = vadd.f32 %v263_v19, %v129_v20  ;;  %v317_v22 = vpop.f32.mrb[1].mxu0 }
  0xf6   :  { %v132_v23 = vpop.f32.mrb[2].mxu0 }
  0xf7   :  { %v135_v24 = vmax.f32 %v130_v21, 0.0  ;;  %v318_v25 = vpop.f32.mrb[3].mxu0 }
  0xf9   :  { %v136_v26 = vpack.c.bf16 %v135_v24, %v135_v24 }
  0xfb   :  { %336 = vmatmul.mubr.bf16.vlgmr.msra.gmra.mrb[0].mxu1 %v136_v26 }
 0x1ce   :  { %v242_v28 = vpop.f32.mrb[0].mxu1 }
 0x1cf   :  { %v243_v29 = vadd.f32 %v272_v27, %v242_v28  ;;  %v337_v30 = vpop.f32.mrb[1].mxu1 }
 0x1d0   :  { %v245_v31 = vpop.f32.mrb[2].mxu1 }
 0x1d1   :  { %248 = vst [vmem:[#allocation2] sm:$0x3] %v243_v29  ;;  %v338_v32 = vpop.f32.mrb[3].mxu1 }
 0x1d2   :  { %369 = shalt.err (!%p366_p4)
}
 0x1d3   :  { %s370_s4 = scalar_lea.hbm %s489_s5, 32 }
 0x1d4   :  { %p371_p5 = scmp.ne.s32.totalorder %s489_s5, %s370_s4  ;;  %p374_p6 = scmp.lt.u32.totalorder %s370_s4, %s489_s5 }
 0x1d6   :  { %p376_p7 = pnand %p374_p6, %p371_p5 }
 0x1d8   :  { %379 = shalt.err (!%p376_p7)
}
 0x1d9   :  { %258 = dma.vmem_to_hbm [thread:$0]  %s256_s30, 32, %s489_s5, [#allocation3]  }
 0x1da   :  { %380 = dma.done.wait [#allocation3], 32  }
 0x1db   :  { %381 = vsyncadd [#allocation3], 4294967264 }
 0x1dc   :  { %262 = vsyncpa [#allocation3], 1 }

// kernel: encoder_projection_forward.6
= control target key start
LH: loop header
LB: loop body
LE: loop exit
PB: predicated region body
PF: predicated region fallthrough
CT: control target
= control target key end

     0   :  { %v2394_v0 = vmov 0.0   ;;  %vm2395_vm0 = vmmov 0   ;;  %vm44_vm1 = vcmask 516096   ;;  %vm45_vm2 = vsmask.f32 256  ;;  %s2987_s1 = inlined_call_operand.vmem [shape: bf16[3,64,128], index: 1, kind: input, shape index: {}]   ;;  %s2988_s0 = inlined_call_operand.vmem [shape: f32[8,64], index: 0, kind: input, shape index: {}]   ;;  %s2989_s7 = inlined_call_operand.vmem [shape: f32[128,128], index: 7, kind: input, shape index: {}]   ;;  %s2990_s4 = inlined_call_operand.vmem [shape: bf16[3,128,128], index: 4, kind: input, shape index: {}]   ;;  %s2991_s2 = inlined_call_operand.vmem [shape: f32[1,128], index: 2, kind: input, shape index: {}]   ;;  %s2992_s3 = inlined_call_operand.vmem [shape: f32[1,128], index: 3, kind: input, shape index: {}]   ;;  %s2993_s11 = inlined_call_operand.vmem [shape: f32[128,64], index: 11, kind: input, shape index: {}]   ;;  %s2994_s5 = inlined_call_operand.vmem [shape: f32[1,128], index: 5, kind: input, shape index: {}]   ;;  %s2995_s6 = inlined_call_operand.vmem [shape: f32[1,128], index: 6, kind: input, shape index: {}]   ;;  %s2996_s12 = inlined_call_operand.vmem [shape: f32[8,128], index: 12, kind: output, shape index: {0}]   ;;  %s2997_s8 = inlined_call_operand.vmem [shape: f32[4,10], index: 8, kind: input, shape index: {}]   ;;  %s2998_s10 = inlined_call_operand.vmem [shape: f32[128,64], index: 10, kind: input, shape index: {}]   ;;  %s2999_s9 = inlined_call_operand.vmem [shape: f32[4,10], index: 9, kind: input, shape index: {}]   ;;  %s3000_s13 = inlined_call_operand.vmem [shape: f32[4,64], index: 13, kind: output, shape index: {1}]  }
   0x1   :  { %1856 = vmatprep.subr.bf16.mxu0 %v2394_v0  ;;  %v2348_v1 = vld [vmem:[%s2987_s1 + $0x20] sm:$0xff]   ;;  %1864 = vmatprep.mubr.msk.bf16.mxu0 %vm2395_vm0, %v2394_v0  ;;  %v2349_v2 = vld [vmem:[%s2987_s1 + $0x28] sm:$0xff]   ;;  %vm50_vm3 = vcmask 518146   ;;  %vm75_vm4 = vcmask 519171   ;;  %vm46_vm5 = vmand %vm44_vm1, %vm45_vm2  ;;  %vm51_vm6 = vsmask.f32 7946 }
   0x2   :  { %1924 = vmatprep.mubr.msk.f32.mxu1 %vm2395_vm0, %v2394_v0  ;;  %1857 = vmatpush3.bf16.msra.mxu0 %v2348_v1  ;;  %v47_v3 = vld [vmem:[#allocation2] sm:$0x1]  ;;  %v53_v4 = vld [vmem:[#allocation2] sm:$0x4]  ;;  %vm52_vm7 = vmand %vm50_vm3, %vm51_vm6  ;;  %vm70_vm8 = vsmask.f32 2306 }
   0x3   :  { %1858 = vmatprep.subr.bf16.mxu0 %v2394_v0  ;;  %v48_v5 = vsel %vm46_vm5, 0, %v47_v3  ;;  %v56_v6 = vld [vmem:[%s2988_s0] sm:$0xf]  ;;  %vm81_vm9 = vcmask 517121   ;;  %v2350_v7 = vld [vmem:[%s2987_s1 + $0x30] sm:$0xff]   ;;  %v54_v8 = vsel %vm52_vm7, 0, %v53_v4 }
   0x4   :  { %49 = vst [vmem:[#allocation2] sm:$0x1] %v48_v5  ;;  %v1702_v9 = vpack.c.bf16 %v56_v6, %v56_v6  ;;  %vm76_vm10 = vsmask.f32 3328  ;;  %v78_v10 = vld [vmem:[#allocation2] sm:$0x8] }
   0x5   :  { %55 = vst [vmem:[#allocation2] sm:$0x4] %v54_v8  ;;  %vm77_vm11 = vmand %vm75_vm4, %vm76_vm10  ;;  %vm82_vm12 = vsmask.f32 7942  ;;  %v84_v11 = vld [vmem:[#allocation2 + $0x4] sm:$0x2] }
   0x6   :  { %1859 = vmatpush3.bf16.msra.mxu0 %v2349_v2  ;;  %v87_v12 = vld [vmem:[%s2988_s0 + $0x4] sm:$0xf]  ;;  %v62_v13 = vshrl.u32 %v1702_v9, 16  ;;  %v65_v14 = vshll.u32 %v1702_v9, 16  ;;  %v79_v15 = vsel %vm77_vm11, 0, %v78_v10  ;;  %vm83_vm13 = vmand %vm81_vm9, %vm82_vm12  ;;  %vm69_vm14 = vcmask 518144  }
   0x7   :  { %1860 = vmatprep.subr.bf16.mxu0 %v2394_v0  ;;  %v1703_v16 = vpack.c.bf16 %v87_v12, %v87_v12  ;;  %80 = vst [vmem:[#allocation2] sm:$0x8] %v79_v15  ;;  %v85_v17 = vsel %vm83_vm13, 0, %v84_v11  ;;  %vm103_vm15 = vsmask.f32 7950  ;;  %v2351_v18 = vld [vmem:[%s2987_s1 + $0x38] sm:$0xff]   ;;  %vm71_vm5 = vmand %vm69_vm14, %vm70_vm8 }
   0x8   :  { %vm109_vm1 = vsmask.f32 1280  ;;  %v64_v19 = vrot.slane %v62_v13, 7  ;;  %86 = vst [vmem:[#allocation2 + $0x4] sm:$0x2] %v85_v17  ;;  %vm108_vm3 = vcmask 517120   ;;  %vm104_vm7 = vmand %vm75_vm4, %vm103_vm15 }
   0x9   :  { %v93_v20 = vshll.u32 %v1703_v16, 16  ;;  %v96_v21 = vshrl.u32 %v1703_v16, 16  ;;  %v2396_v25 = vmov 0.0|0.0   ;;  %vm110_vm9 = vmand %vm108_vm3, %vm109_vm1  ;;  %v420_v34 = vld [vmem:[%s2989_s7] sm:$0xff]  ;;  %v421_v35 = vld [vmem:[%s2989_s7 + $0x8] sm:$0xff]  ;;  %vm170_vm4 = vcmask 523264  }
   0xa   :  { %1861 = vmatpush3.bf16.msra.mxu0 %v2350_v7  ;;  %v67_v22 = vor.u32 %v65_v14, %v64_v19  ;;  %2176 = vmatprep.subr.bf16.mxu1 %v2396_v25  ;;  %v422_v36 = vld [vmem:[%s2989_s7 + $0x10] sm:$0xff]  ;;  %v2515_v37 = vpack.c.bf16 %v421_v35, %v420_v34  ;;  %v423_v38 = vld [vmem:[%s2989_s7 + $0x18] sm:$0xff]  ;;  %v424_v40 = vld [vmem:[%s2989_s7 + $0x20] sm:$0xff]  ;;  %vm372_vm11 = vcmask 1043456   ;;  %vm392_vm13 = vcmask 1041408  }
   0xb   :  { %1862 = vmatprep.subr.bf16.mxu0 %v2394_v0  ;;  %v95_v23 = vrot.slane %v93_v20, 5  ;;  %v98_v24 = vrot.slane %v96_v21, 4  ;;  %v2521_v39 = vpack.c.bf16 %v423_v38, %v422_v36  ;;  %v425_v41 = vld [vmem:[%s2989_s7 + $0x28] sm:$0xff]  ;;  %v2353_v49 = vld [vmem:[%s2987_s1] sm:$0xff]   ;;  %v2355_v52 = vld [vmem:[%s2987_s1 + $0x10] sm:$0xff]   ;;  %vm639_vm14 = vcmask 1043459  }
   0xc   :  { %v72_v26 = vld [vmem:[#allocation2] sm:$0x7]  ;;  %2178 = vmatpush3.bf16.msra.mxu1 %v2515_v37  ;;  %v2531_v44 = vpack.c.bf16 %v425_v41, %v424_v40  ;;  %v2354_v51 = vld [vmem:[%s2987_s1 + $0x8] sm:$0xff]   ;;  %v2356_v53 = vld [vmem:[%s2987_s1 + $0x18] sm:$0xff]  }
   0xd   :  { %v99_v27 = vor.u32 %v98_v24, %v95_v23  ;;  %v73_v28 = vsel %vm71_vm5, %v67_v22, %v72_v26  ;;  %2179 = vmatprep.subr.bf16.mxu1 %v2396_v25  ;;  %v2358_v56 = vld [vmem:[%s2987_s1 + $0x40] sm:$0xff]   ;;  %v2359_v57 = vld [vmem:[%s2987_s1 + $0x48] sm:$0xff]   ;;  %v2360_v58 = vld [vmem:[%s2987_s1 + $0x50] sm:$0xff]   ;;  %vm613_vm5 = vcmask 1040384  }
   0xe   :  { %1863 = vmatpush3.bf16.msra.mxu0 %v2351_v18  ;;  %74 = vst [vmem:[#allocation2] sm:$0x7] %v73_v28  ;;  %v105_v30 = vld [vmem:[#allocation2] sm:$0x8]  ;;  %v2361_v61 = vld [vmem:[%s2987_s1 + $0x58] sm:$0xff]   ;;  %v426_v63 = vld [vmem:[%s2989_s7 + $0x30] sm:$0xff] }
   0xf   :  { %1868 = vmatprep.subr.bf16.mxu0 %v2394_v0  ;;  %v100_v29 = vrot.slane %v99_v27, 4  ;;  %v106_v31 = vsel %vm104_vm7, %v95_v23, %v105_v30  ;;  %v111_v32 = vld [vmem:[#allocation2 + $0x4] sm:$0x3]  ;;  %v427_v1 = vld [vmem:[%s2989_s7 + $0x38] sm:$0xff]  ;;  %v429_v4 = vld [vmem:[%s2989_s7 + $0x48] sm:$0xff]  ;;  %vm618_vm7 = vcmask 1042434  }
  0x10   :  { %107 = vst [vmem:[#allocation2] sm:$0x8] %v106_v31  ;;  %2181 = vmatpush3.bf16.msra.mxu1 %v2521_v39  ;;  %v2583_v2 = vpack.c.bf16 %v427_v1, %v426_v63  ;;  %v428_v3 = vld [vmem:[%s2989_s7 + $0x40] sm:$0xff]  ;;  %v430_v6 = vld [vmem:[%s2989_s7 + $0x50] sm:$0xff]  ;;  %v431_v7 = vld [vmem:[%s2989_s7 + $0x58] sm:$0xff] }
  0x11   :  { %v112_v33 = vsel %vm110_vm9, %v100_v29, %v111_v32  ;;  %2182 = vmatprep.subr.bf16.mxu1 %v2396_v25  ;;  %v2593_v5 = vpack.c.bf16 %v429_v4, %v428_v3  ;;  %v2603_v8 = vpack.c.bf16 %v431_v7, %v430_v6  ;;  %v432_v9 = vld [vmem:[%s2989_s7 + $0x60] sm:$0xff]  ;;  %v433_v10 = vld [vmem:[%s2989_s7 + $0x68] sm:$0xff]  ;;  %v434_v12 = vld [vmem:[%s2989_s7 + $0x70] sm:$0xff] }
  0x12   :  { %113 = vst [vmem:[#allocation2 + $0x4] sm:$0x3] %v112_v33  ;;  %v2613_v11 = vpack.c.bf16 %v433_v10, %v432_v9  ;;  %v435_v13 = vld [vmem:[%s2989_s7 + $0x78] sm:$0xff]  ;;  %vm640_vm3 = vmand %vm639_vm14, %vm76_vm10  ;;  %v2364_v1 = vld [vmem:[%s2990_s4 + $0x48] sm:$0xff]  }
  0x13   :  { %v2623_v14 = vpack.c.bf16 %v435_v13, %v434_v12  ;;  %vm614_vm9 = vmand %vm613_vm5, %vm45_vm2  ;;  %v615_v3 = vld [vmem:[#allocation3] sm:$0x1]  ;;  %v620_v4 = vld [vmem:[#allocation3] sm:$0x4]  ;;  %vm651_vm5 = vsmask.f32 4368 }
  0x14   :  { %2184 = vmatpush3.bf16.msra.mxu1 %v2531_v44  ;;  %v616_v6 = vsel %vm614_vm9, 0, %v615_v3  ;;  %vm619_vm10 = vmand %vm618_vm7, %vm51_vm6  ;;  %v646_v7 = vld [vmem:[#allocation3 + $0x4] sm:$0x2]  ;;  %v2365_v10 = vld [vmem:[%s2990_s4 + $0x50] sm:$0xff]   ;;  %vm634_vm6 = vcmask 1042432  }
  0x15   :  { %2185 = vmatprep.subr.bf16.mxu1 %v2396_v25  ;;  %617 = vst [vmem:[#allocation3] sm:$0x1] %v616_v6  ;;  %v621_v9 = vsel %vm619_vm10, 0, %v620_v4  ;;  %v2366_v13 = vld [vmem:[%s2990_s4 + $0x58] sm:$0xff]   ;;  %vm635_vm7 = vmand %vm634_vm6, %vm70_vm8 }
  0x16   :  { %622 = vst [vmem:[#allocation3] sm:$0x4] %v621_v9  ;;  %vm652_vm9 = vmor %vm45_vm2, %vm651_vm5  ;;  %vm2397_vm2 = vmmov 1  }
  0x17   :  { %v114_v42 = vld [vmem:[#allocation2] sm:$0xf]  ;;  %vm2274_vm8 = vmpackc.low %vm392_vm13, %vm2397_vm2 }
  0x18   :  { %v286_v59 = vld [vmem:[#allocation2] sm:$0xe]  ;;  %2187 = vmatpush3.bf16.msra.mxu1 %v2583_v2 }
  0x19   :  { %v124_v43 = vld [vmem:[#allocation2 + $0x4] sm:$0x3]  ;;  %2188 = vmatprep.subr.bf16.mxu1 %v2396_v25 }
  0x1a   :  { %v1607_v45 = vcombine.low %v114_v42, %v124_v43  ;;  %v115_v54 = vld [vmem:[#allocation2 + $0x4] sm:$0x1]  ;;  %v1627_v60 = vcombine.low %v286_v59, %v124_v43 }
  0x1b   :  { %v1613_v55 = vcombine.low %v114_v42, %v115_v54 }
  0x1c   :  { %v140_v46 = vshrl.u32 %v1607_v45, 16  ;;  %v142_v47 = vshll.u32 %v1607_v45, 16  ;;  %v299_v62 = vrot.slane %v1627_v60, 1  ;;  %2190 = vmatpush3.bf16.msra.mxu1 %v2593_v5 }
  0x1d   :  { %2191 = vmatprep.subr.bf16.mxu1 %v2396_v25 }
  0x1e   :  { %v144_v48 = vrot.slane %v142_v47, 1 }
  0x20   :  { %v145_v50 = vor.u32 %v144_v48, %v140_v46  ;;  %2193 = vmatpush3.bf16.msra.mxu1 %v2603_v8 }
  0x21   :  { %2194 = vmatprep.subr.bf16.mxu1 %v2396_v25 }
  0x22   :  { %1865 = vmatmul.mubr.msk.bf16.vlgmr.msra.gmra.mrb[0].mxu0 %vm170_vm4, %v145_v50 }
  0x23   :  { %1869 = vmatpush3.bf16.msra.mxu0 %v2353_v49  ;;  %1876 = vmatprep.mubr.msk.bf16.mxu0 %vm2395_vm0, %v2394_v0 }
  0x24   :  { %1870 = vmatprep.subr.bf16.mxu0 %v2394_v0  ;;  %2196 = vmatpush3.bf16.msra.mxu1 %v2613_v11 }
  0x25   :  { %2197 = vmatprep.subr.bf16.mxu1 %v2396_v25 }
  0x27   :  { %1871 = vmatpush3.bf16.msra.mxu0 %v2354_v51 }
  0x28   :  { %1872 = vmatprep.subr.bf16.mxu0 %v2394_v0  ;;  %2199 = vmatpush3.bf16.msra.mxu1 %v2623_v14 }
  0x29   :  { %2200 = vmatprep.subr.bf16.mxu1 %v2396_v25 }
  0x2b   :  { %1873 = vmatpush3.bf16.msra.mxu0 %v2355_v52 }
  0x2c   :  { %1874 = vmatprep.subr.bf16.mxu0 %v2394_v0 }
  0x2f   :  { %1875 = vmatpush3.bf16.msra.mxu0 %v2356_v53 }
  0x30   :  { %1880 = vmatprep.subr.bf16.mxu0 %v2394_v0 }
  0x32   :  { %1877 = vmatmul.mubr.msk.bf16.vlgmr.msra.gmra.mrb[0].mxu0 %vm170_vm4, %v1613_v55 }
  0x33   :  { %1881 = vmatpush3.bf16.msra.mxu0 %v2358_v56  ;;  %1888 = vmatprep.mubr.msk.bf16.mxu0 %vm2395_vm0, %v2394_v0 }
  0x34   :  { %1882 = vmatprep.subr.bf16.mxu0 %v2394_v0 }
  0x37   :  { %1883 = vmatpush3.bf16.msra.mxu0 %v2359_v57 }
  0x38   :  { %1884 = vmatprep.subr.bf16.mxu0 %v2394_v0 }
  0x3b   :  { %1885 = vmatpush3.bf16.msra.mxu0 %v2360_v58 }
  0x3c   :  { %1886 = vmatprep.subr.bf16.mxu0 %v2394_v0 }
  0x3f   :  { %1887 = vmatpush3.bf16.msra.mxu0 %v2361_v61  ;;  %v2363_v61 = vld [vmem:[%s2990_s4 + $0x40] sm:$0xff]  }
  0x40   :  { %1962 = vmatprep.subr.bf16.mxu0 %v2394_v0 }
  0x42   :  { %1889 = vmatmul.mubr.msk.bf16.vlgmr.msra.gmra.mrb[0].mxu0 %vm170_vm4, %v299_v62  ;;  %v641_v62 = vld [vmem:[#allocation3] sm:$0x8]  ;;  %vm644_vm4 = vcmask 1041409  }
  0x43   :  { %1978 = vmatprep.mubr.msk.bf16.mxu0 %vm2395_vm0, %v2394_v0  ;;  %1963 = vmatpush3.bf16.msra.mxu0 %v2363_v61  ;;  %v642_v63 = vsel %vm640_vm3, 0, %v641_v62  ;;  %vm645_vm3 = vmand %vm644_vm4, %vm82_vm12 }
  0x44   :  { %1964 = vmatprep.subr.bf16.mxu0 %v2394_v0  ;;  %643 = vst [vmem:[#allocation3] sm:$0x8] %v642_v63  ;;  %v647_v12 = vsel %vm645_vm3, 0, %v646_v7  ;;  %vm664_vm12 = vmand %vm639_vm14, %vm103_vm15  ;;  %vm1262_vm15 = vcmask 80896  }
  0x45   :  { %648 = vst [vmem:[#allocation3 + $0x4] sm:$0x2] %v647_v12  ;;  %vm669_vm4 = vmand %vm392_vm13, %vm109_vm1 }
  0x47   :  { %1965 = vmatpush3.bf16.msra.mxu0 %v2364_v1 }
  0x48   :  { %1966 = vmatprep.subr.bf16.mxu0 %v2394_v0 }
  0x4b   :  { %1967 = vmatpush3.bf16.msra.mxu0 %v2365_v10 }
  0x4c   :  { %1968 = vmatprep.subr.bf16.mxu0 %v2394_v0  ;;  %v670_v1 = vld [vmem:[#allocation3 + $0x4] sm:$0x3] }
  0x4f   :  { %1969 = vmatpush3.bf16.msra.mxu0 %v2366_v13 }
  0x50   :  { %1970 = vmatprep.subr.bf16.mxu0 %v2394_v0 }
 0x115   :  { %v2627_v15 = vpop.f32.mrb[0].mxu0 }
 0x116   :  { %v373_v16 = vsel %vm372_vm11, %v2627_v15, 0.0  ;;  %v381_v17 = vmul.f32 %v2627_v15, %v2627_v15  ;;  %v1890_v18 = vpop.f32.mrb[1].mxu0  ;;  %v393_v22 = vrot.slane %v2627_v15, 6 }
 0x117   :  { %v374_v19 = vrot.slane %v373_v16, 4  ;;  %v2633_v20 = vpop.f32.mrb[2].mxu0  ;;  %v2369_v18 = vld [vmem:[%s2990_s4 + $0x70] sm:$0xff]  }
 0x118   :  { %v382_v21 = vsel %vm372_vm11, %v381_v17, 0.0  ;;  %v394_v23 = vrot.slane %v2633_v20, 6  ;;  %v405_v24 = vmul.f32 %v2633_v20, %v2633_v20  ;;  %v1891_v26 = vpop.f32.mrb[3].mxu0  ;;  %v408_v29 = vrot.slane %v381_v17, 6  ;;  %v2368_v17 = vld [vmem:[%s2990_s4 + $0x68] sm:$0xff]  }
 0x119   :  { %v375_v27 = vadd.f32 %v374_v19, %v373_v16  ;;  %v383_v28 = vrot.slane %v382_v21, 4  ;;  %v2367_v16 = vld [vmem:[%s2990_s4 + $0x60] sm:$0xff]   ;;  %v2370_v19 = vld [vmem:[%s2990_s4 + $0x78] sm:$0xff]  }
 0x11a   :  { %v395_v30 = vsel %vm392_vm13, %v393_v22, %v394_v23  ;;  %v409_v31 = vrot.slane %v405_v24, 6  ;;  %1971 = vmatpush3.bf16.msra.mxu0 %v2367_v16 }
 0x11b   :  { %v376_v32 = vrot.slane %v375_v27, 2  ;;  %v384_v33 = vadd.f32 %v383_v28, %v382_v21  ;;  %v397_v34 = vsel %vm372_vm11, %v395_v30, 0.0  ;;  %1972 = vmatprep.subr.bf16.mxu0 %v2394_v0  ;;  %v582_v21 = vlaneseq }
 0x11c   :  { %v398_v35 = vrot.slane %v397_v34, 4  ;;  %v410_v36 = vsel %vm392_vm13, %v408_v29, %v409_v31 }
 0x11d   :  { %v385_v38 = vrot.slane %v384_v33, 2  ;;  %v412_v40 = vsel %vm372_vm11, %v410_v36, 0.0  ;;  %v377_v42 = vadd.f32 %v376_v32, %v375_v27  ;;  %v583_v22 = vshrl.u32 %v582_v21, 7  ;;  %v2374_v21 = vld [vmem:[%s2990_s4 + $0x10] sm:$0xff]  }
 0x11e   :  { %v413_v41 = vrot.slane %v412_v40, 4  ;;  %v399_v43 = vadd.f32 %v398_v35, %v397_v34  ;;  %1973 = vmatpush3.bf16.msra.mxu0 %v2368_v17  ;;  %v2372_v17 = vld [vmem:[%s2990_s4] sm:$0xff]  }
 0x11f   :  { %v386_v45 = vadd.f32 %v385_v38, %v384_v33  ;;  %v378_v49 = vrot.slane %v377_v42, 1  ;;  %1974 = vmatprep.subr.bf16.mxu0 %v2394_v0  ;;  %v2717_v23 = vsub.s32 0, %v583_v22  ;;  %v2375_v22 = vld [vmem:[%s2990_s4 + $0x18] sm:$0xff]  }
 0x120   :  { %v414_v46 = vadd.f32 %v413_v41, %v412_v40  ;;  %v400_v47 = vrot.slane %v399_v43, 2  ;;  %v1633_v41 = vld [vmem:[%s2991_s2] ss:$0 sm:$0xff] }
 0x121   :  { %v387_v52 = vrot.slane %v386_v45, 1  ;;  %v379_v54 = vadd.f32 %v378_v49, %v377_v42 }
 0x122   :  { %v415_v48 = vrot.slane %v414_v46, 2  ;;  %v401_v50 = vadd.f32 %v400_v47, %v399_v43  ;;  %1975 = vmatpush3.bf16.msra.mxu0 %v2369_v18 }
 0x123   :  { %v388_v58 = vadd.f32 %v387_v52, %v386_v45  ;;  %1976 = vmatprep.subr.bf16.mxu0 %v2394_v0  ;;  %v665_v52 = vld [vmem:[#allocation3] sm:$0x8] }
 0x124   :  { %v402_v51 = vrot.slane %v401_v50, 1  ;;  %v416_v53 = vadd.f32 %v415_v48, %v414_v46 }
 0x126   :  { %v403_v55 = vadd.f32 %v402_v51, %v401_v50  ;;  %v417_v56 = vrot.slane %v416_v53, 1  ;;  %1977 = vmatpush3.bf16.msra.mxu0 %v2370_v19  ;;  %v2373_v19 = vld [vmem:[%s2990_s4 + $0x8] sm:$0xff]  }
 0x127   :  { %1982 = vmatprep.subr.bf16.mxu0 %v2394_v0 }
 0x128   :  { %v404_v57 = vadd.f32 %v403_v55, %v379_v54  ;;  %v418_v59 = vadd.f32 %v417_v56, %v416_v53 }
 0x12a   :  { %1925 = vmatmul.mubr.f32.vlgmr.msra.gmra.mrb[0].mxu1 %v404_v57  ;;  %v419_v60 = vadd.f32 %v418_v59, %v388_v58 }
 0x12b   :  { %2202 = vmatpush3.bf16.msra.mxu1 %v2515_v37  ;;  %1959 = vmatprep.mubr.msk.f32.mxu1 %vm2395_vm0, %v2394_v0 }
 0x12c   :  { %2203 = vmatprep.subr.bf16.mxu1 %v2396_v25 }
 0x12f   :  { %2205 = vmatpush3.bf16.msra.mxu1 %v2521_v39 }
 0x130   :  { %2206 = vmatprep.subr.bf16.mxu1 %v2396_v25 }
 0x133   :  { %2208 = vmatpush3.bf16.msra.mxu1 %v2531_v44 }
 0x134   :  { %2209 = vmatprep.subr.bf16.mxu1 %v2396_v25 }
 0x137   :  { %2211 = vmatpush3.bf16.msra.mxu1 %v2583_v2 }
 0x138   :  { %2212 = vmatprep.subr.bf16.mxu1 %v2396_v25 }
 0x13b   :  { %2214 = vmatpush3.bf16.msra.mxu1 %v2593_v5 }
 0x13c   :  { %2215 = vmatprep.subr.bf16.mxu1 %v2396_v25 }
 0x13f   :  { %2217 = vmatpush3.bf16.msra.mxu1 %v2603_v8 }
 0x140   :  { %2218 = vmatprep.subr.bf16.mxu1 %v2396_v25 }
 0x143   :  { %2220 = vmatpush3.bf16.msra.mxu1 %v2613_v11 }
 0x144   :  { %2221 = vmatprep.subr.bf16.mxu1 %v2396_v25 }
 0x147   :  { %2223 = vmatpush3.bf16.msra.mxu1 %v2623_v14 }
 0x148   :  { %2224 = vmatprep.subr.bf16.mxu1 %v2396_v25 }
 0x14a   :  { %1960 = vmatmul.mubr.f32.vlgmr.msra.gmra.mrb[2].mxu1 %v419_v60  ;;  %v636_v60 = vld [vmem:[#allocation3] sm:$0x7] }
 0x14b   :  { %2226 = vmatpush3.bf16.msra.mxu1 %v2515_v37  ;;  %2054 = vmatprep.mubr.msk.f32.mxu1 %vm2395_vm0, %v2394_v0 }
 0x14c   :  { %2227 = vmatprep.subr.bf16.mxu1 %v2396_v25 }
 0x14f   :  { %2229 = vmatpush3.bf16.msra.mxu1 %v2521_v39 }
 0x150   :  { %2230 = vmatprep.subr.bf16.mxu1 %v2396_v25 }
 0x153   :  { %2232 = vmatpush3.bf16.msra.mxu1 %v2531_v44 }
 0x154   :  { %2233 = vmatprep.subr.bf16.mxu1 %v2396_v25 }
 0x157   :  { %2235 = vmatpush3.bf16.msra.mxu1 %v2583_v2 }
 0x158   :  { %2236 = vmatprep.subr.bf16.mxu1 %v2396_v25 }
 0x15b   :  { %2238 = vmatpush3.bf16.msra.mxu1 %v2593_v5 }
 0x15c   :  { %2239 = vmatprep.subr.bf16.mxu1 %v2396_v25 }
 0x15f   :  { %2241 = vmatpush3.bf16.msra.mxu1 %v2603_v8 }
 0x160   :  { %2242 = vmatprep.subr.bf16.mxu1 %v2396_v25 }
 0x163   :  { %2244 = vmatpush3.bf16.msra.mxu1 %v2613_v11 }
 0x164   :  { %2245 = vmatprep.subr.bf16.mxu1 %v2396_v25 }
 0x167   :  { %2247 = vmatpush3.bf16.msra.mxu1 %v2623_v14 }
 0x168   :  { %2248 = vmatprep.subr.bf16.mxu1 %v2396_v25 }
 0x1fd   :  { %v502_v24 = vpop.f32.mrb[0].mxu1 }
 0x1fe   :  { %v576_v26 = vmul.f32 0.03125, %v502_v24  ;;  %v1926_v27 = vpop.f32.mrb[1].mxu1  ;;  %v2376_v24 = vld [vmem:[%s2990_s4 + $0x20] sm:$0xff]  }
 0x1ff   :  { %v2378_v27 = vld [vmem:[%s2990_s4 + $0x30] sm:$0xff]  }
 0x200   :  { %v585_v28 = vrot.slane %v576_v26, %v2717_v23  ;;  %v578_v32 = vmul.f32 %v576_v26, %v576_v26  ;;  %v2377_v26 = vld [vmem:[%s2990_s4 + $0x28] sm:$0xff]  }
 0x202   :  { %v586_v29 = vsub.f32 %v2627_v15, %v585_v28  ;;  %v587_v30 = vsub.f32 %v2633_v20, %v585_v28  ;;  %v1634_v15 = vld [vmem:[%s2992_s3] ss:$0 sm:$0xff]  ;;  %v2379_v28 = vld [vmem:[%s2990_s4 + $0x38] sm:$0xff]  }
 0x21d   :  { %v572_v31 = vpop.f32.mrb[2].mxu1 }
 0x21e   :  { %v577_v33 = vmul.f32 0.03125, %v572_v31  ;;  %v1961_v34 = vpop.f32.mrb[3].mxu1 }
 0x21f   :  { %v2384_v34 = vld [vmem:[%s2990_s4 + $0x98] sm:$0xff]  }
 0x220   :  { %v579_v35 = vsub.f32 %v577_v33, %v578_v32  ;;  %v2382_v32 = vld [vmem:[%s2990_s4 + $0x88] sm:$0xff]   ;;  %v2383_v33 = vld [vmem:[%s2990_s4 + $0x90] sm:$0xff]  }
 0x222   :  { %v580_v36 = vadd.f32 1e-05, %v579_v35  ;;  %v2385_v35 = vld [vmem:[%s2990_s4 + $0xa0] sm:$0xff]  }
 0x224   :  { %2390 = vrsqrt.f32 %v580_v36  ;;  %v2386_v36 = vld [vmem:[%s2990_s4 + $0xa8] sm:$0xff]  }
 0x22e   :  { %v2391_v38 = vpop.eup %2390 }
 0x22f   :  { %v591_v40 = vrot.slane %v2391_v38, %v2717_v23  ;;  %v2387_v38 = vld [vmem:[%s2990_s4 + $0xb0] sm:$0xff]  }
 0x231   :  { %v592_v42 = vmul.f32 %v591_v40, %v586_v29  ;;  %v593_v43 = vmul.f32 %v591_v40, %v587_v30  ;;  %v2381_v30 = vld [vmem:[%s2990_s4 + $0x80] sm:$0xff]  }
 0x233   :  { %v600_v20 = vmul.f32 %v1633_v41, %v592_v42  ;;  %v601_v45 = vmul.f32 %v1633_v41, %v593_v43  ;;  %v2388_v41 = vld [vmem:[%s2990_s4 + $0xb8] sm:$0xff]  }
 0x235   :  { %v608_v46 = vadd.f32 %v1634_v15, %v600_v20  ;;  %v609_v47 = vadd.f32 %v1634_v15, %v601_v45 }
 0x237   :  { %v610_v48 = vmax.f32 %v608_v46, 0.0  ;;  %v611_v49 = vmax.f32 %v609_v47, 0.0 }
 0x239   :  { %v1704_v50 = vpack.c.bf16 %v610_v48, %v610_v48  ;;  %v1705_v51 = vpack.c.bf16 %v611_v49, %v611_v49 }
 0x23b   :  { %v627_v53 = vshrl.u32 %v1704_v50, 16  ;;  %v630_v54 = vshll.u32 %v1704_v50, 16  ;;  %v655_v55 = vshrl.u32 %v1705_v51, 16  ;;  %v658_v58 = vshll.u32 %v1705_v51, 16 }
 0x23d   :  { %v629_v56 = vrot.slane %v627_v53, 7  ;;  %v657_v57 = vrot.slane %v655_v55, 7  ;;  %v666_v59 = vsel %vm664_vm12, %v630_v54, %v665_v52 }
 0x23e   :  { %667 = vst [vmem:[#allocation3] sm:$0x8] %v666_v59 }
 0x23f   :  { %v632_v61 = vor.u32 %v630_v54, %v629_v56  ;;  %v653_v62 = vrot.slane %v629_v56, 4  ;;  %v660_v63 = vor.u32 %v658_v58, %v657_v57 }
 0x241   :  { %v637_v3 = vsel %vm635_vm7, %v632_v61, %v636_v60  ;;  %v661_v4 = vsel %vm652_vm9, %v653_v62, %v660_v63 }
 0x242   :  { %638 = vst [vmem:[#allocation3] sm:$0x7] %v637_v3  ;;  %v671_v6 = vsel %vm669_vm4, %v661_v4, %v670_v1 }
 0x243   :  { %672 = vst [vmem:[#allocation3 + $0x4] sm:$0x3] %v671_v6 }
 0x249   :  { %v673_v7 = vld [vmem:[#allocation3] sm:$0xf] }
 0x24a   :  { %v691_v9 = vld [vmem:[#allocation3 + $0x4] sm:$0x3]  ;;  %v904_v40 = vld [vmem:[#allocation3] sm:$0xe] }
 0x24b   :  { %v1653_v10 = vcombine.low %v673_v7, %v691_v9  ;;  %v674_v29 = vld [vmem:[#allocation3 + $0x4] sm:$0x1]  ;;  %v1687_v42 = vcombine.low %v904_v40, %v691_v9  ;;  %v1510_v40 = vld [vmem:[%s2993_s11 + $0x50] sm:$0xff] }
 0x24c   :  { %v1662_v31 = vcombine.low %v673_v7, %v674_v29 }
 0x24d   :  { %v717_v12 = vshll.u32 %v1653_v10, 16  ;;  %v715_v13 = vshrl.u32 %v1653_v10, 16  ;;  %v925_v43 = vrot.slane %v1687_v42, 1 }
 0x24f   :  { %v719_v16 = vrot.slane %v717_v12, 1 }
 0x251   :  { %v720_v18 = vor.u32 %v719_v16, %v715_v13 }
 0x253   :  { %1979 = vmatmul.mubr.bf16.vlgmr.msra.gmra.mrb[4].mxu0 %v720_v18 }
 0x254   :  { %1983 = vmatpush3.bf16.msra.mxu0 %v2372_v17  ;;  %1998 = vmatprep.mubr.msk.bf16.mxu0 %vm2395_vm0, %v2394_v0 }
 0x255   :  { %1984 = vmatprep.subr.bf16.mxu0 %v2394_v0 }
 0x258   :  { %1985 = vmatpush3.bf16.msra.mxu0 %v2373_v19 }
 0x259   :  { %1986 = vmatprep.subr.bf16.mxu0 %v2394_v0 }
 0x25c   :  { %1987 = vmatpush3.bf16.msra.mxu0 %v2374_v21 }
 0x25d   :  { %1988 = vmatprep.subr.bf16.mxu0 %v2394_v0 }
 0x260   :  { %1989 = vmatpush3.bf16.msra.mxu0 %v2375_v22 }
 0x261   :  { %1990 = vmatprep.subr.bf16.mxu0 %v2394_v0 }
 0x264   :  { %1991 = vmatpush3.bf16.msra.mxu0 %v2376_v24 }
 0x265   :  { %1992 = vmatprep.subr.bf16.mxu0 %v2394_v0 }
 0x268   :  { %1993 = vmatpush3.bf16.msra.mxu0 %v2377_v26 }
 0x269   :  { %1994 = vmatprep.subr.bf16.mxu0 %v2394_v0 }
 0x26c   :  { %1995 = vmatpush3.bf16.msra.mxu0 %v2378_v27 }
 0x26d   :  { %1996 = vmatprep.subr.bf16.mxu0 %v2394_v0 }
 0x270   :  { %1997 = vmatpush3.bf16.msra.mxu0 %v2379_v28 }
 0x271   :  { %2002 = vmatprep.subr.bf16.mxu0 %v2394_v0 }
 0x273   :  { %1999 = vmatmul.mubr.bf16.vlgmr.msra.gmra.mrb[4].mxu0 %v1662_v31 }
 0x274   :  { %2003 = vmatpush3.bf16.msra.mxu0 %v2381_v30  ;;  %2018 = vmatprep.mubr.msk.bf16.mxu0 %vm2395_vm0, %v2394_v0 }
 0x275   :  { %2004 = vmatprep.subr.bf16.mxu0 %v2394_v0 }
 0x278   :  { %2005 = vmatpush3.bf16.msra.mxu0 %v2382_v32  ;;  %v1506_v32 = vld [vmem:[%s2993_s11 + $0x30] sm:$0xff] }
 0x279   :  { %2006 = vmatprep.subr.bf16.mxu0 %v2394_v0 }
 0x27c   :  { %2007 = vmatpush3.bf16.msra.mxu0 %v2383_v33  ;;  %v1507_v33 = vld [vmem:[%s2993_s11 + $0x38] sm:$0xff] }
 0x27d   :  { %2008 = vmatprep.subr.bf16.mxu0 %v2394_v0 }
 0x280   :  { %2009 = vmatpush3.bf16.msra.mxu0 %v2384_v34  ;;  %v2314_v34 = vpack.c.bf16 %v1507_v33, %v1506_v32  ;;  %v1515_v33 = vld [vmem:[%s2993_s11 + $0x78] sm:$0xff] }
 0x281   :  { %2010 = vmatprep.subr.bf16.mxu0 %v2394_v0 }
 0x284   :  { %2011 = vmatpush3.bf16.msra.mxu0 %v2385_v35  ;;  %v1508_v35 = vld [vmem:[%s2993_s11 + $0x40] sm:$0xff] }
 0x285   :  { %2012 = vmatprep.subr.bf16.mxu0 %v2394_v0 }
 0x288   :  { %2013 = vmatpush3.bf16.msra.mxu0 %v2386_v36  ;;  %v1509_v36 = vld [vmem:[%s2993_s11 + $0x48] sm:$0xff] }
 0x289   :  { %2014 = vmatprep.subr.bf16.mxu0 %v2394_v0 }
 0x28c   :  { %2015 = vmatpush3.bf16.msra.mxu0 %v2387_v38  ;;  %v2317_v38 = vpack.c.bf16 %v1509_v36, %v1508_v35 }
 0x28d   :  { %2016 = vmatprep.subr.bf16.mxu0 %v2394_v0 }
 0x290   :  { %2017 = vmatpush3.bf16.msra.mxu0 %v2388_v41  ;;  %v1511_v41 = vld [vmem:[%s2993_s11 + $0x58] sm:$0xff] }
 0x291   :  { %2304 = vmatprep.subr.bf16.mxu0 %v2396_v25  ;;  %v2320_v42 = vpack.c.bf16 %v1511_v41, %v1510_v40 }
 0x293   :  { %2019 = vmatmul.mubr.bf16.vlgmr.msra.gmra.mrb[4].mxu0 %v925_v43 }
 0x294   :  { %2173 = vmatprep.mubr.msk.f32.mxu0 %vm2395_vm0, %v2394_v0 }
 0x366   :  { %v2805_v15 = vpop.f32.mrb[4].mxu0 }
 0x367   :  { %v1020_v20 = vsel %vm372_vm11, %v2805_v15, 0.0  ;;  %v1028_v45 = vmul.f32 %v2805_v15, %v2805_v15  ;;  %v2020_v46 = vpop.f32.mrb[5].mxu0  ;;  %v1039_v50 = vrot.slane %v2805_v15, 6 }
 0x368   :  { %v1021_v47 = vrot.slane %v1020_v20, 4  ;;  %v2811_v48 = vpop.f32.mrb[6].mxu0 }
 0x369   :  { %v1029_v49 = vsel %vm372_vm11, %v1028_v45, 0.0  ;;  %v1040_v51 = vrot.slane %v2811_v48, 6  ;;  %v1051_v52 = vmul.f32 %v2811_v48, %v2811_v48  ;;  %v2021_v53 = vpop.f32.mrb[7].mxu0  ;;  %v1054_v56 = vrot.slane %v1028_v45, 6 }
 0x36a   :  { %v1022_v54 = vadd.f32 %v1021_v47, %v1020_v20  ;;  %v1030_v55 = vrot.slane %v1029_v49, 4 }
 0x36b   :  { %v1041_v57 = vsel %vm392_vm13, %v1039_v50, %v1040_v51  ;;  %v1055_v58 = vrot.slane %v1051_v52, 6 }
 0x36c   :  { %v1023_v59 = vrot.slane %v1022_v54, 2  ;;  %v1031_v60 = vadd.f32 %v1030_v55, %v1029_v49  ;;  %v1043_v61 = vsel %vm372_vm11, %v1041_v57, 0.0 }
 0x36d   :  { %v1044_v62 = vrot.slane %v1043_v61, 4  ;;  %v1056_v63 = vsel %vm392_vm13, %v1054_v56, %v1055_v58  ;;  %v1696_v58 = vld [vmem:[%s2994_s5] ss:$0 sm:$0xff] }
 0x36e   :  { %v1032_v1 = vrot.slane %v1031_v60, 2  ;;  %v1058_v3 = vsel %vm372_vm11, %v1056_v63, 0.0  ;;  %v1024_v4 = vadd.f32 %v1023_v59, %v1022_v54 }
 0x36f   :  { %v1045_v6 = vadd.f32 %v1044_v62, %v1043_v61  ;;  %v1059_v7 = vrot.slane %v1058_v3, 4 }
 0x370   :  { %v1033_v9 = vadd.f32 %v1032_v1, %v1031_v60  ;;  %v1025_v13 = vrot.slane %v1024_v4, 1 }
 0x371   :  { %v1046_v10 = vrot.slane %v1045_v6, 2  ;;  %v1060_v12 = vadd.f32 %v1059_v7, %v1058_v3  ;;  %v1415_v7 = vld [vmem:[%s2998_s10 + $0x8] sm:$0xff] }
 0x372   :  { %v1034_v19 = vrot.slane %v1033_v9, 1  ;;  %v1026_v22 = vadd.f32 %v1025_v13, %v1024_v4  ;;  %v1261_v4 = vld [vmem:[%s2997_s8] sm:$0xf]  ;;  %v1417_v13 = vld [vmem:[%s2998_s10 + $0x18] sm:$0xff] }
 0x373   :  { %v1061_v16 = vrot.slane %v1060_v12, 2  ;;  %v1047_v17 = vadd.f32 %v1046_v10, %v1045_v6  ;;  %v1414_v6 = vld [vmem:[%s2998_s10] sm:$0xff] }
 0x374   :  { %v1035_v28 = vadd.f32 %v1034_v19, %v1033_v9  ;;  %v1339_v9 = vld [vmem:[%s2999_s9] sm:$0xf]  ;;  %v2281_v10 = vpack.c.bf16 %v1415_v7, %v1414_v6 }
 0x375   :  { %v1048_v18 = vrot.slane %v1047_v17, 1  ;;  %v1062_v21 = vadd.f32 %v1061_v16, %v1060_v12  ;;  %v1416_v12 = vld [vmem:[%s2998_s10 + $0x10] sm:$0xff] }
 0x376   :  { %v2284_v16 = vpack.c.bf16 %v1417_v13, %v1416_v12 }
 0x377   :  { %v1049_v24 = vadd.f32 %v1048_v18, %v1047_v17  ;;  %v1063_v26 = vrot.slane %v1062_v21, 1  ;;  %v1418_v17 = vld [vmem:[%s2998_s10 + $0x20] sm:$0xff]  ;;  %v1419_v18 = vld [vmem:[%s2998_s10 + $0x28] sm:$0xff] }
 0x378   :  { %v2287_v19 = vpack.c.bf16 %v1419_v18, %v1418_v17 }
 0x379   :  { %v1050_v27 = vadd.f32 %v1049_v24, %v1026_v22  ;;  %v1064_v29 = vadd.f32 %v1063_v26, %v1062_v21  ;;  %v1420_v21 = vld [vmem:[%s2998_s10 + $0x30] sm:$0xff]  ;;  %v1422_v24 = vld [vmem:[%s2998_s10 + $0x40] sm:$0xff]  ;;  %v1423_v26 = vld [vmem:[%s2998_s10 + $0x48] sm:$0xff] }
 0x37b   :  { %2055 = vmatmul.mubr.f32.vlgmr.msra.gmra.mrb[4].mxu1 %v1050_v27  ;;  %v1065_v30 = vadd.f32 %v1064_v29, %v1035_v28  ;;  %v2293_v27 = vpack.c.bf16 %v1423_v26, %v1422_v24  ;;  %v1424_v28 = vld [vmem:[%s2998_s10 + $0x50] sm:$0xff]  ;;  %v1425_v29 = vld [vmem:[%s2998_s10 + $0x58] sm:$0xff] }
 0x37c   :  { %2250 = vmatpush3.bf16.msra.mxu1 %v2515_v37  ;;  %2089 = vmatprep.mubr.msk.f32.mxu1 %vm2395_vm0, %v2394_v0  ;;  %v1500_v37 = vld [vmem:[%s2993_s11] sm:$0xff] }
 0x37d   :  { %2251 = vmatprep.subr.bf16.mxu1 %v2396_v25 }
 0x380   :  { %2253 = vmatpush3.bf16.msra.mxu1 %v2521_v39  ;;  %v1501_v39 = vld [vmem:[%s2993_s11 + $0x8] sm:$0xff] }
 0x381   :  { %2254 = vmatprep.subr.bf16.mxu1 %v2396_v25 }
 0x384   :  { %2256 = vmatpush3.bf16.msra.mxu1 %v2531_v44  ;;  %v2305_v44 = vpack.c.bf16 %v1501_v39, %v1500_v37  ;;  %v1426_v37 = vld [vmem:[%s2998_s10 + $0x60] sm:$0xff]  ;;  %v1427_v39 = vld [vmem:[%s2998_s10 + $0x68] sm:$0xff] }
 0x385   :  { %2257 = vmatprep.subr.bf16.mxu1 %v2396_v25 }
 0x386   :  { %2306 = vmatpush3.bf16.msra.mxu0 %v2305_v44  ;;  %v1512_v44 = vld [vmem:[%s2993_s11 + $0x60] sm:$0xff] }
 0x387   :  { %2307 = vmatprep.subr.bf16.mxu0 %v2396_v25 }
 0x388   :  { %2259 = vmatpush3.bf16.msra.mxu1 %v2583_v2  ;;  %v1502_v2 = vld [vmem:[%s2993_s11 + $0x10] sm:$0xff] }
 0x389   :  { %2260 = vmatprep.subr.bf16.mxu1 %v2396_v25 }
 0x38c   :  { %2262 = vmatpush3.bf16.msra.mxu1 %v2593_v5  ;;  %v1503_v5 = vld [vmem:[%s2993_s11 + $0x18] sm:$0xff] }
 0x38d   :  { %2263 = vmatprep.subr.bf16.mxu1 %v2396_v25 }
 0x390   :  { %2265 = vmatpush3.bf16.msra.mxu1 %v2603_v8  ;;  %v2308_v8 = vpack.c.bf16 %v1503_v5, %v1502_v2  ;;  %v2299_v2 = vpack.c.bf16 %v1427_v39, %v1426_v37  ;;  %v1513_v5 = vld [vmem:[%s2993_s11 + $0x68] sm:$0xff] }
 0x391   :  { %2266 = vmatprep.subr.bf16.mxu1 %v2396_v25 }
 0x392   :  { %2309 = vmatpush3.bf16.msra.mxu0 %v2308_v8  ;;  %v2323_v8 = vpack.c.bf16 %v1513_v5, %v1512_v44 }
 0x393   :  { %2310 = vmatprep.subr.bf16.mxu0 %v2396_v25 }
 0x394   :  { %2268 = vmatpush3.bf16.msra.mxu1 %v2613_v11  ;;  %v1504_v11 = vld [vmem:[%s2993_s11 + $0x20] sm:$0xff] }
 0x395   :  { %2269 = vmatprep.subr.bf16.mxu1 %v2396_v25 }
 0x398   :  { %2271 = vmatpush3.bf16.msra.mxu1 %v2623_v14  ;;  %v1505_v14 = vld [vmem:[%s2993_s11 + $0x28] sm:$0xff] }
 0x399   :  { %2272 = vmatprep.subr.bf16.mxu1 %v2396_v25  ;;  %v2311_v31 = vpack.c.bf16 %v1505_v14, %v1504_v11  ;;  %v1428_v11 = vld [vmem:[%s2998_s10 + $0x70] sm:$0xff]  ;;  %v1429_v14 = vld [vmem:[%s2998_s10 + $0x78] sm:$0xff] }
 0x39a   :  { %v2302_v32 = vpack.c.bf16 %v1429_v14, %v1428_v11 }
 0x39b   :  { %2090 = vmatmul.mubr.f32.vlgmr.msra.gmra.mrb[6].mxu1 %v1065_v30  ;;  %2312 = vmatpush3.bf16.msra.mxu0 %v2311_v31  ;;  %v2296_v30 = vpack.c.bf16 %v1425_v29, %v1424_v28  ;;  %v1514_v31 = vld [vmem:[%s2993_s11 + $0x70] sm:$0xff] }
 0x39c   :  { %2096 = vmatprep.mubr.msk.f32.mxu1 %vm2395_vm0, %v2394_v0  ;;  %2313 = vmatprep.subr.bf16.mxu0 %v2396_v25 }
 0x39f   :  { %2315 = vmatpush3.bf16.msra.mxu0 %v2314_v34  ;;  %v2326_v34 = vpack.c.bf16 %v1515_v33, %v1514_v31 }
 0x3a0   :  { %2316 = vmatprep.subr.bf16.mxu0 %v2396_v25 }
 0x3a3   :  { %2318 = vmatpush3.bf16.msra.mxu0 %v2317_v38 }
 0x3a4   :  { %2319 = vmatprep.subr.bf16.mxu0 %v2396_v25 }
 0x3a7   :  { %2321 = vmatpush3.bf16.msra.mxu0 %v2320_v42 }
 0x3a8   :  { %2322 = vmatprep.subr.bf16.mxu0 %v2396_v25 }
 0x3ab   :  { %2324 = vmatpush3.bf16.msra.mxu0 %v2323_v8 }
 0x3ac   :  { %2325 = vmatprep.subr.bf16.mxu0 %v2396_v25 }
 0x3af   :  { %2327 = vmatpush3.bf16.msra.mxu0 %v2326_v34 }
 0x44e   :  { %v1148_v43 = vpop.f32.mrb[4].mxu1 }
 0x44f   :  { %v1222_v20 = vmul.f32 0.03125, %v1148_v43  ;;  %v2056_v45 = vpop.f32.mrb[5].mxu1 }
 0x451   :  { %v1231_v46 = vrot.slane %v1222_v20, %v2717_v23  ;;  %v1224_v51 = vmul.f32 %v1222_v20, %v1222_v20 }
 0x453   :  { %v1232_v47 = vsub.f32 %v2805_v15, %v1231_v46  ;;  %v1233_v49 = vsub.f32 %v2811_v48, %v1231_v46  ;;  %v1697_v15 = vld [vmem:[%s2995_s6] ss:$0 sm:$0xff] }
 0x46e   :  { %v1218_v50 = vpop.f32.mrb[6].mxu1 }
 0x46f   :  { %v1223_v52 = vmul.f32 0.03125, %v1218_v50  ;;  %v2091_v53 = vpop.f32.mrb[7].mxu1 }
 0x471   :  { %v1225_v54 = vsub.f32 %v1223_v52, %v1224_v51 }
 0x473   :  { %v1226_v55 = vadd.f32 1e-05, %v1225_v54 }
 0x475   :  { %2392 = vrsqrt.f32 %v1226_v55 }
 0x47f   :  { %v2393_v56 = vpop.eup %2392 }
 0x480   :  { %v1237_v57 = vrot.slane %v2393_v56, %v2717_v23 }
 0x482   :  { %v1238_v59 = vmul.f32 %v1237_v57, %v1232_v47  ;;  %v1239_v60 = vmul.f32 %v1237_v57, %v1233_v49 }
 0x484   :  { %v1246_v48 = vmul.f32 %v1696_v58, %v1238_v59  ;;  %v1247_v61 = vmul.f32 %v1696_v58, %v1239_v60 }
 0x486   :  { %v1254_v62 = vadd.f32 %v1697_v15, %v1246_v48  ;;  %v1255_v63 = vadd.f32 %v1697_v15, %v1247_v61 }
 0x488   :  { %v1256_v1 = vmax.f32 %v1254_v62, 0.0  ;;  %v1257_v3 = vmax.f32 %v1255_v63, 0.0 }
 0x48a   :  { %1258 = vst [vmem:[%s2996_s12] sm:$0xf] %v1256_v1  ;;  %1259 = vst [vmem:[%s2996_s12 - $0x2] sm:$0xc0] %v1256_v1  ;;  %v2273_v23 = vpack.c.bf16 %v1257_v3, %v1256_v1 }
 0x48b   :  { %1260 = vst [vmem:[%s2996_s12 + $0x6] sm:$0x3] %v1257_v3 }
 0x48c   :  { %2275 = vmatpush3.bf16.msk.msra.mxu1 %vm2274_vm8, %v2273_v23 }
 0x48d   :  { %2276 = vmatprep.subr.bf16.mxu1 %v2396_v25 }
 0x48f   :  { %2097 = vmatmul.mubr.msk.f32.vlgmr.msra.gmra.mrb[8].mxu1 %vm1262_vm15, %v1261_v4 }
 0x490   :  { %2279 = vmatpush3.bf16.msk.msra.mxu1 %vm2274_vm8, %v2273_v23  ;;  %2103 = vmatprep.mubr.msk.f32.mxu1 %vm2395_vm0, %v2394_v0 }
 0x491   :  { %2280 = vmatprep.subr.bf16.mxu1 %v2396_v25 }
 0x493   :  { %2104 = vmatmul.mubr.msk.f32.vlgmr.msra.gmra.mrb[10].mxu1 %vm1262_vm15, %v1339_v9 }
 0x494   :  { %2282 = vmatpush3.bf16.msra.mxu1 %v2281_v10  ;;  %2138 = vmatprep.mubr.msk.f32.mxu1 %vm2395_vm0, %v2394_v0  ;;  %v1421_v0 = vld [vmem:[%s2998_s10 + $0x38] sm:$0xff]  ;;  %vm1587_vm0 = vcmask 519168  }
 0x495   :  { %2283 = vmatprep.subr.bf16.mxu1 %v2396_v25  ;;  %v2290_v22 = vpack.c.bf16 %v1421_v0, %v1420_v21 }
 0x498   :  { %2285 = vmatpush3.bf16.msra.mxu1 %v2284_v16 }
 0x499   :  { %2286 = vmatprep.subr.bf16.mxu1 %v2396_v25 }
 0x49c   :  { %2288 = vmatpush3.bf16.msra.mxu1 %v2287_v19 }
 0x49d   :  { %2289 = vmatprep.subr.bf16.mxu1 %v2396_v25 }
 0x4a0   :  { %2291 = vmatpush3.bf16.msra.mxu1 %v2290_v22 }
 0x4a1   :  { %2292 = vmatprep.subr.bf16.mxu1 %v2396_v25 }
 0x4a4   :  { %2294 = vmatpush3.bf16.msra.mxu1 %v2293_v27 }
 0x4a5   :  { %2295 = vmatprep.subr.bf16.mxu1 %v2396_v25 }
 0x4a8   :  { %2297 = vmatpush3.bf16.msra.mxu1 %v2296_v30 }
 0x4a9   :  { %2298 = vmatprep.subr.bf16.mxu1 %v2396_v25 }
 0x4ac   :  { %2300 = vmatpush3.bf16.msra.mxu1 %v2299_v2 }
 0x4ad   :  { %2301 = vmatprep.subr.bf16.mxu1 %v2396_v25 }
 0x4b0   :  { %2303 = vmatpush3.bf16.msra.mxu1 %v2302_v32 }
 0x562   :  { %v1335_v35 = vpop.f32.mrb[8].mxu1 }
 0x563   :  { %v2098_v36 = vpop.f32.mrb[9].mxu1 }
 0x566   :  { %v1409_v38 = vpop.f32.mrb[10].mxu1 }
 0x567   :  { %v1413_v40 = vmax.f32 %v1335_v35, %v1409_v38  ;;  %v2105_v41 = vpop.f32.mrb[11].mxu1 }
 0x569   :  { %2139 = vmatmul.mubr.f32.vlgmr.msra.gmra.mrb[12].mxu1 %v1413_v40  ;;  %2174 = vmatmul.mubr.f32.vlgmr.msra.gmra.mrb[8].mxu0 %v1413_v40 }
 0x63c   :  { %v1496_v42 = vpop.f32.mrb[12].mxu1  ;;  %v1582_v43 = vpop.f32.mrb[8].mxu0 }
 0x63d   :  { %v1586_v20 = vmax.f32 %v1496_v42, %v1582_v43  ;;  %v2140_v25 = vpop.f32.mrb[13].mxu1  ;;  %v2175_v45 = vpop.f32.mrb[9].mxu0 }
 0x63f   :  { %1588 = vst.msk [vmem:[%s3000_s13] sm:$0xf] %vm1587_vm0, %v1586_v20 }

// kernel: encoder_projection_forward.4
= control target key start
LH: loop header
LB: loop body
LE: loop exit
PB: predicated region body
PF: predicated region fallthrough
CT: control target
= control target key end

     0   :  { %19 = vsyncpa [#allocation5], 0  ;;  %s3656_s0 = inlined_call_operand.vmem [shape: f32[32,48], index: 0, kind: input, shape index: {}]   ;;  %s3657_s1 = inlined_call_operand.vmem [shape: bf16[3,48,128], index: 1, kind: input, shape index: {}]   ;;  %s3658_s2 = inlined_call_operand.vmem [shape: f32[1,128], index: 2, kind: input, shape index: {}]   ;;  %s3659_s3 = inlined_call_operand.vmem [shape: f32[1,128], index: 3, kind: input, shape index: {}]   ;;  %s3660_s4 = inlined_call_operand.vmem [shape: bf16[3,128,128], index: 4, kind: input, shape index: {}]   ;;  %s3661_s5 = inlined_call_operand.vmem [shape: f32[1,128], index: 5, kind: input, shape index: {}]   ;;  %s3662_s6 = inlined_call_operand.vmem [shape: f32[1,128], index: 6, kind: input, shape index: {}]   ;;  %s3663_s7 = inlined_call_operand.vmem [shape: f32[128,128], index: 7, kind: input, shape index: {}]   ;;  %s3664_s8 = inlined_call_operand.vmem [shape: f32[16,34], index: 8, kind: input, shape index: {}]   ;;  %s3665_s9 = inlined_call_operand.hbm [shape: f32[16,34], index: 9, kind: input, shape index: {}]   ;;  %s3666_s10 = inlined_call_operand.vmem [shape: f32[128,64], index: 10, kind: input, shape index: {}]   ;;  %s3667_s11 = inlined_call_operand.hbm [shape: f32[128,64], index: 11, kind: input, shape index: {}]   ;;  %s3668_s12 = inlined_call_operand.vmem [shape: f32[32,128], index: 12, kind: output, shape index: {0}]   ;;  %s3669_s13 = inlined_call_operand.vmem [shape: f32[16,64], index: 13, kind: output, shape index: {1}]  }
   0x1   :  { %20 = vsyncpa [#allocation7], 0  ;;  %s2939_s25 = smov [#allocation4]   ;;  %s2891_s29 = scalar_lea.hbm %s3665_s9, 256 }
   0x2   :  { %s44_s26 = sshll.u32 %s2939_s25, 4  ;;  %p2892_p0 = scmp.ne.s32.totalorder %s3665_s9, %s2891_s29  ;;  %s45_s26 = int_to_ptr.vmem [resolvable:$true] %s44_s26 }
   0x3   :  { %p2895_p1 = scmp.lt.u32.totalorder %s2891_s29, %s3665_s9 }
   0x5   :  { %p2897_p2 = pnand %p2895_p1, %p2892_p0 }
   0x7   :  { %2900 = shalt.err (!%p2897_p2)
}
   0x8   :  { %s2901_s17 = scalar_lea.vmem %s45_s26, 256  ;;  %p2906_p4 = scmp.lt.s32.totalorder %s45_s26, %s45_s26 }
   0x9   :  { %p2902_p3 = scmp.ne.s32.totalorder %s45_s26, %s2901_s17  ;;  %p2907_p5 = scmp.lt.s32.totalorder %s2901_s17, %s2901_s17 }
   0xb   :  { %p2908_p6 = por %p2907_p5, %p2906_p4 }
   0xd   :  { %p2909_p7 = pnand %p2908_p6, %p2902_p3 }
   0xf   :  { %2912 = shalt.err (!%p2909_p7)
}
  0x10   :  { %s2940_s18 = smov 128   ;;  %s2941_s19 = smov 8  }
  0x11   :  { %50 = dma.hbm_to_vmem [thread:$0]  %s3665_s9, 256, %s45_s26, [#allocation5], %s2940_s18, %s2940_s18, %s2941_s19  }
  0x12   :  { %s2942_s22 = smov [#allocation6]   ;;  %s2913_s27 = scalar_lea.hbm %s3667_s11, 2048 }
  0x13   :  { %s58_s23 = sshll.u32 %s2942_s22, 4  ;;  %p2914_p8 = scmp.ne.s32.totalorder %s3667_s11, %s2913_s27  ;;  %s59_s23 = int_to_ptr.vmem [resolvable:$true] %s58_s23 }
  0x14   :  { %p2917_p9 = scmp.lt.u32.totalorder %s2913_s27, %s3667_s11 }
  0x16   :  { %p2919_p10 = pnand %p2917_p9, %p2914_p8 }
  0x18   :  { %2922 = shalt.err (!%p2919_p10)
}
  0x19   :  { %s2923_s15 = scalar_lea.vmem %s59_s23, 2048  ;;  %p2928_p12 = scmp.lt.s32.totalorder %s59_s23, %s59_s23 }
  0x1a   :  { %p2924_p11 = scmp.ne.s32.totalorder %s59_s23, %s2923_s15  ;;  %p2929_p13 = scmp.lt.s32.totalorder %s2923_s15, %s2923_s15 }
  0x1c   :  { %p2930_p0 = por %p2929_p13, %p2928_p12 }
  0x1e   :  { %p2931_p1 = pnand %p2930_p0, %p2924_p11 }
  0x20   :  { %2934 = shalt.err (!%p2931_p1)
}
  0x21   :  { %64 = dma.hbm_to_vmem [thread:$0]  %s3667_s11, 2048, %s59_s23, [#allocation7], %s2940_s18, %s2940_s18, %s2941_s19  }
  0x22   :  { %2935 = dma.done.wait [#allocation5], 256  }
  0x23   :  { %2936 = vsyncadd [#allocation5], 4294967040 }
  0x24   :  { %2937 = dma.done.wait [#allocation7], 2048  }
  0x25   :  { %2938 = vsyncadd [#allocation7], 4294965248  ;;  %v2943_v0 = vmov 0.0   ;;  %vm2944_vm0 = vmmov 0   ;;  %vm72_vm1 = vcmask 385024   ;;  %vm123_vm5 = vcmask 386049  }
  0x26   :  { %2239 = vmatprep.subr.bf16.mxu0 %v2943_v0  ;;  %2245 = vmatprep.mubr.msk.bf16.mxu0 %vm2944_vm0, %v2943_v0  ;;  %vm73_vm2 = vsmask.f32 256  ;;  %vm78_vm3 = vsmask.f32 7938  ;;  %vm124_vm6 = vsmask.f32 1280 }
  0x27   :  { %2325 = vmatprep.mubr.msk.f32.mxu1 %vm2944_vm0, %v2943_v0  ;;  %vm3046_vm4 = vmand %vm72_vm1, %vm73_vm2  ;;  %vm91_vm8 = vsmask.f32 4368  ;;  %v2844_v3 = vld [vmem:[%s3657_s1 + $0x18] sm:$0xff]   ;;  %vm129_vm10 = vsmask.f32 7942  ;;  %v2845_v5 = vld [vmem:[%s3657_s1 + $0x20] sm:$0xff]  }
  0x28   :  { %vm3051_vm7 = vmand %vm72_vm1, %vm78_vm3  ;;  %2240 = vmatpush3.bf16.msra.mxu0 %v2844_v3  ;;  %v75_v6 = vld [vmem:[#allocation2] sm:$0x1]  ;;  %v80_v7 = vld [vmem:[#allocation2 + $0x8] sm:$0x1]  ;;  %vm113_vm11 = vcmask 388096   ;;  %vm166_vm13 = vcmask 388097  }
  0x29   :  { %vm3060_vm9 = vmand %vm123_vm5, %vm124_vm6  ;;  %2241 = vmatprep.subr.bf16.mxu0 %v2943_v0  ;;  %v83_v8 = vld [vmem:[%s3656_s0] sm:$0xff]  ;;  %v76_v9 = vsel %vm3046_vm4, 0, %v75_v6  ;;  %v81_v10 = vsel %vm3051_vm7, 0, %v80_v7  ;;  %v84_v11 = vld [vmem:[%s3656_s0 + $0x8] sm:$0xff]  ;;  %vm142_vm12 = vsmask.f32 5392 }
  0x2a   :  { %v2061_v12 = vpack.c.bf16 %v83_v8, %v83_v8  ;;  %v126_v13 = vld [vmem:[#allocation2 + $0x8] sm:$0x2]  ;;  %v134_v14 = vld [vmem:[%s3656_s0 + $0x10] sm:$0xff]  ;;  %77 = vst [vmem:[#allocation2] sm:$0x1] %v76_v9  ;;  %v2062_v15 = vpack.c.bf16 %v84_v11, %v84_v11  ;;  %v135_v17 = vld [vmem:[%s3656_s0 + $0x18] sm:$0xff] }
  0x2b   :  { %82 = vst [vmem:[#allocation2 + $0x8] sm:$0x1] %v81_v10  ;;  %v127_v16 = vsel %vm3060_vm9, 0, %v126_v13  ;;  %v2063_v18 = vpack.c.bf16 %v134_v14, %v134_v14  ;;  %v2846_v19 = vld [vmem:[%s3657_s1 + $0x28] sm:$0xff]   ;;  %v2064_v22 = vpack.c.bf16 %v135_v17, %v135_v17  ;;  %vm130_vm14 = vmand %vm123_vm5, %vm129_vm10  ;;  %v131_v27 = vld [vmem:[#allocation2 + $0x10] sm:$0x2] }
  0x2c   :  { %2242 = vmatpush3.bf16.msra.mxu0 %v2845_v5  ;;  %v94_v20 = vshrl.u32 %v2061_v12, 16  ;;  %v97_v21 = vshll.u32 %v2061_v12, 16  ;;  %128 = vst [vmem:[#allocation2 + $0x8] sm:$0x2] %v127_v16  ;;  %v102_v23 = vshrl.u32 %v2062_v15, 16  ;;  %v105_v24 = vshll.u32 %v2062_v15, 16  ;;  %vm3094_vm15 = vmor %vm73_vm2, %vm91_vm8 }
  0x2d   :  { %2243 = vmatprep.subr.bf16.mxu0 %v2943_v0  ;;  %v145_v25 = vshrl.u32 %v2063_v18, 16  ;;  %v148_v26 = vshll.u32 %v2063_v18, 16  ;;  %v154_v30 = vshrl.u32 %v2064_v22, 16  ;;  %v157_v31 = vshll.u32 %v2064_v22, 16  ;;  %vm3100_vm1 = vmand %vm113_vm11, %vm78_vm3  ;;  %v2849_v8 = vld [vmem:[%s3657_s1] sm:$0xff]   ;;  %v2851_v12 = vld [vmem:[%s3657_s1 + $0x8] sm:$0xff]  }
  0x2e   :  { %v96_v29 = vrot.slane %v94_v20, 7  ;;  %v132_v32 = vsel %vm130_vm14, 0, %v131_v27  ;;  %v104_v33 = vrot.slane %v102_v23, 7  ;;  %vm3106_vm5 = vmor %vm124_vm6, %vm142_vm12  ;;  %vm172_vm8 = vcmask 386048   ;;  %v2852_v14 = vld [vmem:[%s3657_s1 + $0x10] sm:$0xff]   ;;  %v2856_v20 = vld [vmem:[%s3657_s1 + $0x40] sm:$0xff]  }
  0x2f   :  { %v147_v35 = vrot.slane %v145_v25, 6  ;;  %v150_v36 = vrot.slane %v148_v26, 7  ;;  %133 = vst [vmem:[#allocation2 + $0x10] sm:$0x2] %v132_v32  ;;  %v156_v40 = vrot.slane %v154_v30, 6  ;;  %v159_v41 = vrot.slane %v157_v31, 7  ;;  %vm3113_vm7 = vmand %vm166_vm13, %vm129_vm10 }
  0x30   :  { %2244 = vmatpush3.bf16.msra.mxu0 %v2846_v19  ;;  %v99_v37 = vor.u32 %v97_v21, %v96_v29  ;;  %v100_v38 = vrot.slane %v96_v29, 4  ;;  %v107_v42 = vor.u32 %v105_v24, %v104_v33  ;;  %v109_v43 = vrot.slane %v104_v33, 4  ;;  %vm173_vm9 = vmand %vm172_vm8, %vm124_vm6  ;;  %v2853_v18 = vld [vmem:[%s3657_s1 + $0x30] sm:$0xff]   ;;  %v2854_v19 = vld [vmem:[%s3657_s1 + $0x38] sm:$0xff]  }
  0x31   :  { %2257 = vmatprep.subr.bf16.mxu0 %v2943_v0  ;;  %v151_v44 = vor.u32 %v150_v36, %v147_v35  ;;  %v115_v46 = vld [vmem:[#allocation2] sm:$0xf]  ;;  %v160_v48 = vor.u32 %v159_v41, %v156_v40  ;;  %vm251_vm12 = vcmask 392192   ;;  %v567_v31 = vld [vmem:[%s3663_s7 + $0x8] sm:$0xff]  ;;  %v2945_v33 = vmov 0.0|0.0   ;;  %v568_v34 = vld [vmem:[%s3663_s7 + $0x10] sm:$0xff] }
  0x32   :  { %v120_v47 = vld [vmem:[#allocation2 + $0x8] sm:$0x1]  ;;  %v108_v49 = vsel %vm3094_vm15, %v100_v38, %v107_v42  ;;  %v116_v50 = vsel %vm3100_vm1, %v99_v37, %v115_v46  ;;  %v566_v30 = vld [vmem:[%s3663_s7] sm:$0xff]  ;;  %2613 = vmatprep.subr.bf16.mxu1 %v2945_v33  ;;  %v569_v35 = vld [vmem:[%s3663_s7 + $0x18] sm:$0xff]  ;;  %vm529_vm13 = vcmask 1045504   ;;  %vm776_vm14 = vcmask 1040384  }
  0x33   :  { %v121_v51 = vsel %vm3046_vm4, %v109_v43, %v120_v47  ;;  %v152_v52 = vrot.slane %v151_v44, 4  ;;  %v168_v53 = vld [vmem:[#allocation2 + $0x8] sm:$0xe]  ;;  %117 = vst [vmem:[#allocation2] sm:$0xf] %v116_v50  ;;  %v162_v55 = vrot.slane %v160_v48, 4  ;;  %v3191_v32 = vpack.c.bf16 %v567_v31, %v566_v30 }
  0x34   :  { %119 = vst.msk [vmem:[#allocation2 + $0x4] sm:$0xf] %vm113_vm11, %v108_v49  ;;  %122 = vst [vmem:[#allocation2 + $0x8] sm:$0x1] %v121_v51  ;;  %v169_v54 = vsel %vm3113_vm7, %v151_v44, %v168_v53  ;;  %vm209_vm4 = vsmask.f32 7424  ;;  %v3202_v36 = vpack.c.bf16 %v569_v35, %v568_v34 }
  0x35   :  { %v161_v56 = vsel %vm3106_vm5, %v152_v52, %v160_v48  ;;  %170 = vst [vmem:[#allocation2 + $0x8] sm:$0xe] %v169_v54  ;;  %2615 = vmatpush3.bf16.msra.mxu1 %v3191_v32  ;;  %v570_v37 = vld [vmem:[%s3663_s7 + $0x20] sm:$0xff]  ;;  %v571_v38 = vld [vmem:[%s3663_s7 + $0x28] sm:$0xff]  ;;  %v572_v40 = vld [vmem:[%s3663_s7 + $0x30] sm:$0xff]  ;;  %vm819_vm1 = vcmask 1041409  }
  0x36   :  { %171 = vst.msk [vmem:[#allocation2 + $0xc] sm:$0xf] %vm113_vm11, %v161_v56  ;;  %v174_v57 = vld [vmem:[#allocation2 + $0x10] sm:$0x3]  ;;  %vm412_vm11 = vcmask 1046528   ;;  %2616 = vmatprep.subr.bf16.mxu1 %v2945_v33  ;;  %v3212_v39 = vpack.c.bf16 %v571_v38, %v570_v37  ;;  %v573_v41 = vld [vmem:[%s3663_s7 + $0x38] sm:$0xff]  ;;  %vm3335_vm5 = vmand %vm776_vm14, %vm73_vm2 }
  0x37   :  { %v175_v58 = vsel %vm173_vm9, %v162_v55, %v174_v57  ;;  %v3222_v42 = vpack.c.bf16 %v573_v41, %v572_v40  ;;  %v574_v43 = vld [vmem:[%s3663_s7 + $0x40] sm:$0xff]  ;;  %v575_v44 = vld [vmem:[%s3663_s7 + $0x48] sm:$0xff]  ;;  %v576_v46 = vld [vmem:[%s3663_s7 + $0x50] sm:$0xff]  ;;  %vm810_vm9 = vcmask 1043456  }
  0x38   :  { %176 = vst [vmem:[#allocation2 + $0x10] sm:$0x3] %v175_v58  ;;  %v3232_v45 = vpack.c.bf16 %v575_v44, %v574_v43  ;;  %v577_v47 = vld [vmem:[%s3663_s7 + $0x58] sm:$0xff]  ;;  %v578_v49 = vld [vmem:[%s3663_s7 + $0x60] sm:$0xff]  ;;  %v579_v50 = vld [vmem:[%s3663_s7 + $0x68] sm:$0xff] }
  0x39   :  { %2618 = vmatpush3.bf16.msra.mxu1 %v3202_v36  ;;  %v3242_v48 = vpack.c.bf16 %v577_v47, %v576_v46  ;;  %v580_v51 = vld [vmem:[%s3663_s7 + $0x70] sm:$0xff]  ;;  %v3255_v52 = vpack.c.bf16 %v579_v50, %v578_v49  ;;  %v581_v53 = vld [vmem:[%s3663_s7 + $0x78] sm:$0xff]  ;;  %vm781_vm7 = vmand %vm776_vm14, %vm78_vm3  ;;  %vm870_vm14 = vcmask 1041408  }
  0x3a   :  { %v177_v59 = vld [vmem:[#allocation2] sm:$0xf]  ;;  %2619 = vmatprep.subr.bf16.mxu1 %v2945_v33  ;;  %v3261_v54 = vpack.c.bf16 %v581_v53, %v580_v51  ;;  %vm820_vm8 = vmand %vm819_vm1, %vm124_vm6 }
  0x3b   :  { %v178_v60 = vld [vmem:[#allocation2 + $0x4] sm:$0xf]  ;;  %v401_v21 = vld [vmem:[#allocation2] sm:$0xe]  ;;  %vm824_vm2 = vmand %vm819_vm1, %vm129_vm10 }
  0x3c   :  { %v1956_v61 = vcombine.low %v177_v59, %v178_v60  ;;  %v1978_v23 = vcombine.low %v401_v21, %v178_v60  ;;  %vm3392_vm1 = vmand %vm810_vm9, %vm78_vm3 }
  0x3d   :  { %v2848_v62 = vld [vmem:[#allocation2 + $0x8] sm:$0xff]   ;;  %2621 = vmatpush3.bf16.msra.mxu1 %v3212_v39  ;;  %vm871_vm3 = vmand %vm870_vm14, %vm124_vm6  ;;  %vm1933_vm6 = vcmask 523264  }
  0x3e   :  { %v211_v63 = vshrl.u32 %v1956_v61, 16  ;;  %v213_v1 = vshll.u32 %v1956_v61, 16  ;;  %v218_v2 = vshll.u32 %v2848_v62, 16  ;;  %v222_v9 = vshrl.u32 %v2848_v62, 16  ;;  %2622 = vmatprep.subr.bf16.mxu1 %v2945_v33 }
  0x3f   :  { %v2850_v3 = vld [vmem:[#allocation2 + $0x10] ss:$0 sps:$4 sm:$0x33]   ;;  %v413_v24 = vrot.slane %v1978_v23, 1  ;;  %v414_v25 = vrot.slane %v2848_v62, 1 }
  0x40   :  { %v215_v4 = vrot.slane %v213_v1, 1  ;;  %v220_v5 = vrot.slane %v218_v2, 1  ;;  %v226_v6 = vshll.u32 %v2850_v3, 16  ;;  %v230_v16 = vshrl.u32 %v2850_v3, 16 }
  0x41   :  { %v2855_v22 = vld [vmem:[#allocation2 + $0x10] ss:$0 sps:$4 sm:$0x11]   ;;  %v415_v26 = vsel %vm412_vm11, %v413_v24, %v414_v25  ;;  %v416_v27 = vrot.slane %v2850_v3, 1  ;;  %2624 = vmatpush3.bf16.msra.mxu1 %v3222_v42 }
  0x42   :  { %v216_v7 = vor.u32 %v215_v4, %v211_v63  ;;  %v228_v10 = vrot.slane %v226_v6, 1  ;;  %v224_v13 = vor.u32 %v222_v9, %v220_v5  ;;  %2625 = vmatprep.subr.bf16.mxu1 %v2945_v33 }
  0x43   :  { %v417_v29 = vsel %vm412_vm11, %v414_v25, %v416_v27 }
  0x44   :  { %v221_v11 = vsel %vm209_vm4, %v216_v7, %v220_v5  ;;  %v229_v15 = vsel %vm209_vm4, %v224_v13, %v228_v10  ;;  %v232_v17 = vor.u32 %v230_v16, %v228_v10 }
  0x45   :  { %2246 = vmatmul.mubr.msk.bf16.vlgmr.msra.gmra.mrb[0].mxu0 %vm251_vm12, %v221_v11  ;;  %2627 = vmatpush3.bf16.msra.mxu1 %v3232_v45 }
  0x46   :  { %2258 = vmatpush3.bf16.msra.mxu0 %v2849_v8  ;;  %2249 = vmatprep.mubr.msk.bf16.mxu0 %vm2944_vm0, %v2943_v0 }
  0x47   :  { %2259 = vmatprep.subr.bf16.mxu0 %v2943_v0  ;;  %2628 = vmatprep.subr.bf16.mxu1 %v2945_v33 }
  0x49   :  { %2630 = vmatpush3.bf16.msra.mxu1 %v3242_v48 }
  0x4a   :  { %2260 = vmatpush3.bf16.msra.mxu0 %v2851_v12  ;;  %2631 = vmatprep.subr.bf16.mxu1 %v2945_v33 }
  0x4b   :  { %2261 = vmatprep.subr.bf16.mxu0 %v2943_v0 }
  0x4d   :  { %2250 = vmatmul.mubr.msk.bf16.gmra.mrb[4].mxu0 %vm251_vm12, %v229_v15  ;;  %2633 = vmatpush3.bf16.msra.mxu1 %v3255_v52 }
  0x4e   :  { %2253 = vmatprep.mubr.msk.bf16.mxu0 %vm2944_vm0, %v2943_v0  ;;  %2262 = vmatpush3.bf16.msra.mxu0 %v2852_v14 }
  0x4f   :  { %2275 = vmatprep.subr.bf16.mxu0 %v2943_v0  ;;  %2634 = vmatprep.subr.bf16.mxu1 %v2945_v33 }
  0x51   :  { %2636 = vmatpush3.bf16.msra.mxu1 %v3261_v54 }
  0x52   :  { %2637 = vmatprep.subr.bf16.mxu1 %v2945_v33 }
  0x55   :  { %2254 = vmatmul.mubr.msk.bf16.gmra.mrb[8].mxu0 %vm251_vm12, %v232_v17 }
  0x56   :  { %2263 = vmatprep.mubr.msk.bf16.mxu0 %vm2944_vm0, %v2943_v0 }
  0x5d   :  { %2264 = vmatmul.mubr.msk.bf16.vlgmr.msra.gmra.mrb[0].mxu0 %vm251_vm12, %v1956_v61 }
  0x5e   :  { %2276 = vmatpush3.bf16.msra.mxu0 %v2853_v18  ;;  %2267 = vmatprep.mubr.msk.bf16.mxu0 %vm2944_vm0, %v2943_v0 }
  0x5f   :  { %2277 = vmatprep.subr.bf16.mxu0 %v2943_v0 }
  0x62   :  { %2278 = vmatpush3.bf16.msra.mxu0 %v2854_v19 }
  0x63   :  { %2279 = vmatprep.subr.bf16.mxu0 %v2943_v0 }
  0x65   :  { %2268 = vmatmul.mubr.msk.bf16.gmra.mrb[4].mxu0 %vm251_vm12, %v2848_v62 }
  0x66   :  { %2271 = vmatprep.mubr.msk.bf16.mxu0 %vm2944_vm0, %v2943_v0  ;;  %2280 = vmatpush3.bf16.msra.mxu0 %v2856_v20 }
  0x67   :  { %2363 = vmatprep.subr.bf16.mxu0 %v2943_v0 }
  0x6d   :  { %2272 = vmatmul.mubr.msk.bf16.gmra.mrb[8].mxu0 %vm251_vm12, %v2855_v22 }
  0x6e   :  { %2281 = vmatprep.mubr.msk.bf16.mxu0 %vm2944_vm0, %v2943_v0 }
  0x75   :  { %2282 = vmatmul.mubr.msk.bf16.vlgmr.msra.gmra.mrb[0].mxu0 %vm251_vm12, %v415_v26 }
  0x76   :  { %2285 = vmatprep.mubr.msk.bf16.mxu0 %vm2944_vm0, %v2943_v0 }
  0x7d   :  { %2286 = vmatmul.mubr.msk.bf16.gmra.mrb[4].mxu0 %vm251_vm12, %v417_v29 }
  0x7e   :  { %2289 = vmatprep.mubr.msk.bf16.mxu0 %vm2944_vm0, %v2943_v0 }
  0x85   :  { %2290 = vmatmul.mubr.msk.bf16.gmra.mrb[8].mxu0 %vm251_vm12, %v416_v27  ;;  %vm864_vm12 = vcmask 1043457  }
  0x86   :  { %2379 = vmatprep.mubr.msk.bf16.mxu0 %vm2944_vm0, %v2943_v0 }
 0x148   :  { %v3266_v55 = vpop.f32.mrb[0].mxu0 }
 0x149   :  { %v2283_v56 = vpop.f32.mrb[1].mxu0  ;;  %v516_v58 = vmul.f32 %v3266_v55, %v3266_v55 }
 0x14a   :  { %v3268_v57 = vpop.f32.mrb[2].mxu0 }
 0x14b   :  { %v508_v59 = vadd.f32 %v3268_v57, %v3266_v55  ;;  %v517_v60 = vmul.f32 %v3268_v57, %v3268_v57  ;;  %v2284_v61 = vpop.f32.mrb[3].mxu0 }
 0x14c   :  { %v2858_v61 = vld [vmem:[%s3660_s4 + $0x40] sm:$0xff]  }
 0x14d   :  { %v518_v62 = vadd.f32 %v517_v60, %v516_v58  ;;  %v509_v7 = vrot.slane %v508_v59, 4  ;;  %2364 = vmatpush3.bf16.msra.mxu0 %v2858_v61 }
 0x14e   :  { %2365 = vmatprep.subr.bf16.mxu0 %v2943_v0 }
 0x14f   :  { %v519_v10 = vrot.slane %v518_v62, 4  ;;  %v510_v13 = vadd.f32 %v509_v7, %v508_v59 }
 0x150   :  { %v3276_v63 = vpop.f32.mrb[4].mxu0 }
 0x151   :  { %v2287_v1 = vpop.f32.mrb[5].mxu0  ;;  %v545_v2 = vmul.f32 %v3276_v63, %v3276_v63  ;;  %v530_v4 = vrot.slane %v3276_v63, 2  ;;  %v520_v19 = vadd.f32 %v519_v10, %v518_v62  ;;  %v511_v24 = vrot.slane %v510_v13, 2 }
 0x152   :  { %v3280_v3 = vpop.f32.mrb[6].mxu0  ;;  %v778_v1 = vld [vmem:[#allocation3] sm:$0x1] }
 0x153   :  { %v531_v5 = vrot.slane %v3280_v3, 2  ;;  %v2288_v6 = vpop.f32.mrb[7].mxu0  ;;  %v546_v8 = vmul.f32 %v3280_v3, %v3280_v3  ;;  %v551_v11 = vrot.slane %v545_v2, 2  ;;  %v521_v27 = vrot.slane %v520_v19, 2  ;;  %v782_v2 = vld [vmem:[#allocation3 + $0x8] sm:$0x1] }
 0x154   :  { %v512_v31 = vadd.f32 %v511_v24, %v510_v13  ;;  %v825_v6 = vld [vmem:[#allocation3 + $0x10] sm:$0x2]  ;;  %v783_v7 = vsel %vm781_vm7, 0, %v782_v2  ;;  %vm3398_vm7 = vmand %vm864_vm12, %vm129_vm10 }
 0x155   :  { %v532_v9 = vsel %vm529_vm13, %v530_v4, %v531_v5  ;;  %v552_v12 = vrot.slane %v546_v8, 2  ;;  %v522_v37 = vadd.f32 %v521_v27, %v520_v19  ;;  %v779_v4 = vsel %vm3335_vm5, 0, %v778_v1  ;;  %v2859_v8 = vld [vmem:[%s3660_s4 + $0x48] sm:$0xff]   ;;  %784 = vst [vmem:[#allocation3 + $0x8] sm:$0x1] %v783_v7  ;;  %v2862_v13 = vld [vmem:[%s3660_s4 + $0x60] sm:$0xff]  }
 0x156   :  { %v513_v41 = vrot.slane %v512_v31, 1  ;;  %780 = vst [vmem:[#allocation3] sm:$0x1] %v779_v4  ;;  %v826_v10 = vsel %vm824_vm2, 0, %v825_v6  ;;  %2366 = vmatpush3.bf16.msra.mxu0 %v2859_v8 }
 0x157   :  { %v553_v14 = vsel %vm529_vm13, %v551_v11, %v552_v12  ;;  %v523_v47 = vrot.slane %v522_v37, 1  ;;  %827 = vst [vmem:[#allocation3 + $0x10] sm:$0x2] %v826_v10  ;;  %2367 = vmatprep.subr.bf16.mxu0 %v2943_v0  ;;  %v2860_v11 = vld [vmem:[%s3660_s4 + $0x50] sm:$0xff]  }
 0x158   :  { %v3288_v15 = vpop.f32.mrb[8].mxu0  ;;  %v514_v50 = vadd.f32 %v513_v41, %v512_v31 }
 0x159   :  { %v533_v16 = vrot.slane %v3288_v15, 2  ;;  %v547_v17 = vmul.f32 %v3288_v15, %v3288_v15  ;;  %v2291_v18 = vpop.f32.mrb[9].mxu0  ;;  %v524_v58 = vadd.f32 %v523_v47, %v522_v37 }
 0x15a   :  { %v498_v20 = vpop.f32.mrb[10].mxu0  ;;  %2368 = vmatpush3.bf16.msra.mxu0 %v2860_v11  ;;  %v728_v18 = vlaneseq }
 0x15b   :  { %v534_v21 = vsel %vm529_vm13, %v531_v5, %v533_v16  ;;  %v554_v22 = vrot.slane %v547_v17, 2  ;;  %v2292_v23 = vpop.f32.mrb[11].mxu0  ;;  %v821_v5 = vld [vmem:[#allocation3 + $0x8] sm:$0x2]  ;;  %2369 = vmatprep.subr.bf16.mxu0 %v2943_v0  ;;  %v2864_v16 = vld [vmem:[%s3660_s4 + $0x70] sm:$0xff]  }
 0x15c   :  { %v537_v25 = vadd.f32 %v534_v21, %v532_v9  ;;  %v822_v9 = vsel %vm820_vm8, 0, %v821_v5  ;;  %v2865_v17 = vld [vmem:[%s3660_s4 + $0x78] sm:$0xff]   ;;  %v729_v19 = vshrl.u32 %v728_v18, 7 }
 0x15d   :  { %v555_v26 = vsel %vm529_vm13, %v552_v12, %v554_v22  ;;  %823 = vst [vmem:[#allocation3 + $0x8] sm:$0x2] %v822_v9  ;;  %v2861_v12 = vld [vmem:[%s3660_s4 + $0x58] sm:$0xff]  }
 0x15e   :  { %v538_v29 = vrot.slane %v537_v25, 4  ;;  %v558_v30 = vadd.f32 %v555_v26, %v553_v14  ;;  %2370 = vmatpush3.bf16.msra.mxu0 %v2861_v12  ;;  %v2863_v14 = vld [vmem:[%s3660_s4 + $0x68] sm:$0xff]   ;;  %v3375_v20 = vsub.s32 0, %v729_v19 }
 0x15f   :  { %2371 = vmatprep.subr.bf16.mxu0 %v2943_v0 }
 0x160   :  { %v559_v34 = vrot.slane %v558_v30, 4  ;;  %v539_v35 = vadd.f32 %v538_v29, %v537_v25 }
 0x162   :  { %v560_v38 = vadd.f32 %v559_v34, %v558_v30  ;;  %v540_v40 = vrot.slane %v539_v35, 2  ;;  %2372 = vmatpush3.bf16.msra.mxu0 %v2862_v13 }
 0x163   :  { %2373 = vmatprep.subr.bf16.mxu0 %v2943_v0 }
 0x164   :  { %v541_v43 = vadd.f32 %v540_v40, %v539_v35  ;;  %v561_v44 = vrot.slane %v560_v38, 2 }
 0x166   :  { %v542_v46 = vrot.slane %v541_v43, 1  ;;  %v562_v49 = vadd.f32 %v561_v44, %v560_v38  ;;  %2374 = vmatpush3.bf16.msra.mxu0 %v2863_v14 }
 0x167   :  { %2375 = vmatprep.subr.bf16.mxu0 %v2943_v0 }
 0x168   :  { %v543_v51 = vadd.f32 %v542_v46, %v541_v43  ;;  %v563_v53 = vrot.slane %v562_v49, 1 }
 0x16a   :  { %v544_v56 = vadd.f32 %v543_v51, %v514_v50  ;;  %v564_v59 = vadd.f32 %v563_v53, %v562_v49  ;;  %2376 = vmatpush3.bf16.msra.mxu0 %v2864_v16 }
 0x16b   :  { %2377 = vmatprep.subr.bf16.mxu0 %v2943_v0 }
 0x16c   :  { %2326 = vmatmul.mubr.f32.vlgmr.msra.gmra.mrb[0].mxu1 %v544_v56  ;;  %v565_v60 = vadd.f32 %v564_v59, %v524_v58 }
 0x16d   :  { %2639 = vmatpush3.bf16.msra.mxu1 %v3191_v32  ;;  %2360 = vmatprep.mubr.msk.f32.mxu1 %vm2944_vm0, %v2943_v0 }
 0x16e   :  { %2640 = vmatprep.subr.bf16.mxu1 %v2945_v33  ;;  %2378 = vmatpush3.bf16.msra.mxu0 %v2865_v17 }
 0x16f   :  { %2391 = vmatprep.subr.bf16.mxu0 %v2943_v0 }
 0x171   :  { %2642 = vmatpush3.bf16.msra.mxu1 %v3202_v36 }
 0x172   :  { %2643 = vmatprep.subr.bf16.mxu1 %v2945_v33 }
 0x175   :  { %2645 = vmatpush3.bf16.msra.mxu1 %v3212_v39 }
 0x176   :  { %2646 = vmatprep.subr.bf16.mxu1 %v2945_v33 }
 0x179   :  { %2648 = vmatpush3.bf16.msra.mxu1 %v3222_v42 }
 0x17a   :  { %2649 = vmatprep.subr.bf16.mxu1 %v2945_v33 }
 0x17d   :  { %2651 = vmatpush3.bf16.msra.mxu1 %v3232_v45 }
 0x17e   :  { %2652 = vmatprep.subr.bf16.mxu1 %v2945_v33 }
 0x181   :  { %2654 = vmatpush3.bf16.msra.mxu1 %v3242_v48 }
 0x182   :  { %2655 = vmatprep.subr.bf16.mxu1 %v2945_v33 }
 0x185   :  { %2657 = vmatpush3.bf16.msra.mxu1 %v3255_v52 }
 0x186   :  { %2658 = vmatprep.subr.bf16.mxu1 %v2945_v33 }
 0x189   :  { %2660 = vmatpush3.bf16.msra.mxu1 %v3261_v54 }
 0x18a   :  { %2661 = vmatprep.subr.bf16.mxu1 %v2945_v33 }
 0x18c   :  { %2361 = vmatmul.mubr.f32.vlgmr.msra.gmra.mrb[2].mxu1 %v565_v60 }
 0x18d   :  { %2663 = vmatpush3.bf16.msra.mxu1 %v3191_v32  ;;  %2479 = vmatprep.mubr.msk.f32.mxu1 %vm2944_vm0, %v2943_v0 }
 0x18e   :  { %2664 = vmatprep.subr.bf16.mxu1 %v2945_v33 }
 0x191   :  { %2666 = vmatpush3.bf16.msra.mxu1 %v3202_v36 }
 0x192   :  { %2667 = vmatprep.subr.bf16.mxu1 %v2945_v33 }
 0x195   :  { %2669 = vmatpush3.bf16.msra.mxu1 %v3212_v39 }
 0x196   :  { %2670 = vmatprep.subr.bf16.mxu1 %v2945_v33 }
 0x199   :  { %2672 = vmatpush3.bf16.msra.mxu1 %v3222_v42 }
 0x19a   :  { %2673 = vmatprep.subr.bf16.mxu1 %v2945_v33 }
 0x19d   :  { %2675 = vmatpush3.bf16.msra.mxu1 %v3232_v45 }
 0x19e   :  { %2676 = vmatprep.subr.bf16.mxu1 %v2945_v33 }
 0x1a1   :  { %2678 = vmatpush3.bf16.msra.mxu1 %v3242_v48 }
 0x1a2   :  { %2679 = vmatprep.subr.bf16.mxu1 %v2945_v33 }
 0x1a5   :  { %2681 = vmatpush3.bf16.msra.mxu1 %v3255_v52 }
 0x1a6   :  { %2682 = vmatprep.subr.bf16.mxu1 %v2945_v33 }
 0x1a9   :  { %2684 = vmatpush3.bf16.msra.mxu1 %v3261_v54 }
 0x1aa   :  { %2685 = vmatprep.subr.bf16.mxu1 %v2945_v33 }
 0x23f   :  { %v648_v21 = vpop.f32.mrb[0].mxu1 }
 0x240   :  { %v722_v22 = vmul.f32 0.001953125, %v648_v21  ;;  %v2327_v23 = vpop.f32.mrb[1].mxu1 }
 0x242   :  { %v731_v24 = vrot.slane %v722_v22, %v3375_v20  ;;  %v724_v34 = vmul.f32 %v722_v22, %v722_v22  ;;  %v812_v22 = vld [vmem:[#allocation3] sm:$0xf] }
 0x244   :  { %v732_v25 = vsub.f32 %v3266_v55, %v731_v24  ;;  %v733_v26 = vsub.f32 %v3268_v57, %v731_v24  ;;  %v734_v27 = vsub.f32 %v3276_v63, %v731_v24  ;;  %v735_v29 = vsub.f32 %v3280_v3, %v731_v24  ;;  %v1985_v55 = vld [vmem:[%s3658_s2] ss:$0 sm:$0xff] }
 0x245   :  { %v736_v30 = vsub.f32 %v3288_v15, %v731_v24  ;;  %v1986_v15 = vld [vmem:[%s3659_s3] ss:$0 sm:$0xff] }
 0x25f   :  { %v718_v31 = vpop.f32.mrb[2].mxu1 }
 0x260   :  { %v723_v35 = vmul.f32 0.001953125, %v718_v31  ;;  %v2362_v37 = vpop.f32.mrb[3].mxu1 }
 0x262   :  { %v725_v38 = vsub.f32 %v723_v35, %v724_v34 }
 0x264   :  { %v726_v40 = vadd.f32 1e-05, %v725_v38 }
 0x266   :  { %2887 = vrsqrt.f32 %v726_v40  ;;  %v2880_v40 = vld [vmem:[%s3660_s4 + $0x98] sm:$0xff]  }
 0x270   :  { %v2888_v41 = vpop.eup %2887 }
 0x271   :  { %v740_v43 = vrot.slane %v2888_v41, %v3375_v20  ;;  %v866_v41 = vld [vmem:[#allocation3 + $0x8] sm:$0xe] }
 0x273   :  { %v741_v57 = vmul.f32 %v740_v43, %v732_v25  ;;  %v742_v63 = vmul.f32 %v740_v43, %v733_v26  ;;  %v743_v44 = vmul.f32 %v740_v43, %v734_v27  ;;  %v744_v3 = vmul.f32 %v740_v43, %v735_v29  ;;  %v816_v26 = vld [vmem:[#allocation3 + $0x8] sm:$0x1] }
 0x274   :  { %v745_v46 = vmul.f32 %v740_v43, %v736_v30  ;;  %v2872_v25 = vld [vmem:[%s3660_s4 + $0x18] sm:$0xff]  }
 0x275   :  { %v752_v47 = vmul.f32 %v1985_v55, %v741_v57  ;;  %v753_v49 = vmul.f32 %v1985_v55, %v742_v63  ;;  %v754_v50 = vmul.f32 %v1985_v55, %v743_v44  ;;  %v755_v51 = vmul.f32 %v1985_v55, %v744_v3 }
 0x276   :  { %v756_v53 = vmul.f32 %v1985_v55, %v745_v46 }
 0x277   :  { %v763_v56 = vadd.f32 %v1986_v15, %v752_v47  ;;  %v764_v58 = vadd.f32 %v1986_v15, %v753_v49  ;;  %v765_v59 = vadd.f32 %v1986_v15, %v754_v50  ;;  %v766_v60 = vadd.f32 %v1986_v15, %v755_v51  ;;  %v872_v51 = vld [vmem:[#allocation3 + $0x10] sm:$0x3] }
 0x278   :  { %v767_v61 = vadd.f32 %v1986_v15, %v756_v53 }
 0x279   :  { %v768_v1 = vmax.f32 %v763_v56, 0.0  ;;  %v769_v2 = vmax.f32 %v764_v58, 0.0  ;;  %v770_v4 = vmax.f32 %v765_v59, 0.0  ;;  %v771_v5 = vmax.f32 %v766_v60, 0.0 }
 0x27a   :  { %v772_v6 = vmax.f32 %v767_v61, 0.0 }
 0x27b   :  { %v2065_v7 = vpack.c.bf16 %v768_v1, %v768_v1  ;;  %v2066_v8 = vpack.c.bf16 %v769_v2, %v769_v2  ;;  %v2067_v9 = vpack.c.bf16 %v770_v4, %v770_v4  ;;  %v2068_v10 = vpack.c.bf16 %v771_v5, %v771_v5 }
 0x27c   :  { %v2069_v11 = vpack.c.bf16 %v772_v6, %v772_v6 }
 0x27d   :  { %v791_v12 = vshrl.u32 %v2065_v7, 16  ;;  %v799_v13 = vshrl.u32 %v2066_v8, 16  ;;  %v794_v14 = vshll.u32 %v2065_v7, 16  ;;  %v802_v16 = vshll.u32 %v2066_v8, 16 }
 0x27e   :  { %v837_v17 = vshrl.u32 %v2067_v9, 16  ;;  %v845_v18 = vshrl.u32 %v2068_v10, 16  ;;  %v840_v23 = vshll.u32 %v2067_v9, 16  ;;  %v854_v24 = vshrl.u32 %v2069_v11, 16 }
 0x27f   :  { %v793_v19 = vrot.slane %v791_v12, 7  ;;  %v801_v21 = vrot.slane %v799_v13, 7  ;;  %v848_v30 = vshll.u32 %v2068_v10, 16  ;;  %v857_v31 = vshll.u32 %v2069_v11, 16  ;;  %v2868_v12 = vld [vmem:[%s3660_s4] sm:$0xff]  }
 0x280   :  { %v839_v27 = vrot.slane %v837_v17, 7  ;;  %v847_v29 = vrot.slane %v845_v18, 7  ;;  %v856_v46 = vrot.slane %v854_v24, 7  ;;  %v2869_v18 = vld [vmem:[%s3660_s4 + $0x8] sm:$0xff]  }
 0x281   :  { %v796_v34 = vor.u32 %v794_v14, %v793_v19  ;;  %v797_v35 = vrot.slane %v793_v19, 4  ;;  %v804_v37 = vor.u32 %v802_v16, %v801_v21  ;;  %v806_v38 = vrot.slane %v801_v21, 4 }
 0x282   :  { %v842_v43 = vor.u32 %v840_v23, %v839_v27  ;;  %v843_v55 = vrot.slane %v839_v27, 4  ;;  %v850_v57 = vor.u32 %v848_v30, %v847_v29  ;;  %v852_v63 = vrot.slane %v847_v29, 4  ;;  %v2871_v23 = vld [vmem:[%s3660_s4 + $0x10] sm:$0xff]   ;;  %v2873_v27 = vld [vmem:[%s3660_s4 + $0x20] sm:$0xff]   ;;  %v2874_v30 = vld [vmem:[%s3660_s4 + $0x28] sm:$0xff]  }
 0x283   :  { %v805_v44 = vsel %vm3094_vm15, %v797_v35, %v804_v37  ;;  %v813_v3 = vsel %vm3392_vm1, %v796_v34, %v812_v22  ;;  %v817_v15 = vsel %vm3335_vm5, %v806_v38, %v816_v26  ;;  %v859_v50 = vor.u32 %v857_v31, %v856_v46  ;;  %v2875_v31 = vld [vmem:[%s3660_s4 + $0x30] sm:$0xff]   ;;  %v2876_v34 = vld [vmem:[%s3660_s4 + $0x38] sm:$0xff]   ;;  %v2877_v35 = vld [vmem:[%s3660_s4 + $0x80] sm:$0xff]  }
 0x284   :  { %814 = vst [vmem:[#allocation3] sm:$0xf] %v813_v3  ;;  %815 = vst [vmem:[#allocation3 + $0x4] sm:$0xf] %v805_v44  ;;  %v851_v47 = vsel %vm3094_vm15, %v843_v55, %v850_v57  ;;  %v867_v49 = vsel %vm3398_vm7, %v842_v43, %v866_v41  ;;  %v2878_v37 = vld [vmem:[%s3660_s4 + $0x88] sm:$0xff]   ;;  %v2879_v38 = vld [vmem:[%s3660_s4 + $0x90] sm:$0xff]  }
 0x285   :  { %818 = vst [vmem:[#allocation3 + $0x8] sm:$0x1] %v817_v15  ;;  %868 = vst [vmem:[#allocation3 + $0x8] sm:$0xe] %v867_v49  ;;  %v860_v62 = vsel %vm3094_vm15, %v852_v63, %v859_v50  ;;  %v2882_v41 = vld [vmem:[%s3660_s4 + $0xa0] sm:$0xff]   ;;  %v2883_v55 = vld [vmem:[%s3660_s4 + $0xa8] sm:$0xff]  }
 0x286   :  { %869 = vst [vmem:[#allocation3 + $0xc] sm:$0xf] %v851_v47  ;;  %v873_v53 = vsel %vm871_vm3, %v860_v62, %v872_v51  ;;  %v2884_v57 = vld [vmem:[%s3660_s4 + $0xb0] sm:$0xff]   ;;  %v2885_v63 = vld [vmem:[%s3660_s4 + $0xb8] sm:$0xff]  }
 0x287   :  { %874 = vst [vmem:[#allocation3 + $0x10] sm:$0x3] %v873_v53 }
 0x28b   :  { %v875_v56 = vld [vmem:[#allocation3] sm:$0xf]  ;;  %v876_v58 = vld [vmem:[#allocation3 + $0x4] sm:$0xf] }
 0x28c   :  { %v1167_v59 = vld [vmem:[#allocation3] sm:$0xe]  ;;  %v2008_v60 = vcombine.low %v875_v56, %v876_v58 }
 0x28d   :  { %v2867_v61 = vld [vmem:[#allocation3 + $0x8] sm:$0xff]   ;;  %v2044_v1 = vcombine.low %v1167_v59, %v876_v58 }
 0x28e   :  { %v930_v2 = vshll.u32 %v2008_v60, 16  ;;  %v935_v4 = vshll.u32 %v2867_v61, 16  ;;  %v1189_v6 = vrot.slane %v2867_v61, 1  ;;  %v928_v7 = vshrl.u32 %v2008_v60, 16 }
 0x28f   :  { %v1188_v5 = vrot.slane %v2044_v1, 1  ;;  %v3416_v9 = vld [vmem:[#allocation3 + $0x10] ss:$0 sps:$4 sm:$0x33]   ;;  %v939_v19 = vshrl.u32 %v2867_v61, 16 }
 0x290   :  { %v932_v8 = vrot.slane %v930_v2, 1  ;;  %v937_v11 = vrot.slane %v935_v4, 1  ;;  %v1191_v13 = vrot.slane %v3416_v9, 1  ;;  %v943_v16 = vshll.u32 %v3416_v9, 16 }
 0x291   :  { %v3419_v10 = vsel %vm412_vm11, %v1188_v5, %v1189_v6  ;;  %v947_v26 = vshrl.u32 %v3416_v9, 16  ;;  %v2881_v43 = vld [vmem:[#allocation3 + $0x10] ss:$0 sps:$4 sm:$0x11]  }
 0x292   :  { %v933_v28 = vor.u32 %v932_v8, %v928_v7  ;;  %v3430_v17 = vsel %vm412_vm11, %v1189_v6, %v1191_v13  ;;  %v941_v21 = vor.u32 %v939_v19, %v937_v11  ;;  %v945_v22 = vrot.slane %v943_v16, 1 }
 0x294   :  { %v938_v14 = vsel %vm209_vm4, %v933_v28, %v937_v11  ;;  %v946_v24 = vsel %vm209_vm4, %v941_v21, %v945_v22  ;;  %v949_v29 = vor.u32 %v947_v26, %v945_v22 }
 0x295   :  { %2380 = vmatmul.mubr.bf16.vlgmr.msra.gmra.mrb[12].mxu0 %v938_v14 }
 0x296   :  { %2392 = vmatpush3.bf16.msra.mxu0 %v2868_v12  ;;  %2383 = vmatprep.mubr.msk.bf16.mxu0 %vm2944_vm0, %v2943_v0 }
 0x297   :  { %2393 = vmatprep.subr.bf16.mxu0 %v2943_v0 }
 0x29a   :  { %2394 = vmatpush3.bf16.msra.mxu0 %v2869_v18 }
 0x29b   :  { %2395 = vmatprep.subr.bf16.mxu0 %v2943_v0 }
 0x29d   :  { %2384 = vmatmul.mubr.bf16.gmra.mrb[16].mxu0 %v946_v24 }
 0x29e   :  { %2396 = vmatpush3.bf16.msra.mxu0 %v2871_v23  ;;  %2387 = vmatprep.mubr.msk.bf16.mxu0 %vm2944_vm0, %v2943_v0 }
 0x29f   :  { %2397 = vmatprep.subr.bf16.mxu0 %v2943_v0 }
 0x2a2   :  { %2398 = vmatpush3.bf16.msra.mxu0 %v2872_v25 }
 0x2a3   :  { %2399 = vmatprep.subr.bf16.mxu0 %v2943_v0 }
 0x2a5   :  { %2388 = vmatmul.mubr.bf16.gmra.mrb[20].mxu0 %v949_v29 }
 0x2a6   :  { %2400 = vmatpush3.bf16.msra.mxu0 %v2873_v27  ;;  %2407 = vmatprep.mubr.msk.bf16.mxu0 %vm2944_vm0, %v2943_v0 }
 0x2a7   :  { %2401 = vmatprep.subr.bf16.mxu0 %v2943_v0 }
 0x2aa   :  { %2402 = vmatpush3.bf16.msra.mxu0 %v2874_v30 }
 0x2ab   :  { %2403 = vmatprep.subr.bf16.mxu0 %v2943_v0 }
 0x2ae   :  { %2404 = vmatpush3.bf16.msra.mxu0 %v2875_v31 }
 0x2af   :  { %2405 = vmatprep.subr.bf16.mxu0 %v2943_v0 }
 0x2b2   :  { %2406 = vmatpush3.bf16.msra.mxu0 %v2876_v34 }
 0x2b3   :  { %2419 = vmatprep.subr.bf16.mxu0 %v2943_v0 }
 0x2b5   :  { %2408 = vmatmul.mubr.bf16.vlgmr.msra.gmra.mrb[12].mxu0 %v2008_v60 }
 0x2b6   :  { %2420 = vmatpush3.bf16.msra.mxu0 %v2877_v35  ;;  %2411 = vmatprep.mubr.msk.bf16.mxu0 %vm2944_vm0, %v2943_v0 }
 0x2b7   :  { %2421 = vmatprep.subr.bf16.mxu0 %v2943_v0 }
 0x2ba   :  { %2422 = vmatpush3.bf16.msra.mxu0 %v2878_v37 }
 0x2bb   :  { %2423 = vmatprep.subr.bf16.mxu0 %v2943_v0 }
 0x2bd   :  { %2412 = vmatmul.mubr.bf16.gmra.mrb[16].mxu0 %v2867_v61 }
 0x2be   :  { %2424 = vmatpush3.bf16.msra.mxu0 %v2879_v38  ;;  %2415 = vmatprep.mubr.msk.bf16.mxu0 %vm2944_vm0, %v2943_v0 }
 0x2bf   :  { %2425 = vmatprep.subr.bf16.mxu0 %v2943_v0 }
 0x2c2   :  { %2426 = vmatpush3.bf16.msra.mxu0 %v2880_v40 }
 0x2c3   :  { %2427 = vmatprep.subr.bf16.mxu0 %v2943_v0 }
 0x2c5   :  { %2416 = vmatmul.mubr.bf16.gmra.mrb[20].mxu0 %v2881_v43 }
 0x2c6   :  { %2428 = vmatpush3.bf16.msra.mxu0 %v2882_v41  ;;  %2435 = vmatprep.mubr.msk.bf16.mxu0 %vm2944_vm0, %v2943_v0 }
 0x2c7   :  { %2429 = vmatprep.subr.bf16.mxu0 %v2943_v0 }
 0x2ca   :  { %2430 = vmatpush3.bf16.msra.mxu0 %v2883_v55 }
 0x2cb   :  { %2431 = vmatprep.subr.bf16.mxu0 %v2943_v0 }
 0x2ce   :  { %2432 = vmatpush3.bf16.msra.mxu0 %v2884_v57 }
 0x2cf   :  { %2433 = vmatprep.subr.bf16.mxu0 %v2943_v0 }
 0x2d2   :  { %2434 = vmatpush3.bf16.msra.mxu0 %v2885_v63 }
 0x2d5   :  { %2436 = vmatmul.mubr.bf16.vlgmr.msra.gmra.mrb[12].mxu0 %v3419_v10 }
 0x2d6   :  { %2439 = vmatprep.mubr.msk.bf16.mxu0 %vm2944_vm0, %v2943_v0 }
 0x2dd   :  { %2440 = vmatmul.mubr.bf16.gmra.mrb[16].mxu0 %v3430_v17 }
 0x2de   :  { %2443 = vmatprep.mubr.msk.bf16.mxu0 %vm2944_vm0, %v2943_v0 }
 0x2e5   :  { %2444 = vmatmul.mubr.bf16.gmra.mrb[20].mxu0 %v1191_v13 }
 0x3a8   :  { %v3514_v44 = vpop.f32.mrb[12].mxu0 }
 0x3a9   :  { %v2437_v3 = vpop.f32.mrb[13].mxu0  ;;  %v1315_v46 = vmul.f32 %v3514_v44, %v3514_v44 }
 0x3aa   :  { %v3516_v15 = vpop.f32.mrb[14].mxu0 }
 0x3ab   :  { %v1307_v47 = vadd.f32 %v3516_v15, %v3514_v44  ;;  %v1316_v49 = vmul.f32 %v3516_v15, %v3516_v15  ;;  %v2438_v50 = vpop.f32.mrb[15].mxu0 }
 0x3ac   :  { %v1846_v50 = vld [vmem:[#allocation6 + $0x30] sm:$0xff] }
 0x3ad   :  { %v1317_v51 = vadd.f32 %v1316_v49, %v1315_v46  ;;  %v1308_v1 = vrot.slane %v1307_v47, 4 }
 0x3af   :  { %v1318_v5 = vrot.slane %v1317_v51, 4  ;;  %v1309_v8 = vadd.f32 %v1308_v1, %v1307_v47 }
 0x3b0   :  { %v3524_v62 = vpop.f32.mrb[16].mxu0 }
 0x3b1   :  { %v2441_v53 = vpop.f32.mrb[17].mxu0  ;;  %v1343_v56 = vmul.f32 %v3524_v62, %v3524_v62  ;;  %v1328_v59 = vrot.slane %v3524_v62, 2  ;;  %v1319_v13 = vadd.f32 %v1318_v5, %v1317_v51  ;;  %v1310_v19 = vrot.slane %v1309_v8, 2  ;;  %v1847_v51 = vld [vmem:[#allocation6 + $0x38] sm:$0xff] }
 0x3b2   :  { %v3528_v58 = vpop.f32.mrb[18].mxu0  ;;  %v2769_v53 = vpack.c.bf16 %v1847_v51, %v1846_v50  ;;  %v1759_v51 = vld [vmem:[%s3666_s10 + $0x50] sm:$0xff] }
 0x3b3   :  { %v1329_v60 = vrot.slane %v3528_v58, 2  ;;  %v2442_v61 = vpop.f32.mrb[19].mxu0  ;;  %v1344_v2 = vmul.f32 %v3528_v58, %v3528_v58  ;;  %v1349_v6 = vrot.slane %v1343_v56, 2  ;;  %v1320_v23 = vrot.slane %v1319_v13, 2  ;;  %v1848_v56 = vld [vmem:[#allocation6 + $0x40] sm:$0xff] }
 0x3b4   :  { %v1311_v26 = vadd.f32 %v1310_v19, %v1309_v8 }
 0x3b5   :  { %v1330_v4 = vsel %vm529_vm13, %v1328_v59, %v1329_v60  ;;  %v1350_v7 = vrot.slane %v1344_v2, 2  ;;  %v1321_v30 = vadd.f32 %v1320_v23, %v1319_v13  ;;  %v1849_v59 = vld [vmem:[#allocation6 + $0x48] sm:$0xff] }
 0x3b6   :  { %v1312_v35 = vrot.slane %v1311_v26, 1 }
 0x3b7   :  { %v1351_v9 = vsel %vm529_vm13, %v1349_v6, %v1350_v7  ;;  %v1322_v41 = vrot.slane %v1321_v30, 1 }
 0x3b8   :  { %v3536_v10 = vpop.f32.mrb[20].mxu0  ;;  %v1313_v55 = vadd.f32 %v1312_v35, %v1311_v26 }
 0x3b9   :  { %v1331_v28 = vrot.slane %v3536_v10, 2  ;;  %v1345_v11 = vmul.f32 %v3536_v10, %v3536_v10  ;;  %v2445_v12 = vpop.f32.mrb[21].mxu0  ;;  %v1323_v46 = vadd.f32 %v1322_v41, %v1321_v30 }
 0x3ba   :  { %v1297_v14 = vpop.f32.mrb[22].mxu0 }
 0x3bb   :  { %v1332_v16 = vsel %vm529_vm13, %v1329_v60, %v1331_v28  ;;  %v1352_v17 = vrot.slane %v1345_v11, 2  ;;  %v2446_v18 = vpop.f32.mrb[23].mxu0  ;;  %v2773_v60 = vpack.c.bf16 %v1849_v59, %v1848_v56  ;;  %v1850_v56 = vld [vmem:[#allocation6 + $0x50] sm:$0xff] }
 0x3bc   :  { %v1335_v21 = vadd.f32 %v1332_v16, %v1330_v4 }
 0x3bd   :  { %v1353_v22 = vsel %vm529_vm13, %v1350_v7, %v1352_v17 }
 0x3be   :  { %v1336_v24 = vrot.slane %v1335_v21, 4  ;;  %v1356_v25 = vadd.f32 %v1353_v22, %v1351_v9 }
 0x3c0   :  { %v1337_v27 = vadd.f32 %v1336_v24, %v1335_v21  ;;  %v1357_v29 = vrot.slane %v1356_v25, 4 }
 0x3c2   :  { %v1338_v31 = vrot.slane %v1337_v27, 2  ;;  %v1358_v34 = vadd.f32 %v1357_v29, %v1356_v25 }
 0x3c4   :  { %v1339_v37 = vadd.f32 %v1338_v31, %v1337_v27  ;;  %v1359_v38 = vrot.slane %v1358_v34, 2 }
 0x3c6   :  { %v1340_v40 = vrot.slane %v1339_v37, 1  ;;  %v1360_v43 = vadd.f32 %v1359_v38, %v1358_v34 }
 0x3c8   :  { %v1341_v57 = vadd.f32 %v1340_v40, %v1339_v37  ;;  %v1361_v63 = vrot.slane %v1360_v43, 1 }
 0x3ca   :  { %v1342_v3 = vadd.f32 %v1341_v57, %v1313_v55  ;;  %v1362_v47 = vadd.f32 %v1361_v63, %v1360_v43  ;;  %v1577_v55 = vld [vmem:[%s3664_s8 + $0x8] sm:$0xff]  ;;  %v1749_v63 = vld [vmem:[%s3666_s10] sm:$0xff] }
 0x3cb   :  { %v1664_v57 = vld [vmem:[#allocation4] sm:$0xff] }
 0x3cc   :  { %2480 = vmatmul.mubr.f32.vlgmr.msra.gmra.mrb[4].mxu1 %v1342_v3  ;;  %v1363_v49 = vadd.f32 %v1362_v47, %v1323_v46  ;;  %v1750_v3 = vld [vmem:[%s3666_s10 + $0x8] sm:$0xff]  ;;  %v1751_v46 = vld [vmem:[%s3666_s10 + $0x10] sm:$0xff]  ;;  %v1752_v47 = vld [vmem:[%s3666_s10 + $0x18] sm:$0xff] }
 0x3cd   :  { %2687 = vmatpush3.bf16.msra.mxu1 %v3191_v32  ;;  %2514 = vmatprep.mubr.msk.f32.mxu1 %vm2944_vm0, %v2943_v0  ;;  %v1576_v0 = vld [vmem:[%s3664_s8] sm:$0xff]  ;;  %vm1578_vm0 = vcmask 277504   ;;  %v1840_v32 = vld [vmem:[#allocation6] sm:$0xff] }
 0x3ce   :  { %2688 = vmatprep.subr.bf16.mxu1 %v2945_v33 }
 0x3d1   :  { %2690 = vmatpush3.bf16.msra.mxu1 %v3202_v36  ;;  %v1841_v36 = vld [vmem:[#allocation6 + $0x8] sm:$0xff] }
 0x3d2   :  { %2691 = vmatprep.subr.bf16.mxu1 %v2945_v33 }
 0x3d5   :  { %2693 = vmatpush3.bf16.msra.mxu1 %v3212_v39  ;;  %v2757_v39 = vpack.c.bf16 %v1841_v36, %v1840_v32  ;;  %v2729_v32 = vpack.c.bf16 %v1752_v47, %v1751_v46  ;;  %v1753_v36 = vld [vmem:[%s3666_s10 + $0x20] sm:$0xff] }
 0x3d6   :  { %2694 = vmatprep.subr.bf16.mxu1 %v2945_v33 }
 0x3d7   :  { %2758 = vmatprep.subr.bf16.mxu0 %v2757_v39 }
 0x3d8   :  { %2760 = vmatpush3.bf16.msra.mxu0 %v2757_v39  ;;  %v1754_v39 = vld [vmem:[%s3666_s10 + $0x28] sm:$0xff] }
 0x3d9   :  { %2696 = vmatpush3.bf16.msra.mxu1 %v3222_v42  ;;  %v1842_v42 = vld [vmem:[#allocation6 + $0x10] sm:$0xff] }
 0x3da   :  { %2697 = vmatprep.subr.bf16.mxu1 %v2945_v33 }
 0x3dd   :  { %2699 = vmatpush3.bf16.msra.mxu1 %v3232_v45  ;;  %v1843_v45 = vld [vmem:[#allocation6 + $0x18] sm:$0xff] }
 0x3de   :  { %2700 = vmatprep.subr.bf16.mxu1 %v2945_v33 }
 0x3e1   :  { %2702 = vmatpush3.bf16.msra.mxu1 %v3242_v48  ;;  %v2761_v48 = vpack.c.bf16 %v1843_v45, %v1842_v42  ;;  %v2733_v42 = vpack.c.bf16 %v1754_v39, %v1753_v36  ;;  %v1755_v45 = vld [vmem:[%s3666_s10 + $0x30] sm:$0xff] }
 0x3e2   :  { %2703 = vmatprep.subr.bf16.mxu1 %v2945_v33 }
 0x3e3   :  { %2762 = vmatprep.subr.bf16.mxu0 %v2761_v48 }
 0x3e4   :  { %2764 = vmatpush3.bf16.msra.mxu0 %v2761_v48  ;;  %v1756_v48 = vld [vmem:[%s3666_s10 + $0x38] sm:$0xff] }
 0x3e5   :  { %2705 = vmatpush3.bf16.msra.mxu1 %v3255_v52  ;;  %v1845_v52 = vld [vmem:[#allocation6 + $0x28] sm:$0xff] }
 0x3e6   :  { %2706 = vmatprep.subr.bf16.mxu1 %v2945_v33  ;;  %v1844_v33 = vld [vmem:[#allocation6 + $0x20] sm:$0xff] }
 0x3e9   :  { %2708 = vmatpush3.bf16.msra.mxu1 %v3261_v54  ;;  %v2765_v54 = vpack.c.bf16 %v1845_v52, %v1844_v33  ;;  %v2737_v33 = vpack.c.bf16 %v1756_v48, %v1755_v45  ;;  %v1757_v52 = vld [vmem:[%s3666_s10 + $0x40] sm:$0xff] }
 0x3eb   :  { %2766 = vmatprep.subr.bf16.mxu0 %v2765_v54 }
 0x3ec   :  { %2515 = vmatmul.mubr.f32.vlgmr.msra.gmra.mrb[6].mxu1 %v1363_v49  ;;  %2768 = vmatpush3.bf16.msra.mxu0 %v2765_v54  ;;  %v2725_v49 = vpack.c.bf16 %v1750_v3, %v1749_v63  ;;  %v1758_v54 = vld [vmem:[%s3666_s10 + $0x48] sm:$0xff] }
 0x3ed   :  { %2527 = vmatprep.mubr.msk.f32.mxu1 %vm1578_vm0, %v1576_v0  ;;  %2770 = vmatprep.subr.bf16.mxu0 %v2769_v53  ;;  %v1665_v0 = vld [vmem:[#allocation4 + $0x8] sm:$0xff]  ;;  %v2741_v50 = vpack.c.bf16 %v1758_v54, %v1757_v52 }
 0x3f0   :  { %2772 = vmatpush3.bf16.msra.mxu0 %v2769_v53  ;;  %v1760_v53 = vld [vmem:[%s3666_s10 + $0x58] sm:$0xff] }
 0x3f1   :  { %2774 = vmatprep.subr.bf16.mxu0 %v2773_v60  ;;  %v2745_v59 = vpack.c.bf16 %v1760_v53, %v1759_v51 }
 0x3f4   :  { %2776 = vmatpush3.bf16.msra.mxu0 %v2773_v60  ;;  %v1851_v60 = vld [vmem:[#allocation6 + $0x58] sm:$0xff] }
 0x49f   :  { %v1446_v61 = vpop.f32.mrb[4].mxu1 }
 0x4a0   :  { %v1520_v1 = vmul.f32 0.001953125, %v1446_v61  ;;  %v2481_v2 = vpop.f32.mrb[5].mxu1  ;;  %v1761_v61 = vld [vmem:[%s3666_s10 + $0x60] sm:$0xff] }
 0x4a1   :  { %v2777_v2 = vpack.c.bf16 %v1851_v60, %v1850_v56 }
 0x4a2   :  { %v1529_v4 = vrot.slane %v1520_v1, %v3375_v20  ;;  %v1522_v11 = vmul.f32 %v1520_v1, %v1520_v1  ;;  %v1762_v1 = vld [vmem:[%s3666_s10 + $0x68] sm:$0xff] }
 0x4a3   :  { %2778 = vmatprep.subr.bf16.mxu0 %v2777_v2 }
 0x4a4   :  { %v1530_v5 = vsub.f32 %v3514_v44, %v1529_v4  ;;  %v1531_v6 = vsub.f32 %v3516_v15, %v1529_v4  ;;  %v1532_v7 = vsub.f32 %v3524_v62, %v1529_v4  ;;  %v1533_v8 = vsub.f32 %v3528_v58, %v1529_v4  ;;  %v2053_v44 = vld [vmem:[%s3661_s5] ss:$0 sm:$0xff]  ;;  %2780 = vmatpush3.bf16.msra.mxu0 %v2777_v2 }
 0x4a5   :  { %v1534_v9 = vsub.f32 %v3536_v10, %v1529_v4  ;;  %v2054_v10 = vld [vmem:[%s3662_s6] ss:$0 sm:$0xff]  ;;  %v2749_v4 = vpack.c.bf16 %v1762_v1, %v1761_v61 }
 0x4bf   :  { %v1516_v28 = vpop.f32.mrb[6].mxu1 }
 0x4c0   :  { %v1521_v12 = vmul.f32 0.001953125, %v1516_v28  ;;  %v2516_v13 = vpop.f32.mrb[7].mxu1  ;;  %v1854_v28 = vld [vmem:[#allocation6 + $0x70] sm:$0xff] }
 0x4c2   :  { %v1523_v14 = vsub.f32 %v1521_v12, %v1522_v11  ;;  %v1855_v12 = vld [vmem:[#allocation6 + $0x78] sm:$0xff] }
 0x4c3   :  { %v2785_v13 = vpack.c.bf16 %v1855_v12, %v1854_v28 }
 0x4c4   :  { %v1524_v16 = vadd.f32 1e-05, %v1523_v14 }
 0x4c6   :  { %2889 = vrsqrt.f32 %v1524_v16 }
 0x4d0   :  { %v2890_v17 = vpop.eup %2889 }
 0x4d1   :  { %v1538_v18 = vrot.slane %v2890_v17, %v3375_v20 }
 0x4d3   :  { %v1539_v15 = vmul.f32 %v1538_v18, %v1530_v5  ;;  %v1540_v62 = vmul.f32 %v1538_v18, %v1531_v6  ;;  %v1541_v19 = vmul.f32 %v1538_v18, %v1532_v7  ;;  %v1542_v58 = vmul.f32 %v1538_v18, %v1533_v8  ;;  %v1852_v5 = vld [vmem:[#allocation6 + $0x60] sm:$0xff]  ;;  %v1853_v6 = vld [vmem:[#allocation6 + $0x68] sm:$0xff]  ;;  %v1763_v8 = vld [vmem:[%s3666_s10 + $0x70] sm:$0xff] }
 0x4d4   :  { %v1543_v21 = vmul.f32 %v1538_v18, %v1534_v9  ;;  %v2781_v7 = vpack.c.bf16 %v1853_v6, %v1852_v5  ;;  %v1764_v9 = vld [vmem:[%s3666_s10 + $0x78] sm:$0xff] }
 0x4d5   :  { %v1550_v22 = vmul.f32 %v2053_v44, %v1539_v15  ;;  %v1551_v23 = vmul.f32 %v2053_v44, %v1540_v62  ;;  %v1552_v24 = vmul.f32 %v2053_v44, %v1541_v19  ;;  %v1553_v25 = vmul.f32 %v2053_v44, %v1542_v58 }
 0x4d6   :  { %v1554_v26 = vmul.f32 %v2053_v44, %v1543_v21  ;;  %2782 = vmatprep.subr.bf16.mxu0 %v2781_v7  ;;  %v2753_v11 = vpack.c.bf16 %v1764_v9, %v1763_v8 }
 0x4d7   :  { %v1561_v27 = vadd.f32 %v2054_v10, %v1550_v22  ;;  %v1562_v20 = vadd.f32 %v2054_v10, %v1551_v23  ;;  %v1563_v29 = vadd.f32 %v2054_v10, %v1552_v24  ;;  %v1564_v30 = vadd.f32 %v2054_v10, %v1553_v25  ;;  %2784 = vmatpush3.bf16.msra.mxu0 %v2781_v7 }
 0x4d8   :  { %v1565_v31 = vadd.f32 %v2054_v10, %v1554_v26  ;;  %2786 = vmatprep.subr.bf16.mxu0 %v2785_v13 }
 0x4d9   :  { %v1566_v34 = vmax.f32 %v1561_v27, 0.0  ;;  %v1567_v35 = vmax.f32 %v1562_v20, 0.0  ;;  %v1568_v37 = vmax.f32 %v1563_v29, 0.0  ;;  %v1569_v38 = vmax.f32 %v1564_v30, 0.0 }
 0x4da   :  { %v1570_v40 = vmax.f32 %v1565_v31, 0.0 }
 0x4db   :  { %1571 = vst [vmem:[%s3668_s12] sm:$0xff] %v1566_v34  ;;  %1572 = vst [vmem:[%s3668_s12 + $0x8] sm:$0xff] %v1567_v35  ;;  %v2709_v41 = vpack.c.bf16 %v1567_v35, %v1566_v34  ;;  %v2713_v43 = vpack.c.bf16 %v1569_v38, %v1568_v37  ;;  %2788 = vmatpush3.bf16.msra.mxu0 %v2785_v13 }
 0x4dc   :  { %1573 = vst [vmem:[%s3668_s12 + $0xe] sm:$0xfc] %v1568_v37  ;;  %1574 = vst [vmem:[%s3668_s12 + $0x16] sm:$0xff] %v1569_v38 }
 0x4dd   :  { %1575 = vst [vmem:[%s3668_s12 + $0x1e] sm:$0x3] %v1570_v40  ;;  %2710 = vmatprep.subr.bf16.mxu1 %v2709_v41 }
 0x4de   :  { %2712 = vmatpush3.bf16.msra.mxu1 %v2709_v41 }
 0x4df   :  { %2714 = vmatprep.subr.bf16.mxu1 %v2713_v43 }
 0x4e2   :  { %2716 = vmatpush3.bf16.msra.mxu1 %v2713_v43 }
 0x4e3   :  { %2525 = vmatprep.subr.msk.mxu1 %vm870_vm14, %v1570_v40 }
 0x4e6   :  { %2526 = vmatpush3.msk.msra.mxu1 %vm870_vm14, %v1570_v40 }
 0x4e7   :  { %2528 = vmatmul.mubr.msk.f32.vlgmr.msra.gmra.mrb[8].mxu1 %vm1578_vm0, %v1577_v55  ;;  %2718 = vmatprep.subr.bf16.mxu1 %v2709_v41 }
 0x4e8   :  { %2720 = vmatpush3.bf16.msra.mxu1 %v2709_v41  ;;  %2540 = vmatprep.mubr.msk.f32.mxu1 %vm1578_vm0, %v1664_v57 }
 0x4e9   :  { %2722 = vmatprep.subr.bf16.mxu1 %v2713_v43 }
 0x4ec   :  { %2724 = vmatpush3.bf16.msra.mxu1 %v2713_v43 }
 0x4ed   :  { %2538 = vmatprep.subr.msk.mxu1 %vm870_vm14, %v1570_v40 }
 0x4f0   :  { %2539 = vmatpush3.msk.msra.mxu1 %vm870_vm14, %v1570_v40 }
 0x4f1   :  { %2541 = vmatmul.mubr.msk.f32.vlgmr.msra.gmra.mrb[10].mxu1 %vm1578_vm0, %v1665_v0  ;;  %2726 = vmatprep.subr.bf16.mxu1 %v2725_v49 }
 0x4f2   :  { %2728 = vmatpush3.bf16.msra.mxu1 %v2725_v49 }
 0x4f3   :  { %2730 = vmatprep.subr.bf16.mxu1 %v2729_v32 }
 0x4f6   :  { %2732 = vmatpush3.bf16.msra.mxu1 %v2729_v32 }
 0x4f7   :  { %2734 = vmatprep.subr.bf16.mxu1 %v2733_v42 }
 0x4fa   :  { %2736 = vmatpush3.bf16.msra.mxu1 %v2733_v42 }
 0x4fb   :  { %2738 = vmatprep.subr.bf16.mxu1 %v2737_v33 }
 0x4fe   :  { %2740 = vmatpush3.bf16.msra.mxu1 %v2737_v33 }
 0x4ff   :  { %2742 = vmatprep.subr.bf16.mxu1 %v2741_v50 }
 0x502   :  { %2744 = vmatpush3.bf16.msra.mxu1 %v2741_v50 }
 0x503   :  { %2746 = vmatprep.subr.bf16.mxu1 %v2745_v59 }
 0x506   :  { %2748 = vmatpush3.bf16.msra.mxu1 %v2745_v59 }
 0x507   :  { %2750 = vmatprep.subr.bf16.mxu1 %v2749_v4 }
 0x50a   :  { %2752 = vmatpush3.bf16.msra.mxu1 %v2749_v4 }
 0x50b   :  { %2754 = vmatprep.subr.bf16.mxu1 %v2753_v11 }
 0x50e   :  { %2756 = vmatpush3.bf16.msra.mxu1 %v2753_v11 }
 0x5ba   :  { %v2529_v14 = vpop.f32.mrb[8].mxu1 }
 0x5bb   :  { %v1655_v16 = vpop.f32.mrb[9].mxu1 }
 0x5c4   :  { %v2542_v17 = vpop.f32.mrb[10].mxu1 }
 0x5c5   :  { %v1748_v18 = vmax.f32 %v2529_v14, %v2542_v17  ;;  %v1738_v44 = vpop.f32.mrb[11].mxu1 }
 0x5c6   :  { %v1747_v15 = vmax.f32 %v1655_v16, %v1738_v44 }
 0x5c8   :  { %2575 = vmatprep.mubr.f32.mxu1 %v1747_v15  ;;  %2610 = vmatprep.mubr.f32.mxu0 %v1747_v15 }
 0x5c9   :  { %2576 = vmatmul.mubr.f32.vlgmr.msra.gmra.mrb[12].mxu1 %v1748_v18  ;;  %2611 = vmatmul.mubr.f32.vlgmr.msra.gmra.mrb[24].mxu0 %v1748_v18 }
 0x69c   :  { %v2577_v62 = vpop.f32.mrb[12].mxu1  ;;  %v2612_v19 = vpop.f32.mrb[24].mxu0 }
 0x69d   :  { %v1932_v58 = vmax.f32 %v2577_v62, %v2612_v19  ;;  %v1831_v10 = vpop.f32.mrb[13].mxu1  ;;  %v1922_v21 = vpop.f32.mrb[25].mxu0 }
 0x69e   :  { %v1931_v22 = vmax.f32 %v1831_v10, %v1922_v21 }
 0x69f   :  { %1935 = vst.msk [vmem:[%s3669_s13 + $0x8] sm:$0xff] %vm1933_vm6, %v1932_v58 }
 0x6a0   :  { %1934 = vst.msk [vmem:[%s3669_s13] sm:$0xff] %vm1933_vm6, %v1931_v22 }
 0x6a1   :  { %1944 = vsyncpa [#allocation5], 1 }
 0x6a2   :  { %1945 = vsyncpa [#allocation7], 1 }

// kernel: encoder_projection_forward.5
= control target key start
LH: loop header
LB: loop body
LE: loop exit
PB: predicated region body
PF: predicated region fallthrough
CT: control target
= control target key end

     0   :  { %vm45_vm0 = vsmask.f32 256  ;;  %vm44_vm1 = vcmask 516096   ;;  %v47_v2 = vld [vmem:[#allocation2] sm:$0x1]  ;;  %vm78_vm4 = vcmask 517121   ;;  %s3117_s1 = inlined_call_operand.vmem [shape: bf16[3,64,128], index: 1, kind: input, shape index: {}]   ;;  %s3118_s0 = inlined_call_operand.vmem [shape: f32[16,64], index: 0, kind: input, shape index: {}]   ;;  %s3119_s7 = inlined_call_operand.vmem [shape: f32[128,128], index: 7, kind: input, shape index: {}]   ;;  %s3120_s4 = inlined_call_operand.vmem [shape: bf16[3,128,128], index: 4, kind: input, shape index: {}]   ;;  %s3121_s2 = inlined_call_operand.vmem [shape: f32[1,128], index: 2, kind: input, shape index: {}]   ;;  %s3122_s3 = inlined_call_operand.vmem [shape: f32[1,128], index: 3, kind: input, shape index: {}]   ;;  %s3123_s11 = inlined_call_operand.vmem [shape: f32[128,64], index: 11, kind: input, shape index: {}]   ;;  %s3124_s5 = inlined_call_operand.vmem [shape: f32[1,128], index: 5, kind: input, shape index: {}]   ;;  %s3125_s6 = inlined_call_operand.vmem [shape: f32[1,128], index: 6, kind: input, shape index: {}]   ;;  %s3126_s12 = inlined_call_operand.vmem [shape: f32[16,128], index: 12, kind: output, shape index: {0}]   ;;  %s3127_s8 = inlined_call_operand.vmem [shape: f32[8,18], index: 8, kind: input, shape index: {}]   ;;  %s3128_s10 = inlined_call_operand.vmem [shape: f32[128,64], index: 10, kind: input, shape index: {}]   ;;  %s3129_s9 = inlined_call_operand.vmem [shape: f32[8,18], index: 9, kind: input, shape index: {}]   ;;  %s3130_s13 = inlined_call_operand.vmem [shape: f32[8,64], index: 13, kind: output, shape index: {1}]  }
   0x1   :  { %v2468_v0 = vld [vmem:[%s3117_s1 + $0x20] sm:$0xff]   ;;  %v2469_v1 = vld [vmem:[%s3117_s1 + $0x28] sm:$0xff]   ;;  %v2470_v3 = vld [vmem:[%s3117_s1 + $0x30] sm:$0xff]   ;;  %vm50_vm3 = vsmask.f32 7938  ;;  %vm70_vm8 = vcmask 519168  }
   0x2   :  { %1975 = vmatprep.subr.bf16.mxu0 %v2468_v0  ;;  %vm2599_vm2 = vmand %vm44_vm1, %vm45_vm0  ;;  %v52_v5 = vld [vmem:[#allocation2 + $0x4] sm:$0x1]  ;;  %vm79_vm6 = vsmask.f32 1280  ;;  %v81_v9 = vld [vmem:[#allocation2 + $0x4] sm:$0x2] }
   0x3   :  { %1976 = vmatpush3.bf16.msra.mxu0 %v2468_v0  ;;  %v55_v6 = vld [vmem:[%s3118_s0] sm:$0xff]  ;;  %v48_v7 = vsel %vm2599_vm2, 0, %v47_v2  ;;  %vm51_vm5 = vmand %vm44_vm1, %vm50_vm3  ;;  %v89_v10 = vld [vmem:[%s3118_s0 + $0x8] sm:$0xff]  ;;  %vm84_vm7 = vsmask.f32 7942  ;;  %vm105_vm10 = vcmask 519169  }
   0x4   :  { %1977 = vmatprep.subr.bf16.mxu0 %v2469_v1  ;;  %v1812_v8 = vpack.c.bf16 %v55_v6, %v55_v6  ;;  %49 = vst [vmem:[#allocation2] sm:$0x1] %v48_v7  ;;  %v53_v11 = vsel %vm51_vm5, 0, %v52_v5  ;;  %v86_v12 = vld [vmem:[#allocation2 + $0x8] sm:$0x2]  ;;  %v1813_v13 = vpack.c.bf16 %v89_v10, %v89_v10  ;;  %vm80_vm9 = vmand %vm78_vm4, %vm79_vm6  ;;  %v2471_v16 = vld [vmem:[%s3117_s1 + $0x38] sm:$0xff]  }
   0x5   :  { %54 = vst [vmem:[#allocation2 + $0x4] sm:$0x1] %v53_v11  ;;  %v82_v17 = vsel %vm80_vm9, 0, %v81_v9  ;;  %vm85_vm11 = vmand %vm78_vm4, %vm84_vm7  ;;  %vm110_vm13 = vcmask 517120   ;;  %v2474_v27 = vld [vmem:[%s3117_s1] sm:$0xff]   ;;  %v2516_v29 = vmov 0.0|0.0  }
   0x6   :  { %v61_v14 = vshrl.u32 %v1812_v8, 16  ;;  %v64_v15 = vshll.u32 %v1812_v8, 16  ;;  %v95_v18 = vshrl.u32 %v1813_v13, 16  ;;  %v98_v19 = vshll.u32 %v1813_v13, 16  ;;  %83 = vst [vmem:[#allocation2 + $0x4] sm:$0x2] %v82_v17  ;;  %vm71_vm12 = vmand %vm70_vm8, %vm50_vm3  ;;  %2299 = vmatprep.subr.bf16.mxu1 %v2516_v29 }
   0x7   :  { %1978 = vmatpush3.bf16.msra.mxu0 %v2469_v1  ;;  %v87_v21 = vsel %vm85_vm11, 0, %v86_v12  ;;  %vm106_vm14 = vmand %vm105_vm10, %vm84_vm7  ;;  %v463_v37 = vld [vmem:[%s3119_s7] sm:$0xff]  ;;  %v464_v39 = vld [vmem:[%s3119_s7 + $0x8] sm:$0xff]  ;;  %vm144_vm1 = vsmask.f32 7424  ;;  %vm332_vm4 = vcmask 1046528  }
   0x8   :  { %1979 = vmatprep.subr.bf16.mxu0 %v2470_v3  ;;  %v63_v20 = vrot.slane %v61_v14, 7  ;;  %88 = vst [vmem:[#allocation2 + $0x8] sm:$0x2] %v87_v21  ;;  %v97_v22 = vrot.slane %v95_v18, 6  ;;  %v100_v23 = vrot.slane %v98_v19, 7  ;;  %vm111_vm15 = vmand %vm110_vm13, %vm79_vm6  ;;  %v465_v40 = vld [vmem:[%s3119_s7 + $0x10] sm:$0xff]  ;;  %v2643_v42 = vpack.c.bf16 %v464_v39, %v463_v37 }
   0x9   :  { %v466_v41 = vld [vmem:[%s3119_s7 + $0x18] sm:$0xff]  ;;  %v467_v44 = vld [vmem:[%s3119_s7 + $0x20] sm:$0xff]  ;;  %v468_v45 = vld [vmem:[%s3119_s7 + $0x28] sm:$0xff]  ;;  %vm2517_vm5 = vmmov 0   ;;  %vm436_vm8 = vcmask 1045504   ;;  %vm662_vm9 = vcmask 1040384  }
   0xa   :  { %v66_v24 = vor.u32 %v64_v15, %v63_v20  ;;  %v67_v25 = vrot.slane %v63_v20, 4  ;;  %v101_v26 = vor.u32 %v100_v23, %v97_v22  ;;  %2301 = vmatpush3.bf16.msra.mxu1 %v2643_v42  ;;  %v2646_v43 = vpack.c.bf16 %v466_v41, %v465_v40  ;;  %v2475_v60 = vld [vmem:[%s3117_s1 + $0x8] sm:$0xff]   ;;  %v2476_v61 = vld [vmem:[%s3117_s1 + $0x10] sm:$0xff]   ;;  %v2477_v63 = vld [vmem:[%s3117_s1 + $0x18] sm:$0xff]  }
   0xb   :  { %1980 = vmatpush3.bf16.msra.mxu0 %v2470_v3  ;;  %v72_v28 = vld [vmem:[#allocation2] sm:$0xf]  ;;  %2302 = vmatprep.subr.bf16.mxu1 %v2516_v29  ;;  %v2656_v48 = vpack.c.bf16 %v468_v45, %v467_v44  ;;  %v2480_v5 = vld [vmem:[%s3117_s1 + $0x48] sm:$0xff]   ;;  %v2481_v7 = vld [vmem:[%s3117_s1 + $0x50] sm:$0xff]   ;;  %vm692_vm10 = vcmask 1041409  }
   0xc   :  { %1981 = vmatprep.subr.bf16.mxu0 %v2471_v16  ;;  %v73_v30 = vsel %vm71_vm12, %v66_v24, %v72_v28  ;;  %v75_v31 = vld [vmem:[#allocation2 + $0x4] sm:$0x1]  ;;  %v102_v32 = vrot.slane %v101_v26, 4  ;;  %v2482_v8 = vld [vmem:[%s3117_s1 + $0x58] sm:$0xff]   ;;  %v469_v9 = vld [vmem:[%s3119_s7 + $0x30] sm:$0xff]  ;;  %v2518_v24 = vmov 0.0  }
   0xd   :  { %74 = vst [vmem:[#allocation2] sm:$0xf] %v73_v30  ;;  %v76_v33 = vsel %vm2599_vm2, %v67_v25, %v75_v31  ;;  %v107_v34 = vld [vmem:[#allocation2 + $0x4] sm:$0xe]  ;;  %vm184_vm2 = vcmask 523264   ;;  %v470_v10 = vld [vmem:[%s3119_s7 + $0x38] sm:$0xff]  ;;  %2043 = vmatprep.mubr.msk.f32.mxu1 %vm2517_vm5, %v2518_v24  ;;  %vm2803_vm11 = vmand %vm662_vm9, %vm45_vm0 }
   0xe   :  { %77 = vst [vmem:[#allocation2 + $0x4] sm:$0x1] %v76_v33  ;;  %v108_v35 = vsel %vm106_vm14, %v101_v26, %v107_v34  ;;  %2304 = vmatpush3.bf16.msra.mxu1 %v2646_v43  ;;  %v2478_v1 = vld [vmem:[%s3117_s1 + $0x40] sm:$0xff]   ;;  %v2696_v11 = vpack.c.bf16 %v470_v10, %v469_v9  ;;  %v472_v13 = vld [vmem:[%s3119_s7 + $0x48] sm:$0xff]  ;;  %v473_v15 = vld [vmem:[%s3119_s7 + $0x50] sm:$0xff] }
   0xf   :  { %1982 = vmatpush3.bf16.msra.mxu0 %v2471_v16  ;;  %v112_v36 = vld [vmem:[#allocation2 + $0x8] sm:$0x3]  ;;  %109 = vst [vmem:[#allocation2 + $0x4] sm:$0xe] %v108_v35  ;;  %2305 = vmatprep.subr.bf16.mxu1 %v2516_v29  ;;  %v471_v12 = vld [vmem:[%s3119_s7 + $0x40] sm:$0xff]  ;;  %v474_v16 = vld [vmem:[%s3119_s7 + $0x58] sm:$0xff] }
  0x10   :  { %1987 = vmatprep.subr.bf16.mxu0 %v2474_v27  ;;  %v113_v38 = vsel %vm111_vm15, %v102_v32, %v112_v36  ;;  %v2706_v14 = vpack.c.bf16 %v472_v13, %v471_v12  ;;  %v2716_v17 = vpack.c.bf16 %v474_v16, %v473_v15  ;;  %v475_v18 = vld [vmem:[%s3119_s7 + $0x60] sm:$0xff]  ;;  %v476_v19 = vld [vmem:[%s3119_s7 + $0x68] sm:$0xff]  ;;  %v477_v21 = vld [vmem:[%s3119_s7 + $0x70] sm:$0xff]  ;;  %vm684_vm15 = vcmask 1043456  }
  0x11   :  { %114 = vst [vmem:[#allocation2 + $0x8] sm:$0x3] %v113_v38  ;;  %v2726_v20 = vpack.c.bf16 %v476_v19, %v475_v18  ;;  %v478_v22 = vld [vmem:[%s3119_s7 + $0x78] sm:$0xff]  ;;  %vm667_vm12 = vmand %vm662_vm9, %vm50_vm3  ;;  %v694_v10 = vld [vmem:[#allocation3 + $0x4] sm:$0x2]  ;;  %vm726_vm9 = vcmask 1043457  }
  0x12   :  { %2307 = vmatpush3.bf16.msra.mxu1 %v2656_v48  ;;  %v2736_v23 = vpack.c.bf16 %v478_v22, %v477_v21  ;;  %v698_v12 = vld [vmem:[#allocation3 + $0x8] sm:$0x2]  ;;  %vm693_vm13 = vmand %vm692_vm10, %vm79_vm6  ;;  %v2487_v19 = vld [vmem:[%s3120_s4 + $0x58] sm:$0xff]  }
  0x13   :  { %2308 = vmatprep.subr.bf16.mxu1 %v2516_v29  ;;  %v695_v15 = vsel %vm693_vm13, 0, %v694_v10  ;;  %vm697_vm14 = vmand %vm692_vm10, %vm84_vm7  ;;  %v2486_v16 = vld [vmem:[%s3120_s4 + $0x50] sm:$0xff]   ;;  %v2488_v21 = vld [vmem:[%s3120_s4 + $0x60] sm:$0xff]   ;;  %vm706_vm10 = vsmask.f32 4368 }
  0x14   :  { %v115_v46 = vld [vmem:[#allocation2] sm:$0xf]  ;;  %696 = vst [vmem:[#allocation3 + $0x4] sm:$0x2] %v695_v15  ;;  %v699_v18 = vsel %vm697_vm14, 0, %v698_v12  ;;  %v2489_v22 = vld [vmem:[%s3120_s4 + $0x68] sm:$0xff]   ;;  %vm2852_vm13 = vmand %vm684_vm15, %vm50_vm3 }
  0x15   :  { %v319_v62 = vld [vmem:[#allocation2] sm:$0xe]  ;;  %700 = vst [vmem:[#allocation3 + $0x8] sm:$0x2] %v699_v18  ;;  %vm2857_vm14 = vmand %vm726_vm9, %vm84_vm7 }
  0x16   :  { %v116_v47 = vld [vmem:[#allocation2 + $0x4] sm:$0xf]  ;;  %2310 = vmatpush3.bf16.msra.mxu1 %v2696_v11  ;;  %vm707_vm3 = vmor %vm45_vm0, %vm706_vm10  ;;  %vm1366_vm0 = vcmask 146432  }
  0x17   :  { %v1711_v49 = vcombine.low %v115_v46, %v116_v47  ;;  %v1734_v0 = vcombine.low %v319_v62, %v116_v47  ;;  %2311 = vmatprep.subr.bf16.mxu1 %v2516_v29 }
  0x18   :  { %v2473_v50 = vld [vmem:[#allocation2 + $0x8] ss:$0 sps:$4 sm:$0x33]  }
  0x19   :  { %v146_v51 = vshrl.u32 %v1711_v49, 16  ;;  %v148_v52 = vshll.u32 %v1711_v49, 16  ;;  %v153_v53 = vshll.u32 %v2473_v50, 16  ;;  %v157_v54 = vshrl.u32 %v2473_v50, 16 }
  0x1a   :  { %v333_v2 = vrot.slane %v1734_v0, 1  ;;  %v334_v3 = vrot.slane %v2473_v50, 1  ;;  %v2479_v4 = vld [vmem:[#allocation2 + $0x8] ss:$0 sps:$4 sm:$0x11]   ;;  %2313 = vmatpush3.bf16.msra.mxu1 %v2706_v14 }
  0x1b   :  { %v150_v55 = vrot.slane %v148_v52, 1  ;;  %v155_v56 = vrot.slane %v153_v53, 1  ;;  %2314 = vmatprep.subr.bf16.mxu1 %v2516_v29 }
  0x1c   :  { %v335_v6 = vsel %vm332_vm4, %v333_v2, %v334_v3 }
  0x1d   :  { %v151_v57 = vor.u32 %v150_v55, %v146_v51  ;;  %v159_v58 = vor.u32 %v157_v54, %v155_v56 }
  0x1e   :  { %2316 = vmatpush3.bf16.msra.mxu1 %v2716_v17 }
  0x1f   :  { %v156_v59 = vsel %vm144_vm1, %v151_v57, %v155_v56  ;;  %2317 = vmatprep.subr.bf16.mxu1 %v2516_v29 }
  0x20   :  { %1983 = vmatprep.mubr.msk.bf16.mxu0 %vm184_vm2, %v156_v59 }
  0x21   :  { %1984 = vmatmul.mubr.msk.bf16.vlgmr.msra.gmra.mrb[0].mxu0 %vm184_vm2, %v159_v58 }
  0x22   :  { %1988 = vmatpush3.bf16.msra.mxu0 %v2474_v27  ;;  %1995 = vmatprep.mubr.msk.bf16.mxu0 %vm184_vm2, %v1711_v49 }
  0x23   :  { %1989 = vmatprep.subr.bf16.mxu0 %v2475_v60  ;;  %2319 = vmatpush3.bf16.msra.mxu1 %v2726_v20 }
  0x24   :  { %2320 = vmatprep.subr.bf16.mxu1 %v2516_v29 }
  0x26   :  { %1990 = vmatpush3.bf16.msra.mxu0 %v2475_v60 }
  0x27   :  { %1991 = vmatprep.subr.bf16.mxu0 %v2476_v61  ;;  %2322 = vmatpush3.bf16.msra.mxu1 %v2736_v23 }
  0x28   :  { %2323 = vmatprep.subr.bf16.mxu1 %v2516_v29 }
  0x2a   :  { %1992 = vmatpush3.bf16.msra.mxu0 %v2476_v61 }
  0x2b   :  { %1993 = vmatprep.subr.bf16.mxu0 %v2477_v63 }
  0x2e   :  { %1994 = vmatpush3.bf16.msra.mxu0 %v2477_v63 }
  0x2f   :  { %1999 = vmatprep.subr.bf16.mxu0 %v2478_v1 }
  0x31   :  { %1996 = vmatmul.mubr.msk.bf16.vlgmr.msra.gmra.mrb[0].mxu0 %vm184_vm2, %v2479_v4  ;;  %v2484_v4 = vld [vmem:[%s3120_s4 + $0x40] sm:$0xff]  }
  0x32   :  { %2000 = vmatpush3.bf16.msra.mxu0 %v2478_v1  ;;  %2007 = vmatprep.mubr.msk.bf16.mxu0 %vm184_vm2, %v335_v6 }
  0x33   :  { %2001 = vmatprep.subr.bf16.mxu0 %v2480_v5 }
  0x36   :  { %2002 = vmatpush3.bf16.msra.mxu0 %v2480_v5  ;;  %v2485_v5 = vld [vmem:[%s3120_s4 + $0x48] sm:$0xff]  }
  0x37   :  { %2003 = vmatprep.subr.bf16.mxu0 %v2481_v7 }
  0x3a   :  { %2004 = vmatpush3.bf16.msra.mxu0 %v2481_v7  ;;  %v664_v7 = vld [vmem:[#allocation3] sm:$0x1] }
  0x3b   :  { %2005 = vmatprep.subr.bf16.mxu0 %v2482_v8  ;;  %v665_v9 = vsel %vm2803_vm11, 0, %v664_v7 }
  0x3c   :  { %666 = vst [vmem:[#allocation3] sm:$0x1] %v665_v9  ;;  %v2511_v9 = vld [vmem:[%s3120_s4 + $0xb8] sm:$0xff]  }
  0x3e   :  { %2006 = vmatpush3.bf16.msra.mxu0 %v2482_v8  ;;  %v668_v8 = vld [vmem:[#allocation3 + $0x4] sm:$0x1] }
  0x3f   :  { %2081 = vmatprep.subr.bf16.mxu0 %v2484_v4  ;;  %v669_v13 = vsel %vm667_vm12, 0, %v668_v8  ;;  %vm731_vm12 = vcmask 1041408  }
  0x40   :  { %670 = vst [vmem:[#allocation3 + $0x4] sm:$0x1] %v669_v13  ;;  %vm732_vm15 = vmand %vm731_vm12, %vm79_vm6 }
  0x41   :  { %2008 = vmatmul.mubr.msk.bf16.vlgmr.msra.gmra.mrb[0].mxu0 %vm184_vm2, %v334_v3 }
  0x42   :  { %2082 = vmatpush3.bf16.msra.mxu0 %v2484_v4 }
  0x43   :  { %2083 = vmatprep.subr.bf16.mxu0 %v2485_v5  ;;  %v686_v10 = vld [vmem:[#allocation3] sm:$0xf] }
  0x46   :  { %2084 = vmatpush3.bf16.msra.mxu0 %v2485_v5 }
  0x47   :  { %2085 = vmatprep.subr.bf16.mxu0 %v2486_v16  ;;  %v689_v15 = vld [vmem:[#allocation3 + $0x4] sm:$0x1] }
  0x4a   :  { %2086 = vmatpush3.bf16.msra.mxu0 %v2486_v16 }
  0x4b   :  { %2087 = vmatprep.subr.bf16.mxu0 %v2487_v19 }
  0x4e   :  { %2088 = vmatpush3.bf16.msra.mxu0 %v2487_v19 }
  0x4f   :  { %2089 = vmatprep.subr.bf16.mxu0 %v2488_v21 }
  0x52   :  { %2090 = vmatpush3.bf16.msra.mxu0 %v2488_v21  ;;  %v728_v21 = vld [vmem:[#allocation3 + $0x4] sm:$0xe] }
  0x53   :  { %2091 = vmatprep.subr.bf16.mxu0 %v2489_v22 }
  0x56   :  { %2092 = vmatpush3.bf16.msra.mxu0 %v2489_v22 }
 0x114   :  { %v2742_v25 = vpop.f32.mrb[0].mxu0 }
 0x115   :  { %v449_v26 = vmul.f32 %v2742_v25, %v2742_v25  ;;  %v2746_v27 = vpop.f32.mrb[1].mxu0  ;;  %v438_v32 = vrot.slane %v2742_v25, 2 }
 0x116   :  { %v419_v28 = vrot.slane %v2746_v27, 4  ;;  %v426_v30 = vmul.f32 %v2746_v27, %v2746_v27  ;;  %v2010_v31 = vpop.f32.mrb[2].mxu0 }
 0x117   :  { %v2752_v33 = vpop.f32.mrb[3].mxu0  ;;  %v453_v38 = vrot.slane %v449_v26, 2  ;;  %v2490_v26 = vld [vmem:[%s3120_s4 + $0x70] sm:$0xff]   ;;  %v625_v31 = vlaneseq }
 0x118   :  { %v420_v34 = vadd.f32 %v419_v28, %v2746_v27  ;;  %v427_v35 = vrot.slane %v426_v30, 4  ;;  %v437_v36 = vrot.slane %v2752_v33, 2  ;;  %v448_v37 = vmul.f32 %v2752_v33, %v2752_v33  ;;  %v2491_v28 = vld [vmem:[%s3120_s4 + $0x78] sm:$0xff]   ;;  %2093 = vmatprep.subr.bf16.mxu0 %v2490_v26 }
 0x119   :  { %2094 = vmatpush3.bf16.msra.mxu0 %v2490_v26 }
 0x11a   :  { %v421_v39 = vrot.slane %v420_v34, 2  ;;  %v428_v40 = vadd.f32 %v427_v35, %v426_v30  ;;  %v439_v41 = vsel %vm436_vm8, %v437_v36, %v438_v32  ;;  %v452_v44 = vrot.slane %v448_v37, 2  ;;  %2095 = vmatprep.subr.bf16.mxu0 %v2491_v28  ;;  %v2835_v30 = vld [vmem:[%s3120_s4] sm:$0xff]  }
 0x11b   :  { %v441_v45 = vrot.slane %v439_v41, 4  ;;  %v626_v32 = vshrl.u32 %v625_v31, 7 }
 0x11c   :  { %v429_v46 = vrot.slane %v428_v40, 2  ;;  %v454_v47 = vsel %vm436_vm8, %v452_v44, %v453_v38  ;;  %v422_v49 = vadd.f32 %v421_v39, %v420_v34 }
 0x11d   :  { %v442_v50 = vadd.f32 %v441_v45, %v439_v41  ;;  %v456_v51 = vrot.slane %v454_v47, 4  ;;  %2096 = vmatpush3.bf16.msra.mxu0 %v2491_v28  ;;  %v2838_v34 = vsub.s32 0, %v626_v32 }
 0x11e   :  { %v430_v52 = vadd.f32 %v429_v46, %v428_v40  ;;  %v423_v56 = vrot.slane %v422_v49, 1  ;;  %2101 = vmatprep.subr.bf16.mxu0 %v2835_v30 }
 0x11f   :  { %v457_v53 = vadd.f32 %v456_v51, %v454_v47  ;;  %v443_v54 = vrot.slane %v442_v50, 2 }
 0x120   :  { %v431_v59 = vrot.slane %v430_v52, 1  ;;  %v424_v61 = vadd.f32 %v423_v56, %v422_v49 }
 0x121   :  { %v458_v55 = vrot.slane %v457_v53, 2  ;;  %v444_v57 = vadd.f32 %v443_v54, %v442_v50 }
 0x122   :  { %v432_v1 = vadd.f32 %v431_v59, %v430_v52 }
 0x123   :  { %v445_v58 = vrot.slane %v444_v57, 1  ;;  %v459_v60 = vadd.f32 %v458_v55, %v457_v53  ;;  %v1741_v53 = vld [vmem:[%s3121_s2] ss:$0 sm:$0xff] }
 0x125   :  { %v446_v62 = vadd.f32 %v445_v58, %v444_v57  ;;  %v460_v63 = vrot.slane %v459_v60, 1 }
 0x127   :  { %v447_v0 = vadd.f32 %v446_v62, %v424_v61  ;;  %v461_v2 = vadd.f32 %v460_v63, %v459_v60 }
 0x129   :  { %2044 = vmatmul.mubr.f32.vlgmr.msra.gmra.mrb[0].mxu1 %v447_v0  ;;  %v462_v3 = vadd.f32 %v461_v2, %v432_v1 }
 0x12a   :  { %2325 = vmatpush3.bf16.msra.mxu1 %v2643_v42  ;;  %2078 = vmatprep.mubr.msk.f32.mxu1 %vm2517_vm5, %v2518_v24 }
 0x12b   :  { %2326 = vmatprep.subr.bf16.mxu1 %v2516_v29 }
 0x12e   :  { %2328 = vmatpush3.bf16.msra.mxu1 %v2646_v43 }
 0x12f   :  { %2329 = vmatprep.subr.bf16.mxu1 %v2516_v29 }
 0x132   :  { %2331 = vmatpush3.bf16.msra.mxu1 %v2656_v48 }
 0x133   :  { %2332 = vmatprep.subr.bf16.mxu1 %v2516_v29 }
 0x136   :  { %2334 = vmatpush3.bf16.msra.mxu1 %v2696_v11 }
 0x137   :  { %2335 = vmatprep.subr.bf16.mxu1 %v2516_v29 }
 0x13a   :  { %2337 = vmatpush3.bf16.msra.mxu1 %v2706_v14 }
 0x13b   :  { %2338 = vmatprep.subr.bf16.mxu1 %v2516_v29 }
 0x13e   :  { %2340 = vmatpush3.bf16.msra.mxu1 %v2716_v17 }
 0x13f   :  { %2341 = vmatprep.subr.bf16.mxu1 %v2516_v29 }
 0x142   :  { %2343 = vmatpush3.bf16.msra.mxu1 %v2726_v20 }
 0x143   :  { %2344 = vmatprep.subr.bf16.mxu1 %v2516_v29 }
 0x146   :  { %2346 = vmatpush3.bf16.msra.mxu1 %v2736_v23 }
 0x147   :  { %2347 = vmatprep.subr.bf16.mxu1 %v2516_v29 }
 0x149   :  { %2079 = vmatmul.mubr.f32.vlgmr.msra.gmra.mrb[2].mxu1 %v462_v3 }
 0x14a   :  { %2349 = vmatpush3.bf16.msra.mxu1 %v2643_v42  ;;  %2173 = vmatprep.mubr.msk.f32.mxu1 %vm2517_vm5, %v2518_v24 }
 0x14b   :  { %2350 = vmatprep.subr.bf16.mxu1 %v2516_v29 }
 0x14e   :  { %2352 = vmatpush3.bf16.msra.mxu1 %v2646_v43 }
 0x14f   :  { %2353 = vmatprep.subr.bf16.mxu1 %v2516_v29 }
 0x152   :  { %2355 = vmatpush3.bf16.msra.mxu1 %v2656_v48 }
 0x153   :  { %2356 = vmatprep.subr.bf16.mxu1 %v2516_v29 }
 0x156   :  { %2358 = vmatpush3.bf16.msra.mxu1 %v2696_v11 }
 0x157   :  { %2359 = vmatprep.subr.bf16.mxu1 %v2516_v29 }
 0x15a   :  { %2361 = vmatpush3.bf16.msra.mxu1 %v2706_v14 }
 0x15b   :  { %2362 = vmatprep.subr.bf16.mxu1 %v2516_v29 }
 0x15e   :  { %2364 = vmatpush3.bf16.msra.mxu1 %v2716_v17 }
 0x15f   :  { %2365 = vmatprep.subr.bf16.mxu1 %v2516_v29 }
 0x162   :  { %2367 = vmatpush3.bf16.msra.mxu1 %v2726_v20 }
 0x163   :  { %2368 = vmatprep.subr.bf16.mxu1 %v2516_v29 }
 0x166   :  { %2370 = vmatpush3.bf16.msra.mxu1 %v2736_v23 }
 0x167   :  { %2371 = vmatprep.subr.bf16.mxu1 %v2516_v29 }
 0x1fc   :  { %v545_v35 = vpop.f32.mrb[0].mxu1 }
 0x1fd   :  { %v619_v36 = vmul.f32 0.0078125, %v545_v35  ;;  %v2045_v37 = vpop.f32.mrb[1].mxu1  ;;  %v733_v35 = vld [vmem:[#allocation3 + $0x8] sm:$0x3] }
 0x1ff   :  { %v628_v38 = vrot.slane %v619_v36, %v2838_v34  ;;  %v621_v45 = vmul.f32 %v619_v36, %v619_v36 }
 0x201   :  { %v629_v39 = vsub.f32 %v2746_v27, %v628_v38  ;;  %v630_v40 = vsub.f32 %v2752_v33, %v628_v38  ;;  %v631_v41 = vsub.f32 %v2742_v25, %v628_v38  ;;  %v1742_v25 = vld [vmem:[%s3122_s3] ss:$0 sm:$0xff] }
 0x21c   :  { %v615_v44 = vpop.f32.mrb[2].mxu1 }
 0x21d   :  { %v620_v46 = vmul.f32 0.0078125, %v615_v44  ;;  %v2080_v47 = vpop.f32.mrb[3].mxu1 }
 0x21f   :  { %v622_v49 = vsub.f32 %v620_v46, %v621_v45 }
 0x221   :  { %v623_v50 = vadd.f32 1e-05, %v622_v49 }
 0x223   :  { %2512 = vrsqrt.f32 %v623_v50 }
 0x22d   :  { %v2513_v51 = vpop.eup %2512 }
 0x22e   :  { %v635_v52 = vrot.slane %v2513_v51, %v2838_v34 }
 0x230   :  { %v636_v54 = vmul.f32 %v635_v52, %v629_v39  ;;  %v637_v27 = vmul.f32 %v635_v52, %v630_v40  ;;  %v638_v55 = vmul.f32 %v635_v52, %v631_v41 }
 0x232   :  { %v645_v33 = vmul.f32 %v1741_v53, %v636_v54  ;;  %v646_v56 = vmul.f32 %v1741_v53, %v637_v27  ;;  %v647_v57 = vmul.f32 %v1741_v53, %v638_v55  ;;  %v2495_v55 = vld [vmem:[%s3120_s4 + $0x8] sm:$0xff]  }
 0x234   :  { %v654_v58 = vadd.f32 %v1742_v25, %v645_v33  ;;  %v655_v59 = vadd.f32 %v1742_v25, %v646_v56  ;;  %v656_v60 = vadd.f32 %v1742_v25, %v647_v57  ;;  %v2496_v25 = vld [vmem:[%s3120_s4 + $0x10] sm:$0xff]   ;;  %v2497_v33 = vld [vmem:[%s3120_s4 + $0x18] sm:$0xff]   ;;  %v2498_v56 = vld [vmem:[%s3120_s4 + $0x20] sm:$0xff]  }
 0x235   :  { %v2500_v57 = vld [vmem:[%s3120_s4 + $0x30] sm:$0xff]  }
 0x236   :  { %v657_v61 = vmax.f32 %v654_v58, 0.0  ;;  %v658_v62 = vmax.f32 %v655_v59, 0.0  ;;  %v659_v63 = vmax.f32 %v656_v60, 0.0  ;;  %v2501_v59 = vld [vmem:[%s3120_s4 + $0x38] sm:$0xff]  }
 0x238   :  { %v1814_v0 = vpack.c.bf16 %v657_v61, %v657_v61  ;;  %v1815_v1 = vpack.c.bf16 %v658_v62, %v658_v62  ;;  %v1816_v2 = vpack.c.bf16 %v659_v63, %v659_v63  ;;  %v2503_v61 = vld [vmem:[%s3120_s4 + $0x80] sm:$0xff]  }
 0x23a   :  { %v675_v3 = vshrl.u32 %v1814_v0, 16  ;;  %v709_v4 = vshrl.u32 %v1815_v1, 16  ;;  %v717_v5 = vshrl.u32 %v1816_v2, 16  ;;  %v678_v8 = vshll.u32 %v1814_v0, 16 }
 0x23b   :  { %v712_v13 = vshll.u32 %v1815_v1, 16  ;;  %v720_v18 = vshll.u32 %v1816_v2, 16  ;;  %v2505_v1 = vld [vmem:[%s3120_s4 + $0x88] sm:$0xff]  }
 0x23c   :  { %v677_v7 = vrot.slane %v675_v3, 7  ;;  %v711_v12 = vrot.slane %v709_v4, 7  ;;  %v719_v16 = vrot.slane %v717_v5, 7  ;;  %v2506_v3 = vld [vmem:[%s3120_s4 + $0x90] sm:$0xff]   ;;  %v2507_v4 = vld [vmem:[%s3120_s4 + $0x98] sm:$0xff]   ;;  %v2508_v5 = vld [vmem:[%s3120_s4 + $0xa0] sm:$0xff]  }
 0x23e   :  { %v680_v22 = vor.u32 %v678_v8, %v677_v7  ;;  %v681_v26 = vrot.slane %v677_v7, 4  ;;  %v714_v28 = vor.u32 %v712_v13, %v711_v12  ;;  %v715_v31 = vrot.slane %v711_v12, 4  ;;  %v2509_v7 = vld [vmem:[%s3120_s4 + $0xa8] sm:$0xff]   ;;  %v2510_v8 = vld [vmem:[%s3120_s4 + $0xb0] sm:$0xff]  }
 0x23f   :  { %v722_v32 = vor.u32 %v720_v18, %v719_v16 }
 0x240   :  { %v687_v36 = vsel %vm2852_vm13, %v680_v22, %v686_v10  ;;  %v690_v37 = vsel %vm2803_vm11, %v681_v26, %v689_v15  ;;  %v729_v38 = vsel %vm2857_vm14, %v714_v28, %v728_v21 }
 0x241   :  { %688 = vst [vmem:[#allocation3] sm:$0xf] %v687_v36  ;;  %691 = vst [vmem:[#allocation3 + $0x4] sm:$0x1] %v690_v37  ;;  %v723_v39 = vsel %vm707_vm3, %v715_v31, %v722_v32 }
 0x242   :  { %730 = vst [vmem:[#allocation3 + $0x4] sm:$0xe] %v729_v38  ;;  %v734_v40 = vsel %vm732_vm15, %v723_v39, %v733_v35 }
 0x243   :  { %735 = vst [vmem:[#allocation3 + $0x8] sm:$0x3] %v734_v40 }
 0x248   :  { %v736_v41 = vld [vmem:[#allocation3] sm:$0xf] }
 0x249   :  { %v737_v44 = vld [vmem:[#allocation3 + $0x4] sm:$0xf]  ;;  %v995_v58 = vld [vmem:[#allocation3] sm:$0xe] }
 0x24a   :  { %v1762_v45 = vcombine.low %v736_v41, %v737_v44  ;;  %v2871_v46 = vld [vmem:[#allocation3 + $0x8] ss:$0 sps:$4 sm:$0x33]   ;;  %v1797_v60 = vcombine.low %v995_v58, %v737_v44 }
 0x24b   :  { %v789_v49 = vshll.u32 %v2871_v46, 16  ;;  %v793_v53 = vshrl.u32 %v2871_v46, 16  ;;  %v1017_v63 = vrot.slane %v2871_v46, 1  ;;  %v2502_v0 = vld [vmem:[#allocation3 + $0x8] ss:$0 sps:$4 sm:$0x11]  }
 0x24c   :  { %v784_v47 = vshll.u32 %v1762_v45, 16  ;;  %v782_v50 = vshrl.u32 %v1762_v45, 16  ;;  %v1016_v62 = vrot.slane %v1797_v60, 1  ;;  %v1611_v60 = vld [vmem:[%s3123_s11 + $0x30] sm:$0xff] }
 0x24d   :  { %v791_v51 = vrot.slane %v789_v49, 1 }
 0x24e   :  { %v786_v6 = vrot.slane %v784_v47, 1  ;;  %v1018_v2 = vsel %vm332_vm4, %v1016_v62, %v1017_v63 }
 0x24f   :  { %v795_v27 = vor.u32 %v793_v53, %v791_v51 }
 0x250   :  { %v787_v52 = vor.u32 %v786_v6, %v782_v50 }
 0x252   :  { %v792_v54 = vsel %vm144_vm1, %v787_v52, %v791_v51 }
 0x253   :  { %2097 = vmatprep.mubr.bf16.mxu0 %v792_v54 }
 0x254   :  { %2098 = vmatmul.mubr.bf16.vlgmr.msra.gmra.mrb[4].mxu0 %v795_v27 }
 0x255   :  { %2102 = vmatpush3.bf16.msra.mxu0 %v2835_v30  ;;  %2117 = vmatprep.mubr.bf16.mxu0 %v1762_v45  ;;  %v2499_v30 = vld [vmem:[%s3120_s4 + $0x28] sm:$0xff]  }
 0x256   :  { %2103 = vmatprep.subr.bf16.mxu0 %v2495_v55 }
 0x259   :  { %2104 = vmatpush3.bf16.msra.mxu0 %v2495_v55 }
 0x25a   :  { %2105 = vmatprep.subr.bf16.mxu0 %v2496_v25 }
 0x25d   :  { %2106 = vmatpush3.bf16.msra.mxu0 %v2496_v25 }
 0x25e   :  { %2107 = vmatprep.subr.bf16.mxu0 %v2497_v33 }
 0x261   :  { %2108 = vmatpush3.bf16.msra.mxu0 %v2497_v33 }
 0x262   :  { %2109 = vmatprep.subr.bf16.mxu0 %v2498_v56 }
 0x265   :  { %2110 = vmatpush3.bf16.msra.mxu0 %v2498_v56 }
 0x266   :  { %2111 = vmatprep.subr.bf16.mxu0 %v2499_v30 }
 0x269   :  { %2112 = vmatpush3.bf16.msra.mxu0 %v2499_v30 }
 0x26a   :  { %2113 = vmatprep.subr.bf16.mxu0 %v2500_v57 }
 0x26d   :  { %2114 = vmatpush3.bf16.msra.mxu0 %v2500_v57 }
 0x26e   :  { %2115 = vmatprep.subr.bf16.mxu0 %v2501_v59 }
 0x271   :  { %2116 = vmatpush3.bf16.msra.mxu0 %v2501_v59 }
 0x272   :  { %2121 = vmatprep.subr.bf16.mxu0 %v2503_v61 }
 0x274   :  { %2118 = vmatmul.mubr.bf16.vlgmr.msra.gmra.mrb[4].mxu0 %v2502_v0  ;;  %v1614_v0 = vld [vmem:[%s3123_s11 + $0x48] sm:$0xff] }
 0x275   :  { %2122 = vmatpush3.bf16.msra.mxu0 %v2503_v61  ;;  %2137 = vmatprep.mubr.bf16.mxu0 %v1018_v2  ;;  %v1612_v61 = vld [vmem:[%s3123_s11 + $0x38] sm:$0xff]  ;;  %v1615_v2 = vld [vmem:[%s3123_s11 + $0x50] sm:$0xff] }
 0x276   :  { %2123 = vmatprep.subr.bf16.mxu0 %v2505_v1  ;;  %v2435_v62 = vpack.c.bf16 %v1612_v61, %v1611_v60  ;;  %v1618_v60 = vld [vmem:[%s3123_s11 + $0x68] sm:$0xff] }
 0x279   :  { %2124 = vmatpush3.bf16.msra.mxu0 %v2505_v1 }
 0x27a   :  { %2125 = vmatprep.subr.bf16.mxu0 %v2506_v3 }
 0x27d   :  { %2126 = vmatpush3.bf16.msra.mxu0 %v2506_v3  ;;  %v1616_v3 = vld [vmem:[%s3123_s11 + $0x58] sm:$0xff] }
 0x27e   :  { %2127 = vmatprep.subr.bf16.mxu0 %v2507_v4 }
 0x281   :  { %2128 = vmatpush3.bf16.msra.mxu0 %v2507_v4  ;;  %v2441_v4 = vpack.c.bf16 %v1616_v3, %v1615_v2  ;;  %v1620_v2 = vld [vmem:[%s3123_s11 + $0x78] sm:$0xff] }
 0x282   :  { %2129 = vmatprep.subr.bf16.mxu0 %v2508_v5 }
 0x285   :  { %2130 = vmatpush3.bf16.msra.mxu0 %v2508_v5 }
 0x286   :  { %2131 = vmatprep.subr.bf16.mxu0 %v2509_v7 }
 0x289   :  { %2132 = vmatpush3.bf16.msra.mxu0 %v2509_v7 }
 0x28a   :  { %2133 = vmatprep.subr.bf16.mxu0 %v2510_v8 }
 0x28d   :  { %2134 = vmatpush3.bf16.msra.mxu0 %v2510_v8 }
 0x28e   :  { %2135 = vmatprep.subr.bf16.mxu0 %v2511_v9 }
 0x291   :  { %2136 = vmatpush3.bf16.msra.mxu0 %v2511_v9 }
 0x292   :  { %2425 = vmatprep.subr.bf16.mxu0 %v2516_v29 }
 0x294   :  { %2138 = vmatmul.mubr.bf16.vlgmr.msra.gmra.mrb[4].mxu0 %v1017_v63  ;;  %v1613_v63 = vld [vmem:[%s3123_s11 + $0x40] sm:$0xff] }
 0x295   :  { %2296 = vmatprep.mubr.msk.f32.mxu0 %vm2517_vm5, %v2518_v24  ;;  %v2438_v1 = vpack.c.bf16 %v1614_v0, %v1613_v63  ;;  %v1534_v63 = vld [vmem:[%s3128_s10 + $0x78] sm:$0xff]  ;;  %v1619_v0 = vld [vmem:[%s3123_s11 + $0x70] sm:$0xff] }
 0x296   :  { %v2447_v3 = vpack.c.bf16 %v1620_v2, %v1619_v0 }
 0x367   :  { %v2927_v10 = vpop.f32.mrb[4].mxu0 }
 0x368   :  { %v1151_v12 = vmul.f32 %v2927_v10, %v2927_v10  ;;  %v2931_v13 = vpop.f32.mrb[5].mxu0  ;;  %v1140_v19 = vrot.slane %v2927_v10, 2 }
 0x369   :  { %v1122_v15 = vrot.slane %v2931_v13, 4  ;;  %v1129_v16 = vmul.f32 %v2931_v13, %v2931_v13  ;;  %v2140_v18 = vpop.f32.mrb[6].mxu0 }
 0x36a   :  { %v2937_v21 = vpop.f32.mrb[7].mxu0  ;;  %v1155_v32 = vrot.slane %v1151_v12, 2 }
 0x36b   :  { %v1123_v22 = vadd.f32 %v1122_v15, %v2931_v13  ;;  %v1130_v26 = vrot.slane %v1129_v16, 4  ;;  %v1139_v28 = vrot.slane %v2937_v21, 2  ;;  %v1150_v31 = vmul.f32 %v2937_v21, %v2937_v21 }
 0x36d   :  { %v1124_v35 = vrot.slane %v1123_v22, 2  ;;  %v1131_v36 = vadd.f32 %v1130_v26, %v1129_v16  ;;  %v1141_v37 = vsel %vm436_vm8, %v1139_v28, %v1140_v19  ;;  %v1154_v38 = vrot.slane %v1150_v31, 2 }
 0x36e   :  { %v1143_v39 = vrot.slane %v1141_v37, 4 }
 0x36f   :  { %v1132_v40 = vrot.slane %v1131_v36, 2  ;;  %v1156_v41 = vsel %vm436_vm8, %v1154_v38, %v1155_v32  ;;  %v1125_v44 = vadd.f32 %v1124_v35, %v1123_v22 }
 0x370   :  { %v1144_v45 = vadd.f32 %v1143_v39, %v1141_v37  ;;  %v1158_v46 = vrot.slane %v1156_v41, 4 }
 0x371   :  { %v1133_v47 = vadd.f32 %v1132_v40, %v1131_v36  ;;  %v1126_v6 = vrot.slane %v1125_v44, 1  ;;  %v1806_v36 = vld [vmem:[%s3124_s5] ss:$0 sm:$0xff] }
 0x372   :  { %v1145_v49 = vrot.slane %v1144_v45, 2  ;;  %v1159_v50 = vadd.f32 %v1158_v46, %v1156_v41 }
 0x373   :  { %v1134_v54 = vrot.slane %v1133_v47, 1  ;;  %v1127_v55 = vadd.f32 %v1126_v6, %v1125_v44  ;;  %v1519_v6 = vld [vmem:[%s3128_s10] sm:$0xff] }
 0x374   :  { %v1146_v51 = vadd.f32 %v1145_v49, %v1144_v45  ;;  %v1160_v52 = vrot.slane %v1159_v50, 2 }
 0x375   :  { %v1135_v30 = vadd.f32 %v1134_v54, %v1133_v47  ;;  %v1521_v54 = vld [vmem:[%s3128_s10 + $0x10] sm:$0xff] }
 0x376   :  { %v1147_v53 = vrot.slane %v1146_v51, 1  ;;  %v1161_v27 = vadd.f32 %v1160_v52, %v1159_v50  ;;  %v1365_v50 = vld [vmem:[%s3127_s8] sm:$0xff] }
 0x377   :  { %v1444_v52 = vld [vmem:[%s3129_s9] sm:$0xff] }
 0x378   :  { %v1148_v25 = vadd.f32 %v1147_v53, %v1146_v51  ;;  %v1162_v33 = vrot.slane %v1161_v27, 1  ;;  %v1520_v51 = vld [vmem:[%s3128_s10 + $0x8] sm:$0xff] }
 0x379   :  { %v2402_v53 = vpack.c.bf16 %v1520_v51, %v1519_v6 }
 0x37a   :  { %v1149_v56 = vadd.f32 %v1148_v25, %v1127_v55  ;;  %v1163_v57 = vadd.f32 %v1162_v33, %v1161_v27  ;;  %v1522_v27 = vld [vmem:[%s3128_s10 + $0x18] sm:$0xff]  ;;  %v1523_v25 = vld [vmem:[%s3128_s10 + $0x20] sm:$0xff]  ;;  %v1524_v33 = vld [vmem:[%s3128_s10 + $0x28] sm:$0xff] }
 0x37b   :  { %v2405_v55 = vpack.c.bf16 %v1522_v27, %v1521_v54 }
 0x37c   :  { %2174 = vmatmul.mubr.f32.vlgmr.msra.gmra.mrb[4].mxu1 %v1149_v56  ;;  %v1164_v58 = vadd.f32 %v1163_v57, %v1135_v30  ;;  %v2408_v56 = vpack.c.bf16 %v1524_v33, %v1523_v25  ;;  %v1525_v30 = vld [vmem:[%s3128_s10 + $0x30] sm:$0xff] }
 0x37d   :  { %2373 = vmatpush3.bf16.msra.mxu1 %v2643_v42  ;;  %2208 = vmatprep.mubr.msk.f32.mxu1 %vm2517_vm5, %v2518_v24  ;;  %v1605_v42 = vld [vmem:[%s3123_s11] sm:$0xff] }
 0x37e   :  { %2374 = vmatprep.subr.bf16.mxu1 %v2516_v29 }
 0x381   :  { %2376 = vmatpush3.bf16.msra.mxu1 %v2646_v43  ;;  %v1606_v43 = vld [vmem:[%s3123_s11 + $0x8] sm:$0xff] }
 0x382   :  { %2377 = vmatprep.subr.bf16.mxu1 %v2516_v29 }
 0x385   :  { %2379 = vmatpush3.bf16.msra.mxu1 %v2656_v48  ;;  %v2426_v48 = vpack.c.bf16 %v1606_v43, %v1605_v42  ;;  %v1528_v42 = vld [vmem:[%s3128_s10 + $0x48] sm:$0xff] }
 0x386   :  { %2380 = vmatprep.subr.bf16.mxu1 %v2516_v29 }
 0x387   :  { %2427 = vmatpush3.bf16.msra.mxu0 %v2426_v48  ;;  %v1529_v48 = vld [vmem:[%s3128_s10 + $0x50] sm:$0xff] }
 0x388   :  { %2428 = vmatprep.subr.bf16.mxu0 %v2516_v29 }
 0x389   :  { %2382 = vmatpush3.bf16.msra.mxu1 %v2696_v11  ;;  %v1607_v11 = vld [vmem:[%s3123_s11 + $0x10] sm:$0xff] }
 0x38a   :  { %2383 = vmatprep.subr.bf16.mxu1 %v2516_v29 }
 0x38d   :  { %2385 = vmatpush3.bf16.msra.mxu1 %v2706_v14  ;;  %v1608_v14 = vld [vmem:[%s3123_s11 + $0x18] sm:$0xff] }
 0x38e   :  { %2386 = vmatprep.subr.bf16.mxu1 %v2516_v29 }
 0x391   :  { %2388 = vmatpush3.bf16.msra.mxu1 %v2716_v17  ;;  %v2429_v17 = vpack.c.bf16 %v1608_v14, %v1607_v11  ;;  %v1530_v11 = vld [vmem:[%s3128_s10 + $0x58] sm:$0xff] }
 0x392   :  { %2389 = vmatprep.subr.bf16.mxu1 %v2516_v29  ;;  %v2417_v14 = vpack.c.bf16 %v1530_v11, %v1529_v48 }
 0x393   :  { %2430 = vmatpush3.bf16.msra.mxu0 %v2429_v17  ;;  %v1531_v17 = vld [vmem:[%s3128_s10 + $0x60] sm:$0xff] }
 0x394   :  { %2431 = vmatprep.subr.bf16.mxu0 %v2516_v29 }
 0x395   :  { %2391 = vmatpush3.bf16.msra.mxu1 %v2726_v20  ;;  %v1609_v20 = vld [vmem:[%s3123_s11 + $0x20] sm:$0xff] }
 0x396   :  { %2392 = vmatprep.subr.bf16.mxu1 %v2516_v29 }
 0x399   :  { %2394 = vmatpush3.bf16.msra.mxu1 %v2736_v23  ;;  %v1610_v23 = vld [vmem:[%s3123_s11 + $0x28] sm:$0xff] }
 0x39a   :  { %2395 = vmatprep.subr.bf16.mxu1 %v2516_v29  ;;  %v2432_v59 = vpack.c.bf16 %v1610_v23, %v1609_v20  ;;  %v1532_v20 = vld [vmem:[%s3128_s10 + $0x68] sm:$0xff]  ;;  %v1617_v23 = vld [vmem:[%s3123_s11 + $0x60] sm:$0xff] }
 0x39b   :  { %v2444_v61 = vpack.c.bf16 %v1618_v60, %v1617_v23 }
 0x39c   :  { %2209 = vmatmul.mubr.f32.vlgmr.msra.gmra.mrb[6].mxu1 %v1164_v58  ;;  %2433 = vmatpush3.bf16.msra.mxu0 %v2432_v59  ;;  %v1527_v58 = vld [vmem:[%s3128_s10 + $0x40] sm:$0xff]  ;;  %v2420_v59 = vpack.c.bf16 %v1532_v20, %v1531_v17 }
 0x39d   :  { %2217 = vmatprep.mubr.msk.f32.mxu1 %vm2517_vm5, %v2518_v24  ;;  %2434 = vmatprep.subr.bf16.mxu0 %v2516_v29  ;;  %v2414_v43 = vpack.c.bf16 %v1528_v42, %v1527_v58 }
 0x3a0   :  { %2436 = vmatpush3.bf16.msra.mxu0 %v2435_v62  ;;  %v1533_v62 = vld [vmem:[%s3128_s10 + $0x70] sm:$0xff] }
 0x3a1   :  { %2437 = vmatprep.subr.bf16.mxu0 %v2516_v29 }
 0x3a4   :  { %2439 = vmatpush3.bf16.msra.mxu0 %v2438_v1  ;;  %v2423_v1 = vpack.c.bf16 %v1534_v63, %v1533_v62 }
 0x3a5   :  { %2440 = vmatprep.subr.bf16.mxu0 %v2516_v29 }
 0x3a8   :  { %2442 = vmatpush3.bf16.msra.mxu0 %v2441_v4 }
 0x3a9   :  { %2443 = vmatprep.subr.bf16.mxu0 %v2516_v29 }
 0x3ac   :  { %2445 = vmatpush3.bf16.msra.mxu0 %v2444_v61 }
 0x3ad   :  { %2446 = vmatprep.subr.bf16.mxu0 %v2516_v29 }
 0x3b0   :  { %2448 = vmatpush3.bf16.msra.mxu0 %v2447_v3 }
 0x44f   :  { %v1247_v5 = vpop.f32.mrb[4].mxu1 }
 0x450   :  { %v1321_v7 = vmul.f32 0.0078125, %v1247_v5  ;;  %v2175_v8 = vpop.f32.mrb[5].mxu1 }
 0x452   :  { %v1330_v9 = vrot.slane %v1321_v7, %v2838_v34  ;;  %v1323_v19 = vmul.f32 %v1321_v7, %v1321_v7 }
 0x454   :  { %v1331_v12 = vsub.f32 %v2931_v13, %v1330_v9  ;;  %v1332_v15 = vsub.f32 %v2937_v21, %v1330_v9  ;;  %v1333_v16 = vsub.f32 %v2927_v10, %v1330_v9  ;;  %v1807_v10 = vld [vmem:[%s3125_s6] ss:$0 sm:$0xff] }
 0x46f   :  { %v1317_v18 = vpop.f32.mrb[6].mxu1 }
 0x470   :  { %v1322_v22 = vmul.f32 0.0078125, %v1317_v18  ;;  %v2210_v26 = vpop.f32.mrb[7].mxu1 }
 0x472   :  { %v1324_v28 = vsub.f32 %v1322_v22, %v1323_v19 }
 0x474   :  { %v1325_v31 = vadd.f32 1e-05, %v1324_v28 }
 0x476   :  { %2514 = vrsqrt.f32 %v1325_v31 }
 0x480   :  { %v2515_v32 = vpop.eup %2514 }
 0x481   :  { %v1337_v35 = vrot.slane %v2515_v32, %v2838_v34 }
 0x483   :  { %v1338_v37 = vmul.f32 %v1337_v35, %v1331_v12  ;;  %v1339_v13 = vmul.f32 %v1337_v35, %v1332_v15  ;;  %v1340_v38 = vmul.f32 %v1337_v35, %v1333_v16 }
 0x485   :  { %v1347_v21 = vmul.f32 %v1806_v36, %v1338_v37  ;;  %v1348_v39 = vmul.f32 %v1806_v36, %v1339_v13  ;;  %v1349_v40 = vmul.f32 %v1806_v36, %v1340_v38 }
 0x487   :  { %v1356_v41 = vadd.f32 %v1807_v10, %v1347_v21  ;;  %v1357_v44 = vadd.f32 %v1807_v10, %v1348_v39  ;;  %v1358_v45 = vadd.f32 %v1807_v10, %v1349_v40 }
 0x489   :  { %v1359_v46 = vmax.f32 %v1356_v41, 0.0  ;;  %v1360_v47 = vmax.f32 %v1357_v44, 0.0  ;;  %v1361_v34 = vmax.f32 %v1358_v45, 0.0 }
 0x48b   :  { %1362 = vst [vmem:[%s3126_s12] sm:$0xff] %v1359_v46  ;;  %1363 = vst [vmem:[%s3126_s12 + $0x6] sm:$0xfc] %v1360_v47  ;;  %v2396_v49 = vpack.c.bf16 %v1360_v47, %v1359_v46 }
 0x48c   :  { %1364 = vst [vmem:[%s3126_s12 + $0xe] sm:$0x3] %v1361_v34 }
 0x48d   :  { %2397 = vmatpush3.bf16.msra.mxu1 %v2396_v49 }
 0x48e   :  { %2215 = vmatprep.subr.mxu1 %v2518_v24 }
 0x491   :  { %2216 = vmatpush3.msk.msra.mxu1 %vm731_vm12, %v1361_v34 }
 0x492   :  { %2218 = vmatmul.mubr.msk.f32.vlgmr.msra.gmra.mrb[8].mxu1 %vm1366_vm0, %v1365_v50  ;;  %2398 = vmatprep.subr.bf16.mxu1 %v2516_v29 }
 0x493   :  { %2400 = vmatpush3.bf16.msra.mxu1 %v2396_v49  ;;  %2226 = vmatprep.mubr.msk.f32.mxu1 %vm2517_vm5, %v2518_v24 }
 0x494   :  { %2224 = vmatprep.subr.mxu1 %v2518_v24 }
 0x497   :  { %2225 = vmatpush3.msk.msra.mxu1 %vm731_vm12, %v1361_v34 }
 0x498   :  { %2227 = vmatmul.mubr.msk.f32.vlgmr.msra.gmra.mrb[10].mxu1 %vm1366_vm0, %v1444_v52  ;;  %2401 = vmatprep.subr.bf16.mxu1 %v2516_v29 }
 0x499   :  { %2403 = vmatpush3.bf16.msra.mxu1 %v2402_v53  ;;  %2261 = vmatprep.mubr.msk.f32.mxu1 %vm2517_vm5, %v2518_v24  ;;  %v1526_v24 = vld [vmem:[%s3128_s10 + $0x38] sm:$0xff] }
 0x49a   :  { %2404 = vmatprep.subr.bf16.mxu1 %v2516_v29  ;;  %v2411_v57 = vpack.c.bf16 %v1526_v24, %v1525_v30 }
 0x49d   :  { %2406 = vmatpush3.bf16.msra.mxu1 %v2405_v55 }
 0x49e   :  { %2407 = vmatprep.subr.bf16.mxu1 %v2516_v29 }
 0x4a1   :  { %2409 = vmatpush3.bf16.msra.mxu1 %v2408_v56 }
 0x4a2   :  { %2410 = vmatprep.subr.bf16.mxu1 %v2516_v29 }
 0x4a5   :  { %2412 = vmatpush3.bf16.msra.mxu1 %v2411_v57 }
 0x4a6   :  { %2413 = vmatprep.subr.bf16.mxu1 %v2516_v29 }
 0x4a9   :  { %2415 = vmatpush3.bf16.msra.mxu1 %v2414_v43 }
 0x4aa   :  { %2416 = vmatprep.subr.bf16.mxu1 %v2516_v29 }
 0x4ad   :  { %2418 = vmatpush3.bf16.msra.mxu1 %v2417_v14 }
 0x4ae   :  { %2419 = vmatprep.subr.bf16.mxu1 %v2516_v29 }
 0x4b1   :  { %2421 = vmatpush3.bf16.msra.mxu1 %v2420_v59 }
 0x4b2   :  { %2422 = vmatprep.subr.bf16.mxu1 %v2516_v29 }
 0x4b5   :  { %2424 = vmatpush3.bf16.msra.mxu1 %v2423_v1 }
 0x565   :  { %v1440_v4 = vpop.f32.mrb[8].mxu1 }
 0x566   :  { %v2219_v5 = vpop.f32.mrb[9].mxu1 }
 0x56b   :  { %v1514_v7 = vpop.f32.mrb[10].mxu1 }
 0x56c   :  { %v1518_v8 = vmax.f32 %v1440_v4, %v1514_v7  ;;  %v2228_v9 = vpop.f32.mrb[11].mxu1 }
 0x56e   :  { %2262 = vmatmul.mubr.f32.vlgmr.msra.gmra.mrb[12].mxu1 %v1518_v8  ;;  %2297 = vmatmul.mubr.f32.vlgmr.msra.gmra.mrb[8].mxu0 %v1518_v8 }
 0x641   :  { %v1601_v12 = vpop.f32.mrb[12].mxu1  ;;  %v1687_v15 = vpop.f32.mrb[8].mxu0 }
 0x642   :  { %v1691_v16 = vmax.f32 %v1601_v12, %v1687_v15  ;;  %v2263_v18 = vpop.f32.mrb[13].mxu1  ;;  %v2298_v29 = vpop.f32.mrb[9].mxu0 }
 0x644   :  { %1692 = vst.msk [vmem:[%s3130_s13] sm:$0xff] %vm184_vm2, %v1691_v16 }

</bundles_post_ra>
